<compile_context>
chip_gen: v7x
topology: tpu7x:2x2x1
jax: 0.10.0
libtpu: 0.0.40
codegen_flags: <defaults>
</compile_context>

<pallas_src>
import math

import numpy as np

import jax
import jax.numpy as jnp
from jax import lax
from jax.experimental import pallas as pl
from jax.experimental.pallas import tpu as pltpu


def _round_up(v, m):
    return -(-v // m) * m


def _quantile_positions(K, N):
    """Static order-statistic positions q_k*(N-1), computed in float32."""
    if K == 1:
        # torch's q = arange(1)/(1-1) is 0/0 (undefined); guard -> the minimum.
        return [0.0]
    pos = []
    for k in range(K):
        q = np.float32(k) / np.float32(K - 1)
        p = float(np.float32(q) * np.float32(N - 1))
        pos.append(min(max(p, 0.0), float(N - 1)))
    return pos


def make_encoder_kernel(layer_dims, w_offsets, b_offsets, nh, K, N, tb, ninput):
    """One grid step: tb instances of (N, ninput) -> (tb, K*nh)."""
    positions = _quantile_positions(K, N)
    nlayers = len(layer_dims)

    def kernel(x_ref, p_ref, out_ref):
        # ---- MLP: one fused matmul chain over all tb*N rows (bigger MXU M) ----
        h = x_ref[...].reshape(tb * N, ninput)
        for li, (din, dout) in enumerate(layer_dims):
            wo, bo = w_offsets[li], b_offsets[li]
            w = p_ref[wo:wo + din, 0:dout]          # (din, dout), sublane-aligned
            b = p_ref[bo:bo + 1, 0:dout]            # (1, dout) bias row, aligned
            h = jnp.dot(h, w, preferred_element_type=jnp.float32) + b
            if li < nlayers - 1:
                h = jnp.maximum(h, 0.0)

        h3 = h.reshape(tb, N, nh)                   # per-instance activations

        # ---- stable rank per (instance, feature) column:
        #      one all-pairs broadcast compare + one sublane-axis sum ----
        h_i = h3[:, :, None, :]                     # (tb, N, 1, nh)
        h_j = h3[:, None, :, :]                     # (tb, 1, N, nh)
        i_idx = lax.broadcasted_iota(jnp.int32, (N, N, nh), 0)
        j_idx = lax.broadcasted_iota(jnp.int32, (N, N, nh), 1)
        tie = (j_idx < i_idx)[None]                 # constant tie-break mask
        below = (h_j < h_i) | ((h_j == h_i) & tie)  # (tb, N, N, nh)
        # float sum -> rank holds exact small integers, directly usable below
        rank = jnp.sum(below.astype(jnp.float32), axis=2)   # (tb, N, nh)

        # ---- K interpolated order statistics via triangle weights on the rank:
        #      max(0, 1-|rank-pos|) == (1-frac) at lo, frac at hi, 0 elsewhere ----
        vals = []
        for pos in positions:
            wgt = jnp.maximum(0.0, 1.0 - jnp.abs(rank - pos))
            vals.append(jnp.sum(h3 * wgt, axis=1))  # (tb, nh)

        # single lane-dense store of the whole (tb, K*nh) output block
        out_ref[...] = jnp.concatenate(vals, axis=-1).astype(out_ref.dtype)

    return kernel


def _pack_params(params):
    """Pack each layer's W (rows padded to x8) and bias (own 8-row group, so
    both weight and bias slices start on sublane boundaries) into one buffer."""
    layer_dims = [(int(w.shape[0]), int(w.shape[1])) for w, _ in params]
    max_cols = max(d for _, d in layer_dims)
    w_offsets, b_offsets, blocks = [], [], []
    off = 0
    for (w, b), (din, dout) in zip(params, layer_dims):
        w_rows = _round_up(din, 8)
        blk_rows = w_rows + 8
        blk = jnp.zeros((blk_rows, max_cols), jnp.float32)
        blk = blk.at[:din, :dout].set(w.astype(jnp.float32))
        blk = blk.at[w_rows, :dout].set(b.astype(jnp.float32).reshape(-1))
        w_offsets.append(off)
        b_offsets.append(off + w_rows)
        blocks.append(blk)
        off += blk_rows
    packed = jnp.concatenate(blocks, axis=0)
    return packed, layer_dims, w_offsets, b_offsets


def encoder_forward_batched(xb, params, K, *, block_b=None):
    """xb: (B, N, ninput) -- B independent encoder instances sharing `params`.

    params: list of (W, b) with W pre-transposed to (in, out) layout.
    Returns (B, K*nh) float32; row i equals torch encoder()(xb[i]).view(-1).
    """
    B, N, ninput = map(int, xb.shape)
    if xb.dtype != jnp.float32:
        xb = xb.astype(jnp.float32)

    nlayers = len(params)
    if nlayers >= 1:
        packed, layer_dims, w_offsets, b_offsets = _pack_params(params)
        nh = layer_dims[-1][1]
        assert layer_dims[0][0] == ninput
    else:
        # nn.Identity path: quantiles of x directly (dummy, unused param buffer).
        packed = jnp.zeros((8, 128), jnp.float32)
        layer_dims, w_offsets, b_offsets, nh = [], [], [], ninput

    # Instances per grid step: keep the output block's sublane dim either == B
    # (full array) or a multiple of 8 so the (8,128) block rule holds.
    if block_b is None:
        block_b = B if B <= 8 else 8
    B_pad = _round_up(B, block_b)
    assert block_b == B_pad or block_b % 8 == 0, (block_b, B_pad)
    if B_pad != B:
        xb = jnp.concatenate(
            [xb, jnp.zeros((B_pad - B, N, ninput), jnp.float32)], axis=0)

    kernel = make_encoder_kernel(layer_dims, w_offsets, b_offsets, nh, K, N,
                                 block_b, ninput)

    out = pl.pallas_call(
        kernel,
        out_shape=jax.ShapeDtypeStruct((B_pad, K * nh), jnp.float32),
        grid_spec=pltpu.PrefetchScalarGridSpec(
            num_scalar_prefetch=0,
            grid=(B_pad // block_b,),
            in_specs=[
                pl.BlockSpec((block_b, N, ninput), lambda b: (b, 0, 0)),
                pl.BlockSpec(packed.shape, lambda b: (0, 0)),  # shared params
            ],
            out_specs=pl.BlockSpec((block_b, K * nh), lambda b: (b, 0)),
        ),
        compiler_params=pltpu.CompilerParams(
            dimension_semantics=("parallel",)),
    )(xb, packed)
    return out[:B]


def encoder_forward(x, params, K):
    """Single-instance forward matching encoder.forward: (N, ninput) -> (K*nh,)."""
    return encoder_forward_batched(x[None], params, K)[0]


def ref_encoder(x, params, K):
    """Pure-JAX reference mirroring the PyTorch forward."""
    h = x.astype(jnp.float32)
    for li, (w, b) in enumerate(params):
        h = h @ w + b
        if li < len(params) - 1:
            h = jnp.maximum(h, 0.0)
    q = jnp.arange(K, dtype=jnp.float32) / (K - 1)
    return jnp.quantile(h, q, axis=0, keepdims=True).reshape(-1)


def _make_params(key, dims):
    """dims = [(din, dout), ...]; deterministic params in (in, out) layout."""
    params = []
    for (din, dout) in dims:
        key, kw, kb = jax.random.split(key, 3)
        w = 0.2 * jax.random.normal(kw, (din, dout), dtype=jnp.float32)
        b = 0.1 * jax.random.normal(kb, (dout,), dtype=jnp.float32)
        params.append((w, b))
    return params


if __name__ == "__main__":
    key = jax.random.PRNGKey(0)

    # --- Test 1: encoder(ninput=16, K=4, nh=32, nlayers=2); B=16 instances of
    #     x with N=8 rows each, sharing one parameter set (grid of 2 steps). ---
    N, ninput, nh, K = 8, 16, 32, 4
    B = 16
    key, kx, kp = jax.random.split(key, 3)
    xb = jax.random.normal(kx, (B, N, ninput), dtype=jnp.float32)
    params = _make_params(kp, [(ninput, nh), (nh, nh)])

    out_b = jax.block_until_ready(encoder_forward_batched(xb, params, K))
    assert out_b.shape == (B, K * nh), out_b.shape
    for i in range(B):
        ref = ref_encoder(xb[i], params, K)
        err = float(jnp.max(jnp.abs(out_b[i] - ref)))
        assert jnp.allclose(out_b[i], ref, rtol=1e-4, atol=1e-4), (i, err)

    # Single-instance call == original module's forward (x: (N, ninput)).
    out1 = jax.block_until_ready(encoder_forward(xb[0], params, K))
    ref1 = ref_encoder(xb[0], params, K)
    assert out1.shape == (K * nh,), out1.shape
    assert jnp.allclose(out1, ref1, rtol=1e-4, atol=1e-4), float(
        jnp.max(jnp.abs(out1 - ref1)))

    # --- Test 2: 3-layer MLP, odd N, K=5. ---
    N2, ninput2, nh2, K2, B2 = 12, 16, 32, 5, 4
    key, kx2, kp2 = jax.random.split(key, 3)
    xb2 = jax.random.normal(kx2, (B2, N2, ninput2), dtype=jnp.float32)
    params2 = _make_params(kp2, [(ninput2, nh2), (nh2, nh2), (nh2, nh2)])
    out2 = jax.block_until_ready(encoder_forward_batched(xb2, params2, K2))
    for i in range(B2):
        ref = ref_encoder(xb2[i], params2, K2)
        assert jnp.allclose(out2[i], ref, rtol=1e-4, atol=1e-4), i

    # --- Test 3: nlayers=0 (nn.Identity) path -> quantiles of x directly. ---
    N3, ninput3, K3, B3 = 10, 16, 4, 3
    key, kx3 = jax.random.split(key)
    xb3 = jax.random.normal(kx3, (B3, N3, ninput3), dtype=jnp.float32)
    out3 = jax.block_until_ready(encoder_forward_batched(xb3, [], K3))
    assert out3.shape == (B3, K3 * ninput3), out3.shape
    for i in range(B3):
        ref = ref_encoder(xb3[i], [], K3)
        assert jnp.allclose(out3[i], ref, rtol=1e-4, atol=1e-4), i

    print("KERNEL_OK")
</pallas_src>

<mosaic_0001>
module attributes {stable_mosaic.version = 11 : i64} {
  func.func @kernel(%arg0: i32, %arg1: memref<8x8x16xf32, #tpu.memory_space<vmem>>, %arg2: memref<64x32xf32, #tpu.memory_space<vmem>>, %arg3: memref<8x128xf32, #tpu.memory_space<vmem>>) attributes {dimension_semantics = [#tpu.dimension_semantics<parallel>], iteration_bounds = array<i64: 2>, scalar_prefetch = 0 : i64, scratch_operands = 0 : i64, tpu.core_type = #tpu.core_type<tc>, window_params = [{transform_indices = @transform_0, window_bounds = array<i64: 8, 8, 16>}, {pipeline_mode = #tpu.pipeline_mode<synchronous>, transform_indices = @transform_1, window_bounds = array<i64: 64, 32>}, {transform_indices = @transform_2, window_bounds = array<i64: 8, 128>}]} {
    %c0 = arith.constant 0 : index
    %c0_0 = arith.constant 0 : index
    %c0_1 = arith.constant 0 : index
    %0 = vector.load %arg1[%c0, %c0_0, %c0_1] : memref<8x8x16xf32, #tpu.memory_space<vmem>>, vector<8x8x16xf32>
    %1 = vector.shape_cast %0 : vector<8x8x16xf32> to vector<64x16xf32>
    %c0_2 = arith.constant 0 : index
    %c0_3 = arith.constant 0 : index
    %2 = vector.load %arg2[%c0_2, %c0_3] : memref<64x32xf32, #tpu.memory_space<vmem>>, vector<16x32xf32>
    %c16 = arith.constant 16 : index
    %c0_4 = arith.constant 0 : index
    %3 = vector.load %arg2[%c16, %c0_4] : memref<64x32xf32, #tpu.memory_space<vmem>>, vector<1x32xf32>
    %cst = arith.constant dense<0.000000e+00> : vector<64x32xf32>
    %4 = tpu.matmul %1, %2, %cst {dimension_numbers = #tpu.dot_dimension_numbers<[1], [0], [0], [1], [0, 0, 1, 1], [], []>} : vector<64x16xf32>, vector<16x32xf32>, vector<64x32xf32> -> vector<64x32xf32>
    %5 = vector.broadcast %3 : vector<1x32xf32> to vector<64x32xf32>
    %6 = arith.addf %4, %5 : vector<64x32xf32>
    %cst_5 = arith.constant 0.000000e+00 : f32
    %7 = vector.broadcast %cst_5 : f32 to vector<64x32xf32>
    %8 = arith.maximumf %6, %7 : vector<64x32xf32>
    %c24 = arith.constant 24 : index
    %c0_6 = arith.constant 0 : index
    %9 = vector.load %arg2[%c24, %c0_6] : memref<64x32xf32, #tpu.memory_space<vmem>>, vector<32x32xf32>
    %c56 = arith.constant 56 : index
    %c0_7 = arith.constant 0 : index
    %10 = vector.load %arg2[%c56, %c0_7] : memref<64x32xf32, #tpu.memory_space<vmem>>, vector<1x32xf32>
    %cst_8 = arith.constant dense<0.000000e+00> : vector<64x32xf32>
    %11 = tpu.matmul %8, %9, %cst_8 {dimension_numbers = #tpu.dot_dimension_numbers<[1], [0], [0], [1], [0, 0, 1, 1], [], []>} : vector<64x32xf32>, vector<32x32xf32>, vector<64x32xf32> -> vector<64x32xf32>
    %12 = vector.broadcast %10 : vector<1x32xf32> to vector<64x32xf32>
    %13 = arith.addf %11, %12 : vector<64x32xf32>
    %14 = vector.shape_cast %13 : vector<64x32xf32> to vector<8x8x32xf32>
    %15 = vector.shape_cast %14 : vector<8x8x32xf32> to vector<8x8x1x32xf32>
    %16 = vector.shape_cast %14 : vector<8x8x32xf32> to vector<8x1x8x32xf32>
    %17 = tpu.iota {dimensions = array<i32: 0>} : vector<8x8x32xi32>
    %18 = tpu.iota {dimensions = array<i32: 1>} : vector<8x8x32xi32>
    %19 = arith.cmpi slt, %18, %17 : vector<8x8x32xi32>
    %20 = vector.shape_cast %19 : vector<8x8x32xi1> to vector<1x8x8x32xi1>
    %21 = vector.broadcast %16 : vector<8x1x8x32xf32> to vector<8x8x8x32xf32>
    %22 = vector.broadcast %15 : vector<8x8x1x32xf32> to vector<8x8x8x32xf32>
    %23 = arith.cmpf olt, %21, %22 : vector<8x8x8x32xf32>
    %24 = vector.broadcast %16 : vector<8x1x8x32xf32> to vector<8x8x8x32xf32>
    %25 = vector.broadcast %15 : vector<8x8x1x32xf32> to vector<8x8x8x32xf32>
    %26 = arith.cmpf oeq, %24, %25 : vector<8x8x8x32xf32>
    %27 = vector.broadcast %20 : vector<1x8x8x32xi1> to vector<8x8x8x32xi1>
    %28 = arith.andi %26, %27 : vector<8x8x8x32xi1>
    %29 = arith.ori %23, %28 : vector<8x8x8x32xi1>
    %30 = arith.extui %29 : vector<8x8x8x32xi1> to vector<8x8x8x32xi32>
    %31 = arith.sitofp %30 : vector<8x8x8x32xi32> to vector<8x8x8x32xf32>
    %cst_9 = arith.constant dense<0.000000e+00> : vector<8x8x32xf32>
    %32 = vector.multi_reduction <add>, %31, %cst_9 [2] : vector<8x8x8x32xf32> to vector<8x8x32xf32>
    %cst_10 = arith.constant 0.000000e+00 : f32
    %33 = vector.broadcast %cst_10 : f32 to vector<8x8x32xf32>
    %34 = arith.subf %32, %33 : vector<8x8x32xf32>
    %35 = math.absf %34 : vector<8x8x32xf32>
    %cst_11 = arith.constant 1.000000e+00 : f32
    %36 = vector.broadcast %cst_11 : f32 to vector<8x8x32xf32>
    %37 = arith.subf %36, %35 : vector<8x8x32xf32>
    %cst_12 = arith.constant 0.000000e+00 : f32
    %38 = vector.broadcast %cst_12 : f32 to vector<8x8x32xf32>
    %39 = arith.maximumf %38, %37 : vector<8x8x32xf32>
    %40 = arith.mulf %14, %39 : vector<8x8x32xf32>
    %cst_13 = arith.constant dense<0.000000e+00> : vector<8x32xf32>
    %41 = vector.multi_reduction <add>, %40, %cst_13 [1] : vector<8x8x32xf32> to vector<8x32xf32>
    %cst_14 = arith.constant 2.33333349 : f32
    %42 = vector.broadcast %cst_14 : f32 to vector<8x8x32xf32>
    %43 = arith.subf %32, %42 : vector<8x8x32xf32>
    %44 = math.absf %43 : vector<8x8x32xf32>
    %cst_15 = arith.constant 1.000000e+00 : f32
    %45 = vector.broadcast %cst_15 : f32 to vector<8x8x32xf32>
    %46 = arith.subf %45, %44 : vector<8x8x32xf32>
    %cst_16 = arith.constant 0.000000e+00 : f32
    %47 = vector.broadcast %cst_16 : f32 to vector<8x8x32xf32>
    %48 = arith.maximumf %47, %46 : vector<8x8x32xf32>
    %49 = arith.mulf %14, %48 : vector<8x8x32xf32>
    %cst_17 = arith.constant dense<0.000000e+00> : vector<8x32xf32>
    %50 = vector.multi_reduction <add>, %49, %cst_17 [1] : vector<8x8x32xf32> to vector<8x32xf32>
    %cst_18 = arith.constant 4.66666698 : f32
    %51 = vector.broadcast %cst_18 : f32 to vector<8x8x32xf32>
    %52 = arith.subf %32, %51 : vector<8x8x32xf32>
    %53 = math.absf %52 : vector<8x8x32xf32>
    %cst_19 = arith.constant 1.000000e+00 : f32
    %54 = vector.broadcast %cst_19 : f32 to vector<8x8x32xf32>
    %55 = arith.subf %54, %53 : vector<8x8x32xf32>
    %cst_20 = arith.constant 0.000000e+00 : f32
    %56 = vector.broadcast %cst_20 : f32 to vector<8x8x32xf32>
    %57 = arith.maximumf %56, %55 : vector<8x8x32xf32>
    %58 = arith.mulf %14, %57 : vector<8x8x32xf32>
    %cst_21 = arith.constant dense<0.000000e+00> : vector<8x32xf32>
    %59 = vector.multi_reduction <add>, %58, %cst_21 [1] : vector<8x8x32xf32> to vector<8x32xf32>
    %cst_22 = arith.constant 7.000000e+00 : f32
    %60 = vector.broadcast %cst_22 : f32 to vector<8x8x32xf32>
    %61 = arith.subf %32, %60 : vector<8x8x32xf32>
    %62 = math.absf %61 : vector<8x8x32xf32>
    %cst_23 = arith.constant 1.000000e+00 : f32
    %63 = vector.broadcast %cst_23 : f32 to vector<8x8x32xf32>
    %64 = arith.subf %63, %62 : vector<8x8x32xf32>
    %cst_24 = arith.constant 0.000000e+00 : f32
    %65 = vector.broadcast %cst_24 : f32 to vector<8x8x32xf32>
    %66 = arith.maximumf %65, %64 : vector<8x8x32xf32>
    %67 = arith.mulf %14, %66 : vector<8x8x32xf32>
    %cst_25 = arith.constant dense<0.000000e+00> : vector<8x32xf32>
    %68 = vector.multi_reduction <add>, %67, %cst_25 [1] : vector<8x8x32xf32> to vector<8x32xf32>
    %69 = tpu.concatenate %41, %50, %59, %68 in 1 : vector<8x32xf32>, vector<8x32xf32>, vector<8x32xf32>, vector<8x32xf32> -> vector<8x128xf32>
    %c0_26 = arith.constant 0 : index
    %c0_27 = arith.constant 0 : index
    %70 = vector.load %arg3[%c0_26, %c0_27] : memref<8x128xf32, #tpu.memory_space<vmem>>, vector<8x128xf32>
    tpu.vector_store %arg3[%c0_26, %c0_27], %69 {strides = array<i32>} : memref<8x128xf32, #tpu.memory_space<vmem>>, vector<8x128xf32>,
    return
  }
  func.func @transform_0(%arg0: i32) -> (i32, i32, i32) {
    %c0_i32 = arith.constant 0 : i32
    %c0_i32_0 = arith.constant 0 : i32
    %c0_i32_1 = arith.constant 0 : i32
    return %arg0, %c0_i32, %c0_i32_0 : i32, i32, i32
  }
  func.func @transform_1(%arg0: i32) -> (i32, i32) {
    %c0_i32 = arith.constant 0 : i32
    %c0_i32_0 = arith.constant 0 : i32
    %c0_i32_1 = arith.constant 0 : i32
    return %c0_i32, %c0_i32_0 : i32, i32
  }
  func.func @transform_2(%arg0: i32) -> (i32, i32) {
    %c0_i32 = arith.constant 0 : i32
    %c0_i32_0 = arith.constant 0 : i32
    return %arg0, %c0_i32 : i32, i32
  }
}

</mosaic_0001>

<bundles_post_ra>
// kernel: tpu_custom_call.1
= control target key start
LH: loop header
LB: loop body
LE: loop exit
PB: predicated region body
PF: predicated region fallthrough
CT: control target
= control target key end

     0   :  { %7 = vsyncpa [#allocation3], 0  ;;  %s9054_s0 = inlined_call_operand.hbm [shape: f32[16,8,16], index: 0, kind: input, shape index: {}]   ;;  %s9055_s1 = inlined_call_operand.vmem [shape: f32[64,32], index: 1, kind: input, shape index: {}]   ;;  %s9056_s2 = inlined_call_operand.hbm [shape: f32[16,128], index: 2, kind: output, shape index: {}]  }
   0x1   :  { %9 = vsyncpa [#allocation3 + $0x1], 0 }
   0x2   :  { %10 = vsyncpa [#allocation4], 0 }
   0x3   :  { %12 = vsyncpa [#allocation4 + $0x1], 0  ;;  %s4461_s9 = smov 0   ;;  %s4463_s10 = smov 0  }
   0x4   :  { %s4465_s11 = smov 0   ;;  %s4467_s12 = smov 0  }
   0x5 LB: > { %s4482_s13 = sadd.s32 4294967295, %s4435_s12   ;;  %s3928_s14 = sadd.s32 4294967294, %s4435_s12   ;;  %s4435_s12 = sphi %s4467_s12, %s10648_s12   ;;  %s4431_s11 = sphi %s4465_s11, %s10647_s11   ;;  %s4427_s10 = sphi %s4463_s10, %s10646_s10   ;;  %s4423_s9 = sphi %s4461_s9, %s10645_s9  }
   0x6   : > { %s4486_s15 = sadd.s32 1, %s4435_s12   ;;  %s25_s16 = sadd.s32 1, %s4431_s11 }
   0x7   : > { %s22_s17 = ssub.s32 %s4435_s12, %s4486_s15  ;;  %p32_p0 = scmp.ne.s32.totalorder %s4431_s11, %s4427_s10 }
   0x8   : > { %p23_p1 = scmp.eq.s32.totalorder %s22_s17, 0  ;;  %p33_p2 = scmp.eq.s32.totalorder %s4435_s12, 0 }
   0x9   : > { %p38_p3 = scmp.ne.s32.totalorder %s4427_s10, %s4423_s9  ;;  %p39_p4 = scmp.eq.s32.totalorder %s4482_s13, 0 }
   0xa   : > { %s4498_s18 = scalar_select %p23_p1, %s4431_s11, %s25_s16  }
   0xb   : > { %p4500_p5 = por %p33_p2, %p32_p0  ;;  %p4504_p6 = por %p39_p4, %p38_p3 }
   0xc   : > { %p83_p7 = scmp.eq.s32.totalorder %s4482_s13, 1  ;;  %p89_p8 = scmp.eq.s32.totalorder %s3928_s14, 1 }
   0xd   : > { %p4298_p10 = scmp.lt.s32.totalorder %s4435_s12, 2  ;;  %s112_s23 = sand.u32 1, %s4431_s11  }
   0xe   : > { %p4511_p11 = por %p83_p7, %p32_p0  ;;  %p4515_p12 = por %p89_p8, %p38_p3 }
   0xf   : > { %s4215_s24 = sshll.u32 %s4435_s12, 10  ;;  %s3931_s25 = sshll.u32 %s112_s23, 6 }
  0x10   : > { %s9339_s21 = scalar_select %p4511_p11, 1, 0 }
  0x11   : > { %s9340_s22 = scalar_select %p4515_p12, 1, 0 }
  0x12   : > { %s4524_s28 = scalar_lea.hbm %s9054_s0, %s4215_s24  ;;  %s116_s29 = scalar_lea.vmem [#allocation2], %s3931_s25 }
  0x13   : > { %s123_s30 = sshll.u32 %s116_s29, 4  ;;  %p4528_p13 = pnand %p4298_p10, %p4500_p5  ;;  %s4532_s30 = int_to_ptr.vmem [resolvable:$true] %s123_s30 }
  0x14   : > { %s4534_s4 = scalar_lea.sflag [#allocation3], %s112_s23  ;;  %s4339_s5 = scalar_lea.hbm %s4524_s28, 1024 }
  0x15   : > { %p4340_p0 = scmp.ne.s32.totalorder %s4524_s28, %s4339_s5  ;;  %p4341_p1 = pneg %p4528_p13 }
  0x16   : > { %s4344_s8 = scalar_lea.hbm %s9054_s0, 2048  ;;  %p4345_p4 = scmp.lt.u32.totalorder %s4524_s28, %s9054_s0 }
  0x17   : > { %p4342_p2 = pnand %p4341_p1, %p4340_p0  ;;  %p4346_p5 = scmp.lt.u32.totalorder %s4344_s8, %s4339_s5 }
  0x18   : > { %p4348_p8 = scmp.lt.u32.totalorder %s4339_s5, %s4524_s28 }
  0x19   : > { %p4343_p3 = pneg %p4342_p2  ;;  %p4347_p7 = por %p4346_p5, %p4345_p4 }
  0x1b   : > { %p4349_p10 = por %p4348_p8, %p4347_p7 }
  0x1d   : > { %p4350_p9 = pnand %p4349_p10, %p4343_p3 }
  0x1f   : > { %4353 = shalt.err (!%p4350_p9)
}
  0x20   : > { %s4354_s17 = scalar_lea.vmem %s4532_s30, 1024  ;;  %s4437_s19 = smov [#allocation2]  }
  0x21   : > { %p4355_p0 = scmp.ne.s32.totalorder %s4532_s30, %s4354_s17  ;;  %s4359_s23 = sshll.u32 %s4437_s19, 4  ;;  %s4360_s23 = int_to_ptr.vmem [resolvable:$false] %s4359_s23 }
  0x22   : > { %s4361_s24 = scalar_lea.vmem %s4360_s23, 2048  ;;  %p4362_p11 = scmp.lt.s32.totalorder %s4532_s30, %s4360_s23 }
  0x23   : > { %p4357_p2 = pnand %p4355_p0, %p4341_p1  ;;  %p4363_p4 = scmp.lt.s32.totalorder %s4361_s24, %s4354_s17 }
  0x25   : > { %p4358_p12 = pneg %p4357_p2  ;;  %p4364_p5 = por %p4363_p4, %p4362_p11 }
  0x27   : > { %p4365_p7 = pnand %p4364_p5, %p4358_p12 }
  0x29   : > { %4368 = shalt.err (!%p4365_p7)
}
  0x2a   : > { %s4438_s25 = smov 128   ;;  %s4439_s26 = smov 8  }
  0x2b   : > { %4293 = dma.hbm_to_vmem [thread:$0]  (!%p4528_p13), %s4524_s28, 1024, %s4532_s30, %s4534_s4, %s4438_s25, %s4438_s25, %s4439_s26  }
  0x2c   : > { %p3934_p9 = scmp.ge.s32.totalorder %s4435_s12, 1  ;;  %p131_p1 = scmp.lt.s32.totalorder %s4435_s12, 3 }
  0x2e   : > { %p132_p3 = pnand %p3934_p9, %p131_p1 }
  0x30   : > { %135 = sbr.rel (%p132_p3) target bundleno = 1221 (0x4c5), region = 28 }
  0x37   : > { %s4565_s27 = sand.u32 1, %s4427_s10  }
  0x38   : > { %s3935_s29 = sshll.u32 %s4565_s27, 6  ;;  %s138_s5 = scalar_lea.sflag [#allocation3], %s4565_s27 }
  0x39   : > { %s141_s6 = scalar_lea.vmem [#allocation2], %s3935_s29 }
  0x3a   : > { %4414 = dma.done.wait (%p4504_p6), %s138_s5, 1024  }
  0x3b   : > { %4416 = vsyncadd (%p4504_p6), %s138_s5, 4294966272  ;;  %vm178_vm0 = vcmask 130048   ;;  %v171_v0 = vld [vmem:[%s9055_s1] sm:$0xff]  ;;  %v172_v1 = vld [vmem:[%s9055_s1 + $0x8] sm:$0xff]  ;;  %vm9088_vm1 = vcmask 261120   ;;  %v467_v52 = vlaneseq  ;;  %s4442_s5 = smov 96  }
  0x3c   : > { %v163_v2 = vld [vmem:[%s141_s6] sm:$0xff]  ;;  %v4274_v3 = vpack.c.bf16 %v172_v1, %v171_v0  ;;  %v316_v4 = vld [vmem:[%s9055_s1 + $0x18] sm:$0xff]  ;;  %v164_v6 = vld [vmem:[%s141_s6 + $0x8] sm:$0xff]  ;;  %v4440_v50 = vmov 1966171168   ;;  %s4444_s28 = smov 64  }
  0x3d   : > { %4242 = vmatprep.mubr.msk.f32.mxu0 %vm178_vm0, %v163_v2  ;;  %v317_v5 = vld [vmem:[%s9055_s1 + $0x20] sm:$0xff]  ;;  %v165_v8 = vld [vmem:[%s141_s6 + $0x10] sm:$0xff]  ;;  %v166_v9 = vld [vmem:[%s141_s6 + $0x18] sm:$0xff]  ;;  %v465_v51 = vunpack.c.l.s4 %v4440_v50  ;;  %v4613_v55 = vshrl.u32 %v467_v52, 7  ;;  %s3936_s30 = sshll.u32 %s4565_s27, 3  ;;  %s4212_s3 = sshll.u32 %s4482_s13, 7 }
  0x3e   : > { %4275 = vmatprep.subr.bf16.mxu0 %v4274_v3  ;;  %v4278_v7 = vpack.c.bf16 %v317_v5, %v316_v4  ;;  %v167_v10 = vld [vmem:[%s141_s6 + $0x20] sm:$0xff]  ;;  %v168_v11 = vld [vmem:[%s141_s6 + $0x28] sm:$0xff]  ;;  %v169_v12 = vld [vmem:[%s141_s6 + $0x30] sm:$0xff]  ;;  %s161_s4 = scalar_lea.vmem [#allocation5], %s3936_s30  ;;  %s9010_s14 = scalar_lea.hbm %s9056_s2, %s4212_s3 }
  0x3f   : > { %4277 = vmatpush3.bf16.msra.mxu0 %v4274_v3  ;;  %v170_v13 = vld [vmem:[%s141_s6 + $0x38] sm:$0xff]  ;;  %v318_v14 = vld [vmem:[%s9055_s1 + $0x28] sm:$0xff]  ;;  %v319_v15 = vld [vmem:[%s9055_s1 + $0x30] sm:$0xff]  ;;  %v466_v54 = vunpack.c.0.s8 %v465_v51  ;;  %vm9098_vm10 = vcmp.lt.s32.totalorder %v4613_v55, 1  ;;  %vm9089_vm11 = vcmp.lt.s32.totalorder %v4613_v55, 2  ;;  %vm9090_vm12 = vcmp.lt.s32.totalorder %v4613_v55, 3 }
  0x40   : > { %4279 = vmatprep.subr.bf16.mxu1 %v4278_v7  ;;  %v4282_v16 = vpack.c.bf16 %v319_v15, %v318_v14  ;;  %v3937_v17 = vld [vmem:[%s9055_s1 + $0x10] ss:$0 sm:$0xff]  ;;  %v3946_v53 = vld [vmem:[%s9055_s1 + $0x38] ss:$0 sm:$0xff]  ;;  %vm9091_vm13 = vcmp.lt.s32.totalorder %v4613_v55, 4  ;;  %vm9092_vm14 = vcmp.lt.s32.totalorder %v4613_v55, 5 }
  0x41   : > { %4281 = vmatpush3.bf16.msra.mxu1 %v4278_v7  ;;  %v4618_v57 = vsub.s32 %v466_v54, %v4613_v55  ;;  %vm9093_vm15 = vcmp.lt.s32.totalorder %v4613_v55, 6  ;;  %s4443_s6 = smov 32   ;;  %s3858_s7 = sshll.u32 %s161_s4, 4  ;;  %s9012_s7 = int_to_ptr.vmem [resolvable:$true] %s3858_s7 }
  0x42   : > { %4243 = vmatmul.mubr.msk.f32.vlgmr.msra.gmra.mrb[0].mxu0 %vm178_vm0, %v164_v6  ;;  %4283 = vmatprep.subr.bf16.mxu1 %v4282_v16  ;;  %s3845_s13 = scalar_lea.sflag [#allocation4], %s4565_s27  ;;  %s4369_s16 = scalar_lea.vmem %s9012_s7, 128 }
  0x43   : > { %4245 = vmatprep.mubr.msk.f32.mxu0 %vm178_vm0, %v165_v8  ;;  %p4370_p6 = scmp.ne.s32.totalorder %s9012_s7, %s4369_s16  ;;  %p10642_p11 = scmp.ne.s32.totalorder %s9339_s21, 0 }
  0x44   : > { %s4445_s17 = smov [#allocation5]  }
  0x45   : > { %4285 = vmatpush3.bf16.msra.mxu1 %v4282_v16  ;;  %p4371_p12 = pnand %p4370_p6, %p10642_p11  ;;  %s4373_s19 = sshll.u32 %s4445_s17, 4  ;;  %s4374_s19 = int_to_ptr.vmem [resolvable:$false] %s4373_s19 }
  0x46   : > { %4246 = vmatmul.mubr.msk.f32.gmra.mrb[2].mxu0 %vm178_vm0, %v166_v9  ;;  %s4375_s23 = scalar_lea.vmem %s4374_s19, 256  ;;  %p4376_p8 = scmp.lt.s32.totalorder %s9012_s7, %s4374_s19 }
  0x47   : > { %4248 = vmatprep.mubr.msk.f32.mxu0 %vm178_vm0, %v167_v10  ;;  %p4372_p13 = pneg %p4371_p12  ;;  %p4377_p10 = scmp.lt.s32.totalorder %s4375_s23, %s4369_s16 }
  0x49   : > { %p4378_p0 = por %p4377_p10, %p4376_p8 }
  0x4a   : > { %4249 = vmatmul.mubr.msk.f32.gmra.mrb[4].mxu0 %vm178_vm0, %v168_v11 }
  0x4b   : > { %4251 = vmatprep.mubr.msk.f32.mxu0 %vm178_vm0, %v169_v12  ;;  %p4379_p2 = pnand %p4378_p0, %p4372_p13 }
  0x4e   : > { %4252 = vmatmul.mubr.msk.f32.gmra.mrb[6].mxu0 %vm178_vm0, %v170_v13  ;;  %vm9099_vm0 = vcmp.lt.s32.totalorder %v4613_v55, 7 }
 0x115   : > { %v4244_v18 = vpop.f32.mrb[0].mxu0 }
 0x116   : > { %v275_v19 = vadd.f32 %v4244_v18, %v3937_v17  ;;  %v269_v20 = vpop.f32.mrb[1].mxu0 }
 0x117   : > { %v270_v21 = vadd.f32 %v3937_v17, %v269_v20 }
 0x118   : > { %v309_v24 = vmax.f32 %v275_v19, 0.0 }
 0x119   : > { %v308_v22 = vmax.f32 %v270_v21, 0.0  ;;  %v4247_v23 = vpop.f32.mrb[2].mxu0  ;;  %v4672_v21 = vsub.s32 0, %v4613_v55 }
 0x11a   : > { %v285_v25 = vadd.f32 %v4247_v23, %v3937_v17  ;;  %v279_v26 = vpop.f32.mrb[3].mxu0 }
 0x11b   : > { %v280_v27 = vadd.f32 %v3937_v17, %v279_v26  ;;  %4262 = vmatprep.mubr.msk.f32.mxu1 %vm9088_vm1, %v308_v22 }
 0x11c   : > { %4263 = vmatmul.mubr.msk.f32.vlgmr.msra.gmra.mrb[0].mxu1 %vm9088_vm1, %v309_v24  ;;  %v311_v30 = vmax.f32 %v285_v25, 0.0 }
 0x11d   : > { %v310_v28 = vmax.f32 %v280_v27, 0.0  ;;  %v4250_v29 = vpop.f32.mrb[4].mxu0 }
 0x11e   : > { %v295_v31 = vadd.f32 %v4250_v29, %v3937_v17  ;;  %v289_v32 = vpop.f32.mrb[5].mxu0 }
 0x11f   : > { %v290_v33 = vadd.f32 %v3937_v17, %v289_v32  ;;  %4265 = vmatprep.mubr.msk.f32.mxu1 %vm9088_vm1, %v310_v28 }
 0x120   : > { %4266 = vmatmul.mubr.msk.f32.gmra.mrb[2].mxu1 %vm9088_vm1, %v311_v30  ;;  %v313_v36 = vmax.f32 %v295_v31, 0.0 }
 0x121   : > { %v312_v34 = vmax.f32 %v290_v33, 0.0  ;;  %v4253_v35 = vpop.f32.mrb[6].mxu0 }
 0x122   : > { %v305_v37 = vadd.f32 %v4253_v35, %v3937_v17  ;;  %v299_v38 = vpop.f32.mrb[7].mxu0 }
 0x123   : > { %v300_v39 = vadd.f32 %v3937_v17, %v299_v38  ;;  %4268 = vmatprep.mubr.msk.f32.mxu1 %vm9088_vm1, %v312_v34 }
 0x124   : > { %4269 = vmatmul.mubr.msk.f32.gmra.mrb[4].mxu1 %vm9088_vm1, %v313_v36  ;;  %v315_v41 = vmax.f32 %v305_v37, 0.0 }
 0x125   : > { %v314_v40 = vmax.f32 %v300_v39, 0.0 }
 0x127   : > { %4271 = vmatprep.mubr.msk.f32.mxu1 %vm9088_vm1, %v314_v40 }
 0x128   : > { %4272 = vmatmul.mubr.msk.f32.gmra.mrb[6].mxu1 %vm9088_vm1, %v315_v41 }
 0x1ef   : > { %v4264_v42 = vpop.f32.mrb[0].mxu1 }
 0x1f0   : > { %v416_v43 = vpop.f32.mrb[1].mxu1  ;;  %v4615_v56 = vadd.f32 %v4264_v42, %v3946_v53 }
 0x1f1   : > { %v4620_v58 = vadd.f32 %v3946_v53, %v416_v43 }
 0x1f2   : > { %9342 = vst [vmem:[#allocation8_spill] sm:$0xff] %v4615_v56  ;;  %v512_v59 = vcombine.high %v4615_v56, %v4615_v56  ;;  %v519_v60 = vrot.slane %v4615_v56, %v4618_v57 }
 0x1f3   : > { %v4267_v44 = vpop.f32.mrb[2].mxu1  ;;  %9343 = vst [vmem:[#allocation9_spill] sm:$0xff] %v4620_v58  ;;  %v463_v61 = vcombine.high %v4620_v58, %v4620_v58  ;;  %v470_v62 = vrot.slane %v4620_v58, %v4618_v57 }
 0x1f4   : > { %v426_v45 = vpop.f32.mrb[3].mxu1  ;;  %v526_v63 = vrot.slane %v512_v59, %v4618_v57  ;;  %v4633_v1 = vadd.f32 %v4267_v44, %v3946_v53  ;;  %v527_v2 = vcombine.high %v519_v60, %v519_v60  ;;  %v4640_v7 = vrot.slane %v519_v60, %v4618_v57 }
 0x1f5   : > { %v4631_v0 = vadd.f32 %v3946_v53, %v426_v45  ;;  %v477_v3 = vrot.slane %v463_v61, %v4618_v57  ;;  %v478_v4 = vcombine.high %v470_v62, %v470_v62  ;;  %v4637_v6 = vrot.slane %v470_v62, %v4618_v57 }
 0x1f6   : > { %9345 = vst [vmem:[#allocation11_spill] sm:$0xff] %v4633_v1  ;;  %v528_v5 = vcombine.high %v526_v63, %v526_v63  ;;  %v4643_v8 = vrot.slane %v526_v63, %v4618_v57  ;;  %v4650_v11 = vrot.slane %v527_v2, %v4618_v57  ;;  %v610_v13 = vcombine.high %v4633_v1, %v4633_v1 }
 0x1f7   : > { %v4270_v46 = vpop.f32.mrb[4].mxu1  ;;  %9344 = vst [vmem:[#allocation10_spill] sm:$0xff] %v4631_v0  ;;  %v561_v9 = vcombine.high %v4631_v0, %v4631_v0  ;;  %v568_v12 = vrot.slane %v4631_v0, %v4618_v57  ;;  %v479_v14 = vcombine.high %v477_v3, %v477_v3  ;;  %v4657_v15 = vrot.slane %v477_v3, %v4618_v57 }
 0x1f8   : > { %v436_v47 = vpop.f32.mrb[5].mxu1  ;;  %v4660_v16 = vrot.slane %v478_v4, %v4618_v57  ;;  %v617_v17 = vrot.slane %v4633_v1, %v4618_v57  ;;  %v4664_v18 = vadd.f32 %v4270_v46, %v3946_v53  ;;  %v4669_v20 = vrot.slane %v528_v5, %v4618_v57 }
 0x1f9   : > { %v4647_v10 = vadd.f32 %v3946_v53, %v436_v47  ;;  %v508_v22 = vcombine.high %v4637_v6, %v4637_v6  ;;  %v557_v23 = vcombine.high %v4640_v7, %v4640_v7  ;;  %v558_v24 = vcombine.high %v4643_v8, %v4643_v8 }
 0x1fa   : > { %9347 = vst [vmem:[#allocation13_spill] sm:$0xff] %v4664_v18  ;;  %v575_v25 = vrot.slane %v561_v9, %v4618_v57  ;;  %v559_v26 = vcombine.high %v4650_v11, %v4650_v11  ;;  %v576_v27 = vcombine.high %v568_v12, %v568_v12  ;;  %v624_v28 = vrot.slane %v610_v13, %v4618_v57 }
 0x1fb   : > { %v4273_v48 = vpop.f32.mrb[6].mxu1  ;;  %9346 = vst [vmem:[#allocation12_spill] sm:$0xff] %v4647_v10  ;;  %v659_v29 = vcombine.high %v4647_v10, %v4647_v10  ;;  %v4687_v30 = vrot.slane %v479_v14, %v4618_v57  ;;  %v509_v31 = vcombine.high %v4657_v15, %v4657_v15  ;;  %v510_v32 = vcombine.high %v4660_v16, %v4660_v16 }
 0x1fc   : > { %v446_v49 = vpop.f32.mrb[7].mxu1  ;;  %v625_v33 = vcombine.high %v617_v17, %v617_v17  ;;  %v4693_v34 = vadd.f32 %v4273_v48, %v3946_v53  ;;  %v560_v35 = vcombine.high %v4669_v20, %v4669_v20  ;;  %v708_v36 = vcombine.high %v4664_v18, %v4664_v18 }
 0x1fd   : > { %v4666_v19 = vadd.f32 %v3946_v53, %v446_v49  ;;  %v577_v38 = vcombine.high %v575_v25, %v575_v25  ;;  %v4702_v39 = vrot.slane %v568_v12, %v4618_v57  ;;  %v4705_v40 = vrot.slane %v617_v17, %v4618_v57 }
 0x1fe   : > { %9349 = vst [vmem:[#allocation15_spill] sm:$0xff] %v4693_v34  ;;  %v666_v41 = vrot.slane %v4647_v10, %v4618_v57  ;;  %v4710_v42 = vrot.slane %v575_v25, %v4618_v57  ;;  %v4713_v43 = vrot.slane %v576_v27, %v4618_v57  ;;  %v626_v44 = vcombine.high %v624_v28, %v624_v28 }
 0x1ff   : > { %9348 = vst [vmem:[#allocation14_spill] sm:$0xff] %v4666_v19  ;;  %v757_v37 = vcombine.high %v4666_v19, %v4666_v19  ;;  %v673_v45 = vrot.slane %v659_v29, %v4618_v57  ;;  %v511_v46 = vcombine.high %v4687_v30, %v4687_v30  ;;  %v4719_v47 = vrot.slane %v624_v28, %v4618_v57 }
 0x200   : > { %v4722_v48 = vrot.slane %v625_v33, %v4618_v57  ;;  %v715_v49 = vrot.slane %v4664_v18, %v4618_v57  ;;  %v722_v50 = vrot.slane %v708_v36, %v4618_v57  ;;  %v764_v51 = vrot.slane %v4666_v19, %v4618_v57 }
 0x201   : > { %v771_v52 = vrot.slane %v757_v37, %v4618_v57  ;;  %v806_v53 = vcombine.high %v4693_v34, %v4693_v34  ;;  %v4733_v54 = vrot.slane %v577_v38, %v4618_v57  ;;  %v606_v59 = vcombine.high %v4702_v39, %v4702_v39 }
 0x202   : > { %v674_v61 = vcombine.high %v666_v41, %v666_v41  ;;  %v607_v62 = vcombine.high %v4710_v42, %v4710_v42  ;;  %v608_v63 = vcombine.high %v4713_v43, %v4713_v43  ;;  %v4744_v2 = vrot.slane %v626_v44, %v4618_v57 }
 0x203   : > { %v675_v3 = vcombine.high %v673_v45, %v673_v45  ;;  %v723_v9 = vcombine.high %v715_v49, %v715_v49  ;;  %v813_v12 = vrot.slane %v4693_v34, %v4618_v57  ;;  %v724_v13 = vcombine.high %v722_v50, %v722_v50 }
 0x204   : > { %v772_v14 = vcombine.high %v764_v51, %v764_v51  ;;  %v773_v17 = vcombine.high %v771_v52, %v771_v52  ;;  %v820_v25 = vrot.slane %v806_v53, %v4618_v57  ;;  %v609_v27 = vcombine.high %v4733_v54, %v4733_v54 }
 0x205   : > { %v4756_v28 = vrot.slane %v666_v41, %v4618_v57  ;;  %v4759_v29 = vrot.slane %v673_v45, %v4618_v57  ;;  %v4762_v33 = vrot.slane %v674_v61, %v4618_v57  ;;  %v4767_v37 = vrot.slane %v675_v3, %v4618_v57 }
 0x206   : > { %v4770_v38 = vrot.slane %v715_v49, %v4618_v57  ;;  %v4773_v44 = vrot.slane %v722_v50, %v4618_v57  ;;  %v4776_v41 = vrot.slane %v723_v9, %v4618_v57  ;;  %v4779_v45 = vrot.slane %v764_v51, %v4618_v57 }
 0x207   : > { %v4782_v53 = vrot.slane %v771_v52, %v4618_v57  ;;  %v821_v61 = vcombine.high %v813_v12, %v813_v12  ;;  %v4785_v36 = vrot.slane %v724_v13, %v4618_v57  ;;  %v4788_v3 = vrot.slane %v772_v14, %v4618_v57 }
 0x208   : > { %v4791_v49 = vrot.slane %v773_v17, %v4618_v57  ;;  %v822_v50 = vcombine.high %v820_v25, %v820_v25  ;;  %v4800_v4 = vrot.slane %v813_v12, %v4618_v57  ;;  %v4809_v9 = vrot.slane %v820_v25, %v4618_v57 }
 0x209   : > { %v4818_v13 = vrot.slane %v821_v61, %v4618_v57  ;;  %v868_v12 = vrot.slane %v4637_v6, %v4672_v21  ;;  %v4835_v61 = vrot.slane %v4660_v16, %v4672_v21  ;;  %v4841_v17 = vrot.slane %v508_v22, %v4672_v21 }
 0x20a   : > { %v4827_v51 = vrot.slane %v822_v50, %v4618_v57  ;;  %v4849_v50 = vrot.slane %v510_v32, %v4672_v21  ;;  %v4853_v52 = vrot.slane %v4657_v15, %v4672_v21  ;;  %v4857_v25 = vrot.slane %v4687_v30, %v4672_v21 }
 0x20b   : > { %v4865_v22 = vrot.slane %v509_v31, %v4672_v21  ;;  %v4871_v16 = vrot.slane %v511_v46, %v4672_v21  ;;  %v900_v32 = vrot.slane %v4640_v7, %v4672_v21  ;;  %v4879_v6 = vrot.slane %v4650_v11, %v4672_v21 }
 0x20c   : > { %v4885_v15 = vrot.slane %v557_v23, %v4672_v21  ;;  %v4891_v30 = vrot.slane %v559_v26, %v4672_v21  ;;  %v4895_v31 = vrot.slane %v4643_v8, %v4672_v21  ;;  %v4899_v46 = vrot.slane %v4669_v20, %v4672_v21 }
 0x20d   : > { %v4905_v7 = vrot.slane %v558_v24, %v4672_v21  ;;  %v4911_v11 = vrot.slane %v560_v35, %v4672_v21  ;;  %v932_v23 = vrot.slane %v4702_v39, %v4672_v21  ;;  %v964_v26 = vrot.slane %v4705_v40, %v4672_v21 }
 0x20e   : > { %vm1185_vm2 = vcmp.lt.f32.partialorder %v4620_v58, %v868_v12  ;;  %v4920_v57 = vrot.slane %v4713_v43, %v4672_v21  ;;  %v4926_v8 = vrot.slane %v606_v59, %v4672_v21  ;;  %v996_v20 = vrot.slane %v4756_v28, %v4672_v21 }
 0x20f   : > { %v1028_v24 = vrot.slane %v4770_v38, %v4672_v21  ;;  %v4936_v35 = vrot.slane %v608_v63, %v4672_v21  ;;  %v4940_v12 = vrot.slane %v4710_v42, %v4672_v21  ;;  %v1092_v39 = vrot.slane %v4800_v4, %v4672_v21 }
 0x210   : > { %vm1193_vm3 = vcmp.lt.f32.partialorder %v4615_v56, %v900_v32  ;;  %v4947_v59 = vrot.slane %v4733_v54, %v4672_v21  ;;  %v4953_v43 = vrot.slane %v607_v62, %v4672_v21  ;;  %v1060_v63 = vrot.slane %v4779_v45, %v4672_v21 }
 0x211   : > { %v9072_v14 = vmov 0.0   ;;  %v4962_v32 = vrot.slane %v609_v27, %v4672_v21  ;;  %v4966_v60 = vrot.slane %v4722_v48, %v4672_v21  ;;  %v9351_v42 = vcombine.high %v4705_v40, %v4705_v40 }
 0x212   : > { %v3955_v5 = vsel %vm1185_vm2, 1.0, %v9072_v14  ;;  %vm1209_vm4 = vcmp.lt.f32.partialorder %v4633_v1, %v964_v26  ;;  %vm1201_vm5 = vcmp.lt.f32.partialorder %v4631_v0, %v932_v23  ;;  %vm1217_vm6 = vcmp.lt.f32.partialorder %v4647_v10, %v996_v20 }
 0x213   : > { %9350 = vst [vmem:[#allocation16_spill] sm:$0xff] %v4966_v60  ;;  %v4972_v62 = vrot.slane %v9351_v42, %v4672_v21  ;;  %vm1225_vm7 = vcmp.lt.f32.partialorder %v4664_v18, %v1028_v24  ;;  %v3963_v54 = vsel %vm1193_vm3, 1.0, %v9072_v14  ;;  %v9352_v27 = vcombine.high %v4722_v48, %v4722_v48 }
 0x214   : > { %v4987_v40 = vrot.slane %v4719_v47, %v4672_v21  ;;  %vm1241_vm8 = vcmp.lt.f32.partialorder %v4693_v34, %v1092_v39  ;;  %v1585_v23 = vsel %vm9088_vm1, %v3955_v5, 0.0  ;;  %v4993_v26 = vrot.slane %v4744_v2, %v4672_v21 }
 0x215   : > { %v4983_v60 = vrot.slane %v9352_v27, %v4672_v21  ;;  %v9356_v20 = vcombine.high %v4719_v47, %v4719_v47  ;;  %vm1233_vm9 = vcmp.lt.f32.partialorder %v4666_v19, %v1060_v63  ;;  %v3979_v48 = vsel %vm1209_vm4, 1.0, %v9072_v14 }
 0x216   : > { %9354 = vst [vmem:[#allocation18_spill] sm:$0xff] %v4987_v40  ;;  %9355 = vst [vmem:[#allocation19_spill] sm:$0xff] %v4993_v26  ;;  %v3971_v42 = vsel %vm1201_vm5, 1.0, %v9072_v14  ;;  %v3987_v39 = vsel %vm1217_vm6, 1.0, %v9072_v14  ;;  %v3995_v5 = vsel %vm1225_vm7, 1.0, %v9072_v14  ;;  %v1641_v27 = vsel %vm9088_vm1, %v3963_v54, 0.0 }
 0x217   : > { %9353 = vst [vmem:[#allocation17_spill] sm:$0xff] %v4983_v60  ;;  %v4999_v24 = vrot.slane %v9356_v20, %v4672_v21  ;;  %v9358_v34 = vcombine.high %v4744_v2, %v4744_v2  ;;  %v5015_v47 = vrot.slane %v4762_v33, %v4672_v21  ;;  %v4011_v63 = vsel %vm1241_vm8, 1.0, %v9072_v14 }
 0x218   : > { %v1586_v20 = vrot.slane %v1585_v23, 4  ;;  %v9361_v19 = vcombine.high %v4756_v28, %v4756_v28  ;;  %v9362_v54 = vcombine.high %v4762_v33, %v4762_v33  ;;  %v1809_v26 = vsel %vm9088_vm1, %v3987_v39, 0.0 }
 0x219   : > { %9357 = vst [vmem:[#allocation20_spill] sm:$0xff] %v4999_v24  ;;  %v5011_v18 = vrot.slane %v9358_v34, %v4672_v21  ;;  %9360 = vst [vmem:[#allocation22_spill] sm:$0xff] %v5015_v47  ;;  %v4003_v34 = vsel %vm1233_vm9, 1.0, %v9072_v14  ;;  %v1642_v47 = vrot.slane %v1641_v27, 4  ;;  %v1697_v24 = vsel %vm9088_vm1, %v3971_v42, 0.0 }
 0x21a   : > { %v5022_v10 = vrot.slane %v9361_v19, %v4672_v21  ;;  %v5028_v2 = vrot.slane %v9362_v54, %v4672_v21  ;;  %v1865_v40 = vsel %vm9088_vm1, %v3995_v5, 0.0  ;;  %v5037_v19 = vrot.slane %v4759_v29, %v4672_v21 }
 0x21b   : > { %9359 = vst [vmem:[#allocation21_spill] sm:$0xff] %v5011_v18  ;;  %v1753_v18 = vsel %vm9088_vm1, %v3979_v48, 0.0  ;;  %v5041_v28 = vrot.slane %v4767_v37, %v4672_v21  ;;  %v9366_v33 = vcombine.high %v4759_v29, %v4759_v29  ;;  %v1977_v42 = vsel %vm9088_vm1, %v4011_v63, 0.0 }
 0x21c   : > { %9363 = vst [vmem:[#allocation23_spill] sm:$0xff] %v5028_v2  ;;  %9364 = vst [vmem:[#allocation24_spill] sm:$0xff] %v5037_v19  ;;  %v9367_v39 = vcombine.high %v4767_v37, %v4767_v37  ;;  %v1587_v54 = vadd.f32 %v1586_v20, %v1585_v23  ;;  %v1754_v14 = vrot.slane %v1753_v18, 4  ;;  %v1921_v19 = vsel %vm9088_vm1, %v4003_v34, 0.0 }
 0x21d   : > { %9365 = vst [vmem:[#allocation25_spill] sm:$0xff] %v5041_v28  ;;  %v5047_v48 = vrot.slane %v9366_v33, %v4672_v21  ;;  %v5059_v28 = vrot.slane %v4776_v41, %v4672_v21  ;;  %v1698_v2 = vrot.slane %v1697_v24, 4  ;;  %v1810_v29 = vrot.slane %v1809_v26, 4 }
 0x21e   : > { %v5054_v5 = vrot.slane %v9367_v39, %v4672_v21  ;;  %v1866_v33 = vrot.slane %v1865_v40, 4  ;;  %v9370_v63 = vcombine.high %v4770_v38, %v4770_v38  ;;  %v9372_v23 = vcombine.high %v4776_v41, %v4776_v41 }
 0x21f   : > { %9369 = vst [vmem:[#allocation27_spill] sm:$0xff] %v5059_v28  ;;  %v1643_v34 = vadd.f32 %v1642_v47, %v1641_v27  ;;  %v1978_v39 = vrot.slane %v1977_v42, 4  ;;  %v5077_v28 = vrot.slane %v4773_v44, %v4672_v21  ;;  %v9376_v38 = vcombine.high %v4773_v44, %v4773_v44 }
 0x220   : > { %9368 = vst [vmem:[#allocation26_spill] sm:$0xff] %v5054_v5  ;;  %v5066_v37 = vrot.slane %v9370_v63, %v4672_v21  ;;  %v5072_v20 = vrot.slane %v9372_v23, %v4672_v21  ;;  %v5081_v5 = vrot.slane %v4785_v36, %v4672_v21  ;;  %v1922_v41 = vrot.slane %v1921_v19, 4 }
 0x221   : > { %9374 = vst [vmem:[#allocation30_spill] sm:$0xff] %v5077_v28  ;;  %v5087_v63 = vrot.slane %v9376_v38, %v4672_v21  ;;  %v9378_v27 = vcombine.high %v4785_v36, %v4785_v36  ;;  %v5098_v23 = vrot.slane %v4788_v3, %v4672_v21  ;;  %v1755_v28 = vadd.f32 %v1754_v14, %v1753_v18 }
 0x222   : > { %9371 = vst [vmem:[#allocation28_spill] sm:$0xff] %v5066_v37  ;;  %9373 = vst [vmem:[#allocation29_spill] sm:$0xff] %v5072_v20  ;;  %v9380_v44 = vcombine.high %v4779_v45, %v4779_v45  ;;  %v1811_v20 = vadd.f32 %v1810_v29, %v1809_v26  ;;  %v1867_v37 = vadd.f32 %v1866_v33, %v1865_v40  ;;  %v1644_v14 = vrot.slane %v1643_v34, 2 }
 0x223   : > { %9375 = vst [vmem:[#allocation31_spill] sm:$0xff] %v5081_v5  ;;  %9377 = vst [vmem:[#allocation32_spill] sm:$0xff] %v5087_v63  ;;  %v5094_v47 = vrot.slane %v9378_v27, %v4672_v21  ;;  %v1588_v5 = vrot.slane %v1587_v54, 2  ;;  %v1699_v63 = vadd.f32 %v1698_v2, %v1697_v24  ;;  %v9381_v36 = vcombine.high %v4788_v3, %v4788_v3 }
 0x224   : > { %9379 = vst [vmem:[#allocation33_spill] sm:$0xff] %v5098_v23  ;;  %v5105_v38 = vrot.slane %v9380_v44, %v4672_v21  ;;  %v5116_v18 = vrot.slane %v4782_v53, %v4672_v21  ;;  %v1979_v23 = vadd.f32 %v1978_v39, %v1977_v42  ;;  %v5121_v45 = vrot.slane %v4791_v49, %v4672_v21 }
 0x225   : > { %v5112_v27 = vrot.slane %v9381_v36, %v4672_v21  ;;  %v9384_v40 = vcombine.high %v4782_v53, %v4782_v53  ;;  %v9386_v3 = vcombine.high %v4791_v49, %v4791_v49  ;;  %v1923_v2 = vadd.f32 %v1922_v41, %v1921_v19 }
 0x226   : > { %9382 = vst [vmem:[#allocation34_spill] sm:$0xff] %v5116_v18  ;;  %9383 = vst [vmem:[#allocation35_spill] sm:$0xff] %v5121_v45  ;;  %v5138_v42 = vrot.slane %v4818_v13, %v4672_v21  ;;  %v9389_v29 = vcombine.high %v4800_v4, %v4800_v4  ;;  %v1589_v33 = vadd.f32 %v1588_v5, %v1587_v54  ;;  %v1756_v39 = vrot.slane %v1755_v28, 2  ;;  %v9529_v18 = vld [vmem:[#allocation13_spill] sm:$0xff] }
 0x227   : > { %v5127_v26 = vrot.slane %v9384_v40, %v4672_v21  ;;  %v5133_v24 = vrot.slane %v9386_v3, %v4672_v21  ;;  %v9391_v49 = vcombine.high %v4818_v13, %v4818_v13  ;;  %v1700_v19 = vrot.slane %v1699_v63, 2 }
 0x228   : > { %9388 = vst [vmem:[#allocation38_spill] sm:$0xff] %v5138_v42  ;;  %v5144_v53 = vrot.slane %v9389_v29, %v4672_v21  ;;  %v1812_v41 = vrot.slane %v1811_v20, 2  ;;  %v1868_v36 = vrot.slane %v1867_v37, 2  ;;  %v5154_v40 = vrot.slane %v4809_v9, %v4672_v21  ;;  %v9503_v42 = vld [vmem:[#allocation24_spill] sm:$0xff] }
 0x229   : > { %9385 = vst [vmem:[#allocation36_spill] sm:$0xff] %v5127_v26  ;;  %9387 = vst [vmem:[#allocation37_spill] sm:$0xff] %v5133_v24  ;;  %v5150_v44 = vrot.slane %v9391_v49, %v4672_v21  ;;  %vm1250_vm2 = vcmp.eq.f32.partialorder %v4620_v58, %v4835_v61  ;;  %v1645_v4 = vadd.f32 %v1644_v14, %v1643_v34  ;;  %v1980_v3 = vrot.slane %v1979_v23, 2  ;;  %v9510_v24 = vld [vmem:[#allocation25_spill] sm:$0xff]  ;;  %v9522_v26 = vld [vmem:[#allocation26_spill] sm:$0xff] }
 0x22a   : > { %9390 = vst [vmem:[#allocation39_spill] sm:$0xff] %v5144_v53  ;;  %9393 = vst [vmem:[#allocation41_spill] sm:$0xff] %v5154_v40  ;;  %v5160_v5 = vrot.slane %v4827_v51, %v4672_v21  ;;  %v9395_v13 = vcombine.high %v4809_v9, %v4809_v9  ;;  %vm1251_vm3 = vcmp.eq.f32.partialorder %v4620_v58, %v4841_v17  ;;  %v1924_v29 = vrot.slane %v1923_v2, 2 }
 0x22b   : > { %9392 = vst [vmem:[#allocation40_spill] sm:$0xff] %v5150_v44  ;;  %v9397_v49 = vcombine.high %v4827_v51, %v4827_v51  ;;  %vm1252_vm4 = vcmp.eq.f32.partialorder %v4620_v58, %v4849_v50  ;;  %v1590_v14 = vrot.slane %v1589_v33, 1  ;;  %vm1253_vm5 = vcmp.eq.f32.partialorder %v4620_v58, %v4853_v52  ;;  %vm5182_vm6 = vmand %vm1250_vm2, %vm9098_vm10 }
 0x22c   : > { %9394 = vst [vmem:[#allocation42_spill] sm:$0xff] %v5160_v5  ;;  %v5166_v54 = vrot.slane %v9395_v13, %v4672_v21  ;;  %v1757_v5 = vadd.f32 %v1756_v39, %v1755_v28  ;;  %v1701_v13 = vadd.f32 %v1700_v19, %v1699_v63  ;;  %v1869_v40 = vadd.f32 %v1868_v36, %v1867_v37  ;;  %vm5192_vm9 = vmand %vm1251_vm3, %vm9089_vm11 }
 0x22d   : > { %v5174_v34 = vrot.slane %v9397_v49, %v4672_v21  ;;  %vm1254_vm8 = vcmp.eq.f32.partialorder %v4620_v58, %v4857_v25  ;;  %v1646_v51 = vrot.slane %v1645_v4, 1  ;;  %v1981_v28 = vadd.f32 %v1980_v3, %v1979_v23  ;;  %vm5207_vm3 = vmand %vm1252_vm4, %vm9090_vm12 }
 0x22e   : > { %9396 = vst [vmem:[#allocation43_spill] sm:$0xff] %v5166_v54  ;;  %v1813_v54 = vadd.f32 %v1812_v41, %v1811_v20  ;;  %vm1255_vm7 = vcmp.eq.f32.partialorder %v4620_v58, %v4865_v22  ;;  %v1925_v20 = vadd.f32 %v1924_v29, %v1923_v2  ;;  %vm1256_vm2 = vcmp.eq.f32.partialorder %v4620_v58, %v4871_v16  ;;  %vm5220_vm1 = vmand %vm1253_vm5, %vm9091_vm13 }
 0x22f   : > { %9398 = vst [vmem:[#allocation44_spill] sm:$0xff] %v5174_v34  ;;  %v5224_v23 = vadd.f32 %v1590_v14, %v1589_v33  ;;  %v1758_v39 = vrot.slane %v1757_v5, 1  ;;  %vm1258_vm11 = vcmp.eq.f32.partialorder %v4615_v56, %v4879_v6  ;;  %vm5235_vm12 = vmand %vm1254_vm8, %vm9092_vm14  ;;  %v1702_v19 = vrot.slane %v1701_v13, 1 }
 0x230   : > { %v1814_v41 = vrot.slane %v1813_v54, 1  ;;  %v1870_v33 = vrot.slane %v1869_v40, 1  ;;  %vm5250_vm8 = vmand %vm1255_vm7, %vm9093_vm15  ;;  %v5254_v3 = vadd.f32 %v1646_v51, %v1645_v4  ;;  %v1982_v29 = vrot.slane %v1981_v28, 1 }
 0x231   : > { %9407 = vst [vmem:[#allocation45_spill] sm:$0xff] %v5224_v23  ;;  %vm1261_vm14 = vcmp.eq.f32.partialorder %v4615_v56, %v4895_v31  ;;  %vm5269_vm7 = vmand %vm1256_vm2, %vm9099_vm0  ;;  %v1926_v49 = vrot.slane %v1925_v20, 1  ;;  %v5288_v51 = vadd.f32 %v1758_v39, %v1757_v5  ;;  %v5291_v34 = vadd.f32 -7.0, %v5224_v23 }
 0x232   : > { %9412 = vst [vmem:[#allocation46_spill] sm:$0xff] %v5254_v3  ;;  %vm5284_vm4 = vmand %vm1258_vm11, %vm9098_vm10  ;;  %vm9419_vm13 = vcmp.lt.s32.totalorder %v4613_v55, 2  ;;  %vm9420_vm15 = vcmp.eq.f32.partialorder %v4615_v56, %v4885_v15  ;;  %v9421_v44 = vmov 0  ;;  %v5306_v5 = vadd.f32 %v1702_v19, %v1701_v13 }
 0x233   : > { %9417 = vst [vmem:[#allocation47_spill] sm:$0xff] %v5288_v51  ;;  %9418 = vst [vmem:[#allocation48_spill] sm:$0xff] %v5291_v34  ;;  %v5308_v39 = vadd.f32 %v1814_v41, %v1813_v54  ;;  %v5310_v23 = vadd.f32 %v1870_v33, %v1869_v40  ;;  %v9428_v13 = vmov 0  ;;  %v5327_v40 = vadd.f32 %v1982_v29, %v1981_v28  ;;  %v9436_v41 = vld [vmem:[#allocation16_spill] sm:$0xff]  ;;  %v9452_v34 = vld [vmem:[#allocation18_spill] sm:$0xff] }
 0x234   : > { %vm5302_vm11 = vmand %vm9420_vm15, %vm9419_vm13  ;;  %9423 = vst [vmem:[#allocation49_spill] sm:$0xff] %v5306_v5  ;;  %vm9426_vm13 = vcmp.lt.s32.totalorder %v4613_v55, 3  ;;  %vm9427_vm15 = vcmp.eq.f32.partialorder %v4615_v56, %v4891_v30  ;;  %v5330_v54 = vadd.f32 -7.0, %v5254_v3  ;;  %v5349_v19 = vadd.f32 %v1926_v49, %v1925_v20 }
 0x235   : > { %v9422_v44 = vsel %vm5302_vm11, 4294967295, %v9421_v44  ;;  %9424 = vst [vmem:[#allocation50_spill] sm:$0xff] %v5308_v39  ;;  %9425 = vst [vmem:[#allocation51_spill] sm:$0xff] %v5310_v23  ;;  %vm9437_vm10 = vcmp.lt.s32.totalorder %v4613_v55, 5  ;;  %vm9438_vm11 = vcmp.eq.f32.partialorder %v4615_v56, %v4899_v46  ;;  %v9439_v33 = vmov 0 }
 0x236   : > { %vm5323_vm0 = vmand %vm9427_vm15, %vm9426_vm13  ;;  %9430 = vst [vmem:[#allocation52_spill] sm:$0xff] %v5327_v40  ;;  %vm9432_vm15 = vcmp.lt.s32.totalorder %v4613_v55, 4  ;;  %v5372_v20 = vadd.f32 -7.0, %v5288_v51  ;;  %vm9444_vm5 = vcmp.eq.f32.partialorder %v4615_v56, %v4905_v7  ;;  %v5395_v29 = vadd.f32 -7.0, %v5306_v5 }
 0x237   : > { %v9429_v13 = vsel %vm5323_vm0, 4294967295, %v9428_v13  ;;  %9431 = vst [vmem:[#allocation53_spill] sm:$0xff] %v5330_v54  ;;  %vm5345_vm0 = vmand %vm1261_vm14, %vm9432_vm15  ;;  %vm9441_vm15 = vcmp.lt.f32.partialorder %v4620_v58, %v4835_v61  ;;  %v9448_v61 = vmov 0.0   ;;  %v5398_v51 = vadd.f32 -7.0, %v5308_v39  ;;  %v9468_v54 = vld [vmem:[#allocation20_spill] sm:$0xff] }
 0x238   : > { %9435 = vst [vmem:[#allocation54_spill] sm:$0xff] %v5349_v19  ;;  %vm5362_vm14 = vmand %vm9438_vm11, %vm9437_vm10  ;;  %vm9443_vm11 = vcmp.lt.s32.totalorder %v4613_v55, 6  ;;  %v5401_v3 = vadd.f32 -7.0, %v5310_v23  ;;  %vm9453_vm13 = vcmp.lt.s32.totalorder %v4613_v55, 7  ;;  %v5424_v39 = vadd.f32 -7.0, %v5327_v40 }
 0x239   : > { %v9440_v33 = vsel %vm5362_vm14, 4294967295, %v9439_v33  ;;  %vm1394_vm2 = vmor %vm9441_vm15, %vm5182_vm6  ;;  %9442 = vst [vmem:[#allocation16_spill] sm:$0xff] %v5372_v20  ;;  %vm9447_vm6 = vcmp.lt.f32.partialorder %v4620_v58, %v4841_v17  ;;  %v5448_v40 = vadd.f32 -7.0, %v5349_v19 }
 0x23a   : > { %vm5384_vm14 = vmand %vm9444_vm5, %vm9443_vm11  ;;  %v3956_v49 = vsel %vm1394_vm2, 1.0, %v9448_v61  ;;  %9449 = vst [vmem:[#allocation55_spill] sm:$0xff] %v5395_v29  ;;  %vm9458_vm5 = vcmask 261120   ;;  %vm9461_vm11 = vcmp.lt.s32.totalorder %v4613_v55, 1  ;;  %v9483_v29 = vld [vmem:[#allocation12_spill] sm:$0xff] }
 0x23b   : > { %vm1395_vm15 = vmor %vm9447_vm6, %vm5192_vm9  ;;  %9450 = vst [vmem:[#allocation56_spill] sm:$0xff] %v5398_v51  ;;  %vm9454_vm9 = vcmp.eq.f32.partialorder %v4615_v56, %v4911_v11  ;;  %vm9457_vm6 = vcmp.lt.f32.partialorder %v4620_v58, %v4849_v50  ;;  %v1592_v23 = vsel %vm9458_vm5, %v3956_v49, 0.0  ;;  %v9463_v50 = vmov 0  ;;  %v9482_v51 = vld [vmem:[#allocation22_spill] sm:$0xff] }
 0x23c   : > { %9451 = vst [vmem:[#allocation57_spill] sm:$0xff] %v5401_v3  ;;  %vm5412_vm2 = vmand %vm9454_vm9, %vm9453_vm13  ;;  %v3957_v21 = vsel %vm1395_vm15, 1.0, %v9448_v61  ;;  %v9460_v3 = vld [vmem:[#allocation19_spill] sm:$0xff]  ;;  %vm9465_vm15 = vcmp.lt.f32.partialorder %v4620_v58, %v4853_v52  ;;  %v1593_v49 = vrot.slane %v1592_v23, 4  ;;  %vm9466_vm13 = vcmask 261120  }
 0x23d   : > { %vm1396_vm10 = vmor %vm9457_vm6, %vm5207_vm3  ;;  %9459 = vst [vmem:[#allocation18_spill] sm:$0xff] %v5424_v39  ;;  %vm9462_vm3 = vcmp.eq.f32.partialorder %v4631_v0, %v4920_v57  ;;  %v1599_v5 = vsel %vm9466_vm13, %v3957_v21, 0.0  ;;  %vm9469_vm9 = vcmp.lt.s32.totalorder %v4613_v55, 2  ;;  %v9471_v52 = vmov 0 }
 0x23e   : > { %vm5436_vm6 = vmand %vm9462_vm3, %vm9461_vm11  ;;  %v3958_v37 = vsel %vm1396_vm10, 1.0, %v9448_v61  ;;  %9467 = vst [vmem:[#allocation19_spill] sm:$0xff] %v5448_v40  ;;  %vm9473_vm10 = vcmp.lt.f32.partialorder %v4620_v58, %v4857_v25  ;;  %v1600_v21 = vrot.slane %v1599_v5, 4  ;;  %v9475_v40 = vld [vmem:[#allocation21_spill] sm:$0xff]  ;;  %vm9477_vm3 = vcmp.eq.f32.partialorder %v4631_v0, %v4936_v35 }
 0x23f   : > { %v9464_v50 = vsel %vm5436_vm6, 4294967295, %v9463_v50  ;;  %vm1397_vm5 = vmor %vm9465_vm15, %vm5220_vm1  ;;  %vm9470_vm6 = vcmp.eq.f32.partialorder %v4631_v0, %v4926_v8  ;;  %vm9474_vm15 = vcmask 261120   ;;  %vm9485_vm11 = vcmp.eq.f32.partialorder %v4631_v0, %v4940_v12 }
 0x240   : > { %vm5459_vm1 = vmand %vm9470_vm6, %vm9469_vm9  ;;  %v3959_v63 = vsel %vm1397_vm5, 1.0, %v9448_v61  ;;  %v1606_v19 = vsel %vm9474_vm15, %v3958_v37, 0.0  ;;  %vm9476_vm6 = vcmp.lt.s32.totalorder %v4613_v55, 3  ;;  %v1594_v37 = vadd.f32 %v1593_v49, %v1592_v23 }
 0x241   : > { %v9472_v52 = vsel %vm5459_vm1, 4294967295, %v9471_v52  ;;  %vm1398_vm13 = vmor %vm9473_vm10, %vm5235_vm12  ;;  %vm9480_vm12 = vcmp.lt.f32.partialorder %v4620_v58, %v4865_v22  ;;  %v1607_v39 = vrot.slane %v1606_v19, 4  ;;  %v1601_v36 = vadd.f32 %v1600_v21, %v1599_v5 }
 0x242   : > { %vm5480_vm1 = vmand %vm9477_vm3, %vm9476_vm6  ;;  %v3960_v2 = vsel %vm1398_vm13, 1.0, %v9448_v61  ;;  %vm9484_vm6 = vcmp.lt.s32.totalorder %v4613_v55, 4  ;;  %v1595_v5 = vrot.slane %v1594_v37, 2 }
 0x243   : > { %vm1399_vm5 = vmor %vm9480_vm12, %vm5250_vm8  ;;  %vm9488_vm8 = vcmp.lt.f32.partialorder %v4620_v58, %v4871_v16  ;;  %v1608_v21 = vadd.f32 %v1607_v39, %v1606_v19  ;;  %v9495_v58 = vld [vmem:[#allocation23_spill] sm:$0xff]  ;;  %v1602_v39 = vrot.slane %v1601_v36, 2 }
 0x244   : > { %vm9481_vm10 = vmmov %vm9474_vm15  ;;  %v3961_v23 = vsel %vm1399_vm5, 1.0, %v9448_v61  ;;  %vm9491_vm15 = vcmp.eq.f32.partialorder %v4631_v0, %v4947_v59 }
 0x245   : > { %v1613_v20 = vsel %vm9481_vm10, %v3959_v63, 0.0  ;;  %vm5500_vm9 = vmand %vm9485_vm11, %vm9484_vm6  ;;  %vm9490_vm6 = vcmp.lt.s32.totalorder %v4613_v55, 5  ;;  %vm9505_vm11 = vcmp.eq.f32.partialorder %v4631_v0, %v4962_v32 }
 0x246   : > { %vm1400_vm13 = vmor %vm9488_vm8, %vm5269_vm7  ;;  %v1614_v49 = vrot.slane %v1613_v20, 4  ;;  %vm9494_vm7 = vcmp.lt.f32.partialorder %v4615_v56, %v4879_v6  ;;  %v9498_v6 = vmov 0  ;;  %vm9502_vm8 = vcmask 261120  }
 0x247   : > { %vm9489_vm12 = vmmov %vm9481_vm10  ;;  %v5530_v4 = vsel %vm1400_vm13, 1.0, %v9448_v61  ;;  %vm9501_vm13 = vcmp.lt.f32.partialorder %v4615_v56, %v4885_v15  ;;  %v1627_v53 = vsel %vm9502_vm8, %v3961_v23, 0.0  ;;  %vm9509_vm8 = vcmp.lt.f32.partialorder %v4615_v56, %v4891_v30 }
 0x248   : > { %v1620_v63 = vsel %vm9489_vm12, %v3960_v2, 0.0  ;;  %vm5520_vm3 = vmand %vm9491_vm15, %vm9490_vm6  ;;  %vm9496_vm12 = vcmp.lt.s32.totalorder %v4613_v55, 6  ;;  %vm9497_vm6 = vcmp.eq.f32.partialorder %v4631_v0, %v4953_v43  ;;  %v1615_v19 = vadd.f32 %v1614_v49, %v1613_v20 }
 0x249   : > { %vm1402_vm5 = vmor %vm9494_vm7, %vm5284_vm4  ;;  %v1621_v2 = vrot.slane %v1620_v63, 4  ;;  %vm9500_vm4 = vnez %v9422_v44  ;;  %v1596_v20 = vadd.f32 %v1595_v5, %v1594_v37  ;;  %v1609_v23 = vrot.slane %v1608_v21, 2 }
 0x24a   : > { %vm5541_vm10 = vmand %vm9497_vm6, %vm9496_vm12  ;;  %v5551_v14 = vsel %vm1402_vm5, 1.0, %v9448_v61  ;;  %vm9504_vm6 = vcmp.lt.s32.totalorder %v4613_v55, 7  ;;  %vm9508_vm5 = vnez %v9429_v13  ;;  %vm9512_vm15 = vcmp.eq.f32.partialorder %v4633_v1, %v9436_v41 }
 0x24b   : > { %v9499_v6 = vsel %vm5541_vm10, 4294967295, %v9498_v6  ;;  %vm1403_vm7 = vmor %vm9501_vm13, %vm9500_vm4  ;;  %v1622_v49 = vadd.f32 %v1621_v2, %v1620_v63  ;;  %v1603_v37 = vadd.f32 %v1602_v39, %v1601_v36  ;;  %v1616_v63 = vrot.slane %v1615_v19, 2 }
 0x24c   : > { %vm5563_vm10 = vmand %vm9505_vm11, %vm9504_vm6  ;;  %v5573_v44 = vsel %vm1403_vm7, 1.0, %v9448_v61  ;;  %vm9511_vm6 = vcmp.lt.s32.totalorder %v4613_v55, 1  ;;  %vm9515_vm7 = vcmp.lt.f32.partialorder %v4615_v56, %v4895_v31  ;;  %v1628_v5 = vrot.slane %v1627_v53, 4 }
 0x24d   : > { %vm1404_vm4 = vmor %vm9509_vm8, %vm9508_vm5  ;;  %vm9517_vm13 = vcmp.eq.f32.partialorder %v4633_v1, %v4972_v62  ;;  %v9518_v31 = vmov 0  ;;  %v1597_v36 = vrot.slane %v1596_v20, 1  ;;  %v1610_v2 = vadd.f32 %v1609_v23, %v1608_v21 }
 0x24e   : > { %vm5584_vm12 = vmand %vm9512_vm15, %vm9511_vm6  ;;  %v5594_v13 = vsel %vm1404_vm4, 1.0, %v9448_v61  ;;  %vm9516_vm6 = vcmp.lt.s32.totalorder %v4613_v55, 2  ;;  %vm9521_vm4 = vcmp.lt.f32.partialorder %v4615_v56, %v4899_v46  ;;  %v1623_v39 = vrot.slane %v1622_v49, 2 }
 0x24f   : > { %vm1405_vm5 = vmor %vm9515_vm7, %vm5345_vm0  ;;  %vm9520_vm0 = vnez %v9440_v33  ;;  %vm9524_vm15 = vcmp.eq.f32.partialorder %v4633_v1, %v4983_v60  ;;  %v1604_v21 = vrot.slane %v1603_v37, 1  ;;  %v1617_v23 = vadd.f32 %v1616_v63, %v1615_v19  ;;  %v9528_v60 = vld [vmem:[#allocation27_spill] sm:$0xff] }
 0x250   : > { %vm5605_vm11 = vmand %vm9517_vm13, %vm9516_vm6  ;;  %v5615_v28 = vsel %vm1405_vm5, 1.0, %v9448_v61  ;;  %vm9523_vm6 = vcmp.lt.s32.totalorder %v4613_v55, 3  ;;  %vm9527_vm5 = vcmp.lt.f32.partialorder %v4615_v56, %v4905_v7  ;;  %v1629_v45 = vadd.f32 %v1628_v5, %v1627_v53  ;;  %v9536_v5 = vld [vmem:[#allocation28_spill] sm:$0xff] }
 0x251   : > { %v9519_v31 = vsel %vm5605_vm11, 4294967295, %v9518_v31  ;;  %vm1406_vm7 = vmor %vm9521_vm4, %vm9520_vm0  ;;  %vm9531_vm8 = vcmp.eq.f32.partialorder %v4633_v1, %v9452_v34  ;;  %v5659_v9 = vadd.f32 %v1597_v36, %v1596_v20  ;;  %v1611_v19 = vrot.slane %v1610_v2, 1 }
 0x252   : > { %vm5626_vm11 = vmand %vm9524_vm15, %vm9523_vm6  ;;  %v5636_v33 = vsel %vm1406_vm7, 1.0, %v9448_v61  ;;  %vm9530_vm6 = vcmp.lt.s32.totalorder %v4613_v55, 4  ;;  %v1624_v63 = vadd.f32 %v1623_v39, %v1622_v49  ;;  %vm9538_vm4 = vcmp.eq.f32.partialorder %v4633_v1, %v9460_v3  ;;  %v9544_v39 = vld [vmem:[#allocation29_spill] sm:$0xff] }
 0x253   : > { %vm1407_vm0 = vmor %vm9527_vm5, %vm5384_vm14  ;;  %vm9534_vm14 = vcmp.lt.f32.partialorder %v4615_v56, %v4911_v11  ;;  %9535 = vst [vmem:[#allocation20_spill] sm:$0xff] %v5659_v9  ;;  %v9539_v11 = vmov 0  ;;  %v5682_v20 = vadd.f32 %v1604_v21, %v1603_v37  ;;  %v1618_v49 = vrot.slane %v1617_v23, 1 }
 0x254   : > { %vm5647_vm13 = vmand %vm9531_vm8, %vm9530_vm6  ;;  %v5657_v53 = vsel %vm1407_vm0, 1.0, %v9448_v61  ;;  %vm9537_vm6 = vcmp.lt.s32.totalorder %v4613_v55, 5  ;;  %vm9542_vm0 = vcmp.lt.f32.partialorder %v4631_v0, %v4920_v57  ;;  %v1630_v36 = vrot.slane %v1629_v45, 2 }
 0x255   : > { %vm1408_vm7 = vmor %vm9534_vm14, %vm5412_vm2  ;;  %vm9541_vm2 = vnez %v9464_v50  ;;  %9543 = vst [vmem:[#allocation21_spill] sm:$0xff] %v5682_v20  ;;  %vm9546_vm8 = vcmp.eq.f32.partialorder %v4633_v1, %v9468_v54  ;;  %v5705_v37 = vadd.f32 %v1611_v19, %v1610_v2  ;;  %v1625_v21 = vrot.slane %v1624_v63, 1  ;;  %v9553_v20 = vld [vmem:[#allocation30_spill] sm:$0xff] }
 0x256   : > { %vm5670_vm15 = vmand %vm9538_vm4, %vm9537_vm6  ;;  %v5680_v17 = vsel %vm1408_vm7, 1.0, %v9448_v61  ;;  %vm9545_vm6 = vcmp.lt.s32.totalorder %v4613_v55, 6  ;;  %vm9549_vm7 = vnez %v9472_v52  ;;  %vm9552_vm5 = vcmask 261120  }
 0x257   : > { %v9540_v11 = vsel %vm5670_vm15, 4294967295, %v9539_v11  ;;  %vm1410_vm14 = vmor %vm9542_vm0, %vm9541_vm2  ;;  %vm9550_vm2 = vcmp.lt.f32.partialorder %v4631_v0, %v4926_v8  ;;  %9551 = vst [vmem:[#allocation22_spill] sm:$0xff] %v5705_v37  ;;  %v1634_v56 = vsel %vm9552_vm5, %v5530_v4, 0.0  ;;  %vm9554_vm4 = vcmp.lt.s32.totalorder %v4613_v55, 7  ;;  %v9560_v37 = vld [vmem:[#allocation31_spill] sm:$0xff] }
 0x258   : > { %vm5693_vm15 = vmand %vm9546_vm8, %vm9545_vm6  ;;  %v5703_v50 = vsel %vm1410_vm14, 1.0, %v9448_v61  ;;  %v9556_v8 = vmov 0  ;;  %vm9558_vm5 = vcmp.lt.f32.partialorder %v4631_v0, %v4936_v35  ;;  %v5730_v4 = vadd.f32 %v1618_v49, %v1617_v23 }
 0x259   : > { %vm1411_vm0 = vmor %vm9550_vm2, %vm9549_vm7  ;;  %vm9555_vm7 = vcmp.eq.f32.partialorder %v4633_v1, %v9475_v40  ;;  %v1631_v2 = vadd.f32 %v1630_v36, %v1629_v45  ;;  %v1635_v19 = vrot.slane %v1634_v56, 4  ;;  %vm9562_vm6 = vcmp.eq.f32.partialorder %v9483_v29, %v9482_v51  ;;  %v9569_v36 = vld [vmem:[#allocation32_spill] sm:$0xff] }
 0x25a   : > { %vm5718_vm2 = vmand %vm9555_vm7, %vm9554_vm4  ;;  %v5728_v52 = vsel %vm1411_vm0, 1.0, %v9448_v61  ;;  %9559 = vst [vmem:[#allocation23_spill] sm:$0xff] %v5730_v4  ;;  %vm9561_vm7 = vcmp.lt.s32.totalorder %v4613_v55, 1  ;;  %v5753_v25 = vadd.f32 %v1625_v21, %v1624_v63  ;;  %vm9570_vm4 = vcmp.lt.s32.totalorder %v4613_v55, 2  ;;  %v9583_v4 = vld [vmem:[#allocation14_spill] sm:$0xff] }
 0x25b   : > { %v9557_v8 = vsel %vm5718_vm2, 4294967295, %v9556_v8  ;;  %vm1412_vm14 = vmor %vm9558_vm5, %vm5480_vm1  ;;  %vm9565_vm1 = vcmp.lt.f32.partialorder %v4631_v0, %v4940_v12  ;;  %vm9567_vm5 = vcmask 261120  }
 0x25c   : > { %vm5741_vm2 = vmand %vm9562_vm6, %vm9561_vm7  ;;  %v5751_v45 = vsel %vm1412_vm14, 1.0, %v9448_v61  ;;  %9566 = vst [vmem:[#allocation24_spill] sm:$0xff] %v5753_v25  ;;  %v1648_v23 = vsel %vm9567_vm5, %v5551_v14, 0.0  ;;  %v1632_v14 = vrot.slane %v1631_v2, 1  ;;  %vm9576_vm6 = vcmp.eq.f32.partialorder %v9483_v29, %v9495_v58  ;;  %v9582_v25 = vld [vmem:[#allocation33_spill] sm:$0xff] }
 0x25d   : > { %vm1413_vm0 = vmor %vm9565_vm1, %vm5500_vm9  ;;  %vm9571_vm9 = vcmp.eq.f32.partialorder %v9483_v29, %v5022_v10  ;;  %v1649_v63 = vrot.slane %v1648_v23, 4  ;;  %v1662_v21 = vsel %vm9567_vm5, %v5594_v13, 0.0 }
 0x25e   : > { %vm9568_vm8 = vmmov %vm9567_vm5  ;;  %v5778_v22 = vsel %vm1413_vm0, 1.0, %v9448_v61  ;;  %vm9580_vm0 = vcmp.lt.f32.partialorder %v4631_v0, %v4953_v43  ;;  %v5826_v13 = vadd.f32 %v1632_v14, %v1631_v2 }
 0x25f   : > { %v1655_v49 = vsel %vm9568_vm8, %v5573_v44, 0.0  ;;  %vm5768_vm14 = vmand %vm9571_vm9, %vm9570_vm4  ;;  %vm9574_vm8 = vcmp.lt.f32.partialorder %v4631_v0, %v4947_v59  ;;  %v1636_v44 = vadd.f32 %v1635_v19, %v1634_v56  ;;  %vm9575_vm9 = vcmp.lt.s32.totalorder %v4613_v55, 3 }
 0x260   : > { %vm1414_vm1 = vmor %vm9574_vm8, %vm5520_vm3  ;;  %v9577_v59 = vmov 0  ;;  %vm9579_vm3 = vnez %v9499_v6  ;;  %v1656_v16 = vrot.slane %v1655_v49, 4  ;;  %9590 = vst [vmem:[#allocation26_spill] sm:$0xff] %v5826_v13  ;;  %v1650_v9 = vadd.f32 %v1649_v63, %v1648_v23 }
 0x261   : > { %vm5789_vm7 = vmand %vm9576_vm6, %vm9575_vm9  ;;  %v5799_v56 = vsel %vm1414_vm1, 1.0, %v9448_v61  ;;  %vm9592_vm6 = vcmp.eq.f32.partialorder %v9483_v29, %v9510_v24  ;;  %v1663_v23 = vrot.slane %v1662_v21, 4 }
 0x262   : > { %v9578_v59 = vsel %vm5789_vm7, 4294967295, %v9577_v59  ;;  %vm1415_vm8 = vmor %vm9580_vm0, %vm9579_vm3  ;;  %vm9584_vm7 = vcmp.lt.s32.totalorder %v4613_v55, 4  ;;  %vm9585_vm3 = vcmp.eq.f32.partialorder %v9483_v29, %v9503_v42  ;;  %v1657_v2 = vadd.f32 %v1656_v16, %v1655_v49 }
 0x263   : > { %vm9581_vm4 = vmmov %vm9567_vm5  ;;  %vm9588_vm5 = vcmp.lt.f32.partialorder %v4631_v0, %v4962_v32  ;;  %v5824_v6 = vsel %vm1415_vm8, 1.0, %v9448_v61  ;;  %vm9598_vm0 = vcmp.eq.f32.partialorder %v9483_v29, %v5047_v48  ;;  %v1651_v63 = vrot.slane %v1650_v9, 2  ;;  %v9605_v0 = vld [vmem:[#allocation34_spill] sm:$0xff] }
 0x264   : > { %v1669_v19 = vsel %vm9581_vm4, %v5615_v28, 0.0  ;;  %vm5814_vm1 = vmand %vm9585_vm3, %vm9584_vm7  ;;  %9589 = vst [vmem:[#allocation25_spill] sm:$0xff] %v5824_v6  ;;  %v1637_v28 = vrot.slane %v1636_v44, 2  ;;  %vm9591_vm3 = vcmp.lt.s32.totalorder %v4613_v55, 5  ;;  %v9636_v6 = vld [vmem:[#allocation15_spill] sm:$0xff] }
 0x265   : > { %vm1416_vm4 = vmor %vm9588_vm5, %vm5563_vm10  ;;  %vm9595_vm10 = vcmp.lt.f32.partialorder %v4633_v1, %v9436_v41  ;;  %v1670_v14 = vrot.slane %v1669_v19, 4  ;;  %v9599_v41 = vmov 0  ;;  %vm9604_vm5 = vcmask 261120  }
 0x266   : > { %vm5837_vm9 = vmand %vm9592_vm6, %vm9591_vm3  ;;  %v5847_v15 = vsel %vm1416_vm4, 1.0, %v9448_v61  ;;  %vm9597_vm3 = vcmp.lt.s32.totalorder %v4613_v55, 6  ;;  %vm9602_vm4 = vcmp.lt.f32.partialorder %v4633_v1, %v4972_v62  ;;  %v1638_v49 = vadd.f32 %v1637_v28, %v1636_v44 }
 0x267   : > { %vm1418_vm8 = vmor %vm9595_vm10, %vm5584_vm12  ;;  %9596 = vst [vmem:[#allocation27_spill] sm:$0xff] %v5847_v15  ;;  %vm9601_vm12 = vnez %v9519_v31  ;;  %v1676_v16 = vsel %vm9604_vm5, %v5636_v33, 0.0  ;;  %vm9606_vm6 = vcmp.lt.s32.totalorder %v4613_v55, 7  ;;  %v9610_v31 = vld [vmem:[#allocation17_spill] sm:$0xff]  ;;  %v1658_v44 = vrot.slane %v1657_v2, 2  ;;  %v9635_v15 = vld [vmem:[#allocation38_spill] sm:$0xff] }
 0x268   : > { %vm5858_vm7 = vmand %vm9598_vm0, %vm9597_vm3  ;;  %v5868_v30 = vsel %vm1418_vm8, 1.0, %v9448_v61  ;;  %vm9611_vm8 = vcmp.lt.f32.partialorder %v4633_v1, %v9610_v31  ;;  %v1664_v28 = vadd.f32 %v1663_v23, %v1662_v21  ;;  %v1671_v13 = vadd.f32 %v1670_v14, %v1669_v19  ;;  %v9620_v31 = vld [vmem:[#allocation36_spill] sm:$0xff] }
 0x269   : > { %v9600_v41 = vsel %vm5858_vm7, 4294967295, %v9599_v41  ;;  %vm1419_vm10 = vmor %vm9602_vm4, %vm9601_vm12  ;;  %9603 = vst [vmem:[#allocation28_spill] sm:$0xff] %v5868_v30  ;;  %vm9607_vm7 = vcmp.eq.f32.partialorder %v9483_v29, %v9522_v26  ;;  %v9613_v30 = vld [vmem:[#allocation35_spill] sm:$0xff]  ;;  %vm9615_vm0 = vcmp.eq.f32.partialorder %v9529_v18, %v9528_v60  ;;  %v1639_v19 = vrot.slane %v1638_v49, 1 }
 0x26a   : > { %vm5881_vm12 = vmand %vm9607_vm7, %vm9606_vm6  ;;  %v5891_v33 = vsel %vm1419_vm10, 1.0, %v9448_v61  ;;  %vm9614_vm6 = vcmp.lt.s32.totalorder %v4613_v55, 1  ;;  %v1652_v23 = vadd.f32 %v1651_v63, %v1650_v9  ;;  %v1677_v14 = vrot.slane %v1676_v16, 4 }
 0x26b   : > { %vm1420_vm5 = vmor %vm9611_vm8, %vm5626_vm11  ;;  %9612 = vst [vmem:[#allocation29_spill] sm:$0xff] %v5891_v33  ;;  %vm9618_vm11 = vcmp.lt.f32.partialorder %v4633_v1, %v9452_v34  ;;  %vm9622_vm4 = vcmp.eq.f32.partialorder %v9529_v18, %v9536_v5  ;;  %v9623_v34 = vmov 0  ;;  %v1659_v9 = vadd.f32 %v1658_v44, %v1657_v2  ;;  %v9628_v33 = vld [vmem:[#allocation37_spill] sm:$0xff] }
 0x26c   : > { %vm5902_vm3 = vmand %vm9615_vm0, %vm9614_vm6  ;;  %v5912_v21 = vsel %vm1420_vm5, 1.0, %v9448_v61  ;;  %vm9621_vm6 = vcmp.lt.s32.totalorder %v4613_v55, 2  ;;  %vm9626_vm5 = vcmp.lt.f32.partialorder %v4633_v1, %v9460_v3  ;;  %v1665_v63 = vrot.slane %v1664_v28, 2 }
 0x26d   : > { %vm1421_vm10 = vmor %vm9618_vm11, %vm5647_vm13  ;;  %9619 = vst [vmem:[#allocation30_spill] sm:$0xff] %v5912_v21  ;;  %vm9625_vm13 = vnez %v9540_v11  ;;  %v1672_v21 = vrot.slane %v1671_v13, 2  ;;  %vm9630_vm0 = vcmp.eq.f32.partialorder %v9529_v18, %v9544_v39  ;;  %v5956_v2 = vadd.f32 %v1639_v19, %v1638_v49 }
 0x26e   : > { %vm5923_vm7 = vmand %vm9622_vm4, %vm9621_vm6  ;;  %v5933_v7 = vsel %vm1421_vm10, 1.0, %v9448_v61  ;;  %vm9629_vm6 = vcmp.lt.s32.totalorder %v4613_v55, 3  ;;  %vm9633_vm10 = vcmp.lt.f32.partialorder %v4633_v1, %v9468_v54  ;;  %v1653_v44 = vrot.slane %v1652_v23, 1 }
 0x26f   : > { %v9624_v34 = vsel %vm5923_vm7, 4294967295, %v9623_v34  ;;  %vm1422_vm11 = vmor %vm9626_vm5, %vm9625_vm13  ;;  %9627 = vst [vmem:[#allocation31_spill] sm:$0xff] %v5933_v7  ;;  %v1678_v7 = vadd.f32 %v1677_v14, %v1676_v16  ;;  %vm9638_vm8 = vcmp.eq.f32.partialorder %v9529_v18, %v9553_v20  ;;  %v9639_v54 = vmov 0  ;;  %v9643_v14 = vld [vmem:[#allocation39_spill] sm:$0xff] }
 0x270   : > { %vm5944_vm7 = vmand %vm9630_vm0, %vm9629_vm6  ;;  %v5954_v11 = vsel %vm1422_vm11, 1.0, %v9448_v61  ;;  %9634 = vst [vmem:[#allocation32_spill] sm:$0xff] %v5956_v2  ;;  %vm9637_vm6 = vcmp.lt.s32.totalorder %v4613_v55, 4  ;;  %vm9642_vm11 = vcmp.lt.f32.partialorder %v4633_v1, %v9475_v40  ;;  %v1660_v49 = vrot.slane %v1659_v9, 1  ;;  %v9658_v1 = vld [vmem:[#allocation41_spill] sm:$0xff]  ;;  %v9674_v2 = vld [vmem:[#allocation43_spill] sm:$0xff] }
 0x271   : > { %vm1423_vm13 = vmor %vm9633_vm10, %vm5693_vm15  ;;  %vm9641_vm15 = vnez %v9557_v8  ;;  %v1666_v16 = vadd.f32 %v1665_v63, %v1664_v28  ;;  %v1673_v19 = vadd.f32 %v1672_v21, %v1671_v13  ;;  %vm9645_vm0 = vcmp.eq.f32.partialorder %v9529_v18, %v9560_v37  ;;  %v9651_v63 = vld [vmem:[#allocation40_spill] sm:$0xff] }
 0x272   : > { %vm5967_vm4 = vmand %vm9638_vm8, %vm9637_vm6  ;;  %v5977_v57 = vsel %vm1423_vm13, 1.0, %v9448_v61  ;;  %vm9644_vm6 = vcmp.lt.s32.totalorder %v4613_v55, 5  ;;  %vm9648_vm13 = vcmp.lt.f32.partialorder %v9483_v29, %v9482_v51  ;;  %v6000_v13 = vadd.f32 %v1653_v44, %v1652_v23 }
 0x273   : > { %v9640_v54 = vsel %vm5967_vm4, 4294967295, %v9639_v54  ;;  %vm1424_vm10 = vmor %vm9642_vm11, %vm9641_vm15  ;;  %v1679_v28 = vrot.slane %v1678_v7, 2  ;;  %vm9650_vm11 = vcmask 261120   ;;  %vm9652_vm5 = vcmp.lt.s32.totalorder %v4613_v55, 6 }
 0x274   : > { %vm5988_vm4 = vmand %vm9645_vm0, %vm9644_vm6  ;;  %v5998_v8 = vsel %vm1424_vm10, 1.0, %v9448_v61  ;;  %9649 = vst [vmem:[#allocation33_spill] sm:$0xff] %v6000_v13  ;;  %v1683_v21 = vsel %vm9650_vm11, %v5657_v53, 0.0  ;;  %vm9656_vm10 = vcmp.lt.f32.partialorder %v9483_v29, %v5022_v10  ;;  %v6025_v35 = vadd.f32 %v1660_v49, %v1659_v9  ;;  %v9666_v13 = vld [vmem:[#allocation42_spill] sm:$0xff] }
 0x275   : > { %vm1426_vm15 = vmor %vm9648_vm13, %vm5741_vm2  ;;  %vm9653_vm2 = vcmp.eq.f32.partialorder %v9529_v18, %v9569_v36  ;;  %v1667_v23 = vrot.slane %v1666_v16, 1  ;;  %v1674_v44 = vrot.slane %v1673_v19, 1  ;;  %vm9660_vm6 = vcmp.eq.f32.partialorder %v9529_v18, %v5094_v47 }
 0x276   : > { %vm6013_vm13 = vmand %vm9653_vm2, %vm9652_vm5  ;;  %v6023_v53 = vsel %vm1426_vm15, 1.0, %v9448_v61  ;;  %9657 = vst [vmem:[#allocation34_spill] sm:$0xff] %v6025_v35  ;;  %vm9659_vm2 = vcmp.lt.s32.totalorder %v4613_v55, 7  ;;  %v9661_v10 = vmov 0  ;;  %vm9664_vm15 = vcmp.lt.f32.partialorder %v9483_v29, %v9495_v58 }
 0x277   : > { %vm1427_vm11 = vmor %vm9656_vm10, %vm5768_vm14  ;;  %vm9663_vm14 = vnez %v9578_v59  ;;  %v1680_v9 = vadd.f32 %v1679_v28, %v1678_v7  ;;  %v1684_v49 = vrot.slane %v1683_v21, 4  ;;  %vm9665_vm0 = vcmask 261120  }
 0x278   : > { %vm6036_vm8 = vmand %vm9660_vm6, %vm9659_vm2  ;;  %v6046_v12 = vsel %vm1427_vm11, 1.0, %v9448_v61  ;;  %v1690_v35 = vsel %vm9665_vm0, %v5680_v17, 0.0  ;;  %vm9667_vm5 = vcmp.lt.s32.totalorder %v4613_v55, 1  ;;  %vm9671_vm0 = vcmp.lt.f32.partialorder %v9483_v29, %v9503_v42 }
 0x279   : > { %v9662_v10 = vsel %vm6036_vm8, 4294967295, %v9661_v10  ;;  %vm1428_vm10 = vmor %vm9664_vm15, %vm9663_vm14  ;;  %vm9668_vm8 = vcmp.eq.f32.partialorder %v9583_v4, %v9582_v25  ;;  %v6071_v59 = vadd.f32 %v1667_v23, %v1666_v16  ;;  %v6073_v7 = vadd.f32 %v1674_v44, %v1673_v19  ;;  %v9681_v44 = vld [vmem:[#allocation44_spill] sm:$0xff] }
 0x27a   : > { %vm6059_vm14 = vmand %vm9668_vm8, %vm9667_vm5  ;;  %v6069_v17 = vsel %vm1428_vm10, 1.0, %v9448_v61  ;;  %v1691_v28 = vrot.slane %v1690_v35, 4  ;;  %vm9675_vm15 = vcmp.lt.s32.totalorder %v4613_v55, 2  ;;  %vm9676_vm6 = vcmp.eq.f32.partialorder %v9583_v4, %v5105_v38 }
 0x27b   : > { %vm1429_vm11 = vmor %vm9671_vm0, %vm5814_vm1  ;;  %9672 = vst [vmem:[#allocation17_spill] sm:$0xff] %v6071_v59  ;;  %vm9679_vm10 = vcmp.lt.f32.partialorder %v9483_v29, %v9510_v24  ;;  %v1681_v16 = vrot.slane %v1680_v9, 1  ;;  %v1685_v19 = vadd.f32 %v1684_v49, %v1683_v21  ;;  %vm9680_vm8 = vcmask 261120  }
 0x27c   : > { %9673 = vst [vmem:[#allocation35_spill] sm:$0xff] %v6073_v7  ;;  %vm6084_vm1 = vmand %vm9676_vm6, %vm9675_vm15  ;;  %v6094_v43 = vsel %vm1429_vm11, 1.0, %v9448_v61  ;;  %v1704_v23 = vsel %vm9680_vm8, %v5703_v50, 0.0  ;;  %vm9682_vm5 = vcmp.lt.s32.totalorder %v4613_v55, 3  ;;  %vm9683_vm2 = vcmp.eq.f32.partialorder %v9583_v4, %v5112_v27 }
 0x27d   : > { %vm1430_vm0 = vmor %vm9679_vm10, %vm5837_vm9  ;;  %v9684_v24 = vmov 0  ;;  %vm9686_vm11 = vnez %v9600_v41  ;;  %vm9687_vm8 = vcmp.lt.f32.partialorder %v9483_v29, %v5047_v48  ;;  %v1692_v32 = vadd.f32 %v1691_v28, %v1690_v35 }
 0x27e   : > { %vm6107_vm9 = vmand %vm9683_vm2, %vm9682_vm5  ;;  %v6117_v50 = vsel %vm1430_vm0, 1.0, %v9448_v61  ;;  %v1705_v21 = vrot.slane %v1704_v23, 4  ;;  %vm9688_vm6 = vcmask 261120   ;;  %vm9689_vm5 = vcmp.lt.s32.totalorder %v4613_v55, 4 }
 0x27f   : > { %v9685_v24 = vsel %vm6107_vm9, 4294967295, %v9684_v24  ;;  %vm1431_vm10 = vmor %vm9687_vm8, %vm9686_vm11  ;;  %v1711_v49 = vsel %vm9688_vm6, %v5728_v52, 0.0  ;;  %vm9690_vm15 = vcmp.eq.f32.partialorder %v9583_v4, %v9605_v0  ;;  %vm9693_vm0 = vcmp.lt.f32.partialorder %v9483_v29, %v9522_v26 }
 0x280   : > { %vm6128_vm9 = vmand %vm9690_vm15, %vm9689_vm5  ;;  %v6138_v48 = vsel %vm1431_vm10, 1.0, %v9448_v61  ;;  %v6140_v52 = vadd.f32 %v1681_v16, %v1680_v9  ;;  %v1686_v35 = vrot.slane %v1685_v19, 2  ;;  %v1712_v28 = vrot.slane %v1711_v49, 4 }
 0x281   : > { %vm1432_vm11 = vmor %vm9693_vm0, %vm5881_vm12  ;;  %vm9695_vm15 = vcmp.lt.s32.totalorder %v4613_v55, 5  ;;  %vm9696_vm8 = vcmp.eq.f32.partialorder %v9583_v4, %v9613_v30  ;;  %vm9699_vm12 = vcmp.lt.f32.partialorder %v9529_v18, %v9528_v60  ;;  %v1693_v9 = vrot.slane %v1692_v32, 2 }
 0x282   : > { %9694 = vst [vmem:[#allocation36_spill] sm:$0xff] %v6140_v52  ;;  %vm6149_vm5 = vmand %vm9696_vm8, %vm9695_vm15  ;;  %v6159_v26 = vsel %vm1432_vm11, 1.0, %v9448_v61  ;;  %v1706_v16 = vadd.f32 %v1705_v21, %v1704_v23  ;;  %vm9701_vm8 = vcmp.lt.s32.totalorder %v4613_v55, 6  ;;  %vm9706_vm11 = vcmp.lt.f32.partialorder %v9529_v18, %v9536_v5 }
 0x283   : > { %vm1434_vm10 = vmor %vm9699_vm12, %vm5902_vm3  ;;  %vm9705_vm3 = vnez %v9624_v34  ;;  %v1713_v23 = vadd.f32 %v1712_v28, %v1711_v49  ;;  %v9709_v34 = vmov 0  ;;  %v9732_v51 = vmov 0 }
 0x284   : > { %vm9700_vm0 = vmmov %vm9688_vm6  ;;  %vm9702_vm6 = vcmp.eq.f32.partialorder %v9583_v4, %v9620_v31  ;;  %v6180_v60 = vsel %vm1434_vm10, 1.0, %v9448_v61  ;;  %vm9711_vm10 = vcmp.lt.f32.partialorder %v9529_v18, %v9544_v39  ;;  %v1707_v49 = vrot.slane %v1706_v16, 2 }
 0x285   : > { %v1718_v29 = vsel %vm9700_vm0, %v5751_v45, 0.0  ;;  %vm6170_vm2 = vmand %vm9702_vm6, %vm9701_vm8  ;;  %v1687_v45 = vadd.f32 %v1686_v35, %v1685_v19  ;;  %vm9707_vm6 = vcmp.lt.s32.totalorder %v4613_v55, 7  ;;  %vm9708_vm8 = vcmp.eq.f32.partialorder %v9583_v4, %v9628_v33 }
 0x286   : > { %vm1435_vm12 = vmor %vm9706_vm11, %vm9705_vm3  ;;  %v1719_v21 = vrot.slane %v1718_v29, 4  ;;  %v1694_v19 = vadd.f32 %v1693_v9, %v1692_v32  ;;  %v1714_v32 = vrot.slane %v1713_v23, 2  ;;  %v1708_v9 = vadd.f32 %v1707_v49, %v1706_v16 }
 0x287   : > { %vm6189_vm15 = vmand %vm9708_vm8, %vm9707_vm6  ;;  %v6199_v5 = vsel %vm1435_vm12, 1.0, %v9448_v61  ;;  %vm9713_vm8 = vcmp.lt.s32.totalorder %v4613_v55, 1  ;;  %vm9718_vm12 = vcmp.lt.f32.partialorder %v9529_v18, %v9553_v20 }
 0x288   : > { %v9710_v34 = vsel %vm6189_vm15, 4294967295, %v9709_v34  ;;  %vm1436_vm3 = vmor %vm9711_vm10, %vm5944_vm7  ;;  %vm9717_vm7 = vnez %v9640_v54  ;;  %v1720_v28 = vadd.f32 %v1719_v21, %v1718_v29  ;;  %v1695_v20 = vrot.slane %v1694_v19, 1 }
 0x289   : > { %vm9712_vm11 = vmmov %vm9700_vm0  ;;  %vm9714_vm0 = vcmp.eq.f32.partialorder %v9636_v6, %v9635_v15  ;;  %v6220_v39 = vsel %vm1436_vm3, 1.0, %v9448_v61  ;;  %vm9723_vm3 = vcmp.lt.f32.partialorder %v9529_v18, %v9560_v37  ;;  %v1715_v49 = vadd.f32 %v1714_v32, %v1713_v23 }
 0x28a   : > { %v1725_v35 = vsel %vm9712_vm11, %v5778_v22, 0.0  ;;  %vm6210_vm15 = vmand %vm9714_vm0, %vm9713_vm8  ;;  %v1688_v22 = vrot.slane %v1687_v45, 1  ;;  %vm9719_vm0 = vcmp.lt.s32.totalorder %v4613_v55, 2  ;;  %vm9720_vm8 = vcmp.eq.f32.partialorder %v9636_v6, %v9643_v14 }
 0x28b   : > { %vm1437_vm10 = vmor %vm9718_vm12, %vm9717_vm7  ;;  %v1726_v21 = vrot.slane %v1725_v35, 4  ;;  %v1721_v52 = vrot.slane %v1720_v28, 2  ;;  %v1709_v23 = vrot.slane %v1708_v9, 1 }
 0x28c   : > { %vm6229_vm6 = vmand %vm9720_vm8, %vm9719_vm0  ;;  %v6239_v29 = vsel %vm1437_vm10, 1.0, %v9448_v61  ;;  %vm9724_vm0 = vcmp.lt.s32.totalorder %v4613_v55, 3  ;;  %vm9725_vm8 = vcmp.eq.f32.partialorder %v9636_v6, %v9651_v63  ;;  %v6260_v16 = vadd.f32 %v1688_v22, %v1687_v45 }
 0x28d   : > { %vm1438_vm7 = vmor %vm9723_vm3, %vm5988_vm4  ;;  %vm9728_vm4 = vcmp.lt.f32.partialorder %v9529_v18, %v9569_v36  ;;  %v6281_v45 = vadd.f32 %v1695_v20, %v1694_v19  ;;  %v1727_v22 = vadd.f32 %v1726_v21, %v1725_v35  ;;  %v1716_v19 = vrot.slane %v1715_v49, 1 }
 0x28e   : > { %vm6248_vm11 = vmand %vm9725_vm8, %vm9724_vm0  ;;  %v6258_v37 = vsel %vm1438_vm7, 1.0, %v9448_v61  ;;  %9729 = vst [vmem:[#allocation37_spill] sm:$0xff] %v6260_v16  ;;  %vm9730_vm0 = vcmp.lt.s32.totalorder %v4613_v55, 4  ;;  %vm9731_vm8 = vcmp.eq.f32.partialorder %v9636_v6, %v9658_v1  ;;  %vm9735_vm7 = vcmp.lt.f32.partialorder %v9529_v18, %v5094_v47 }
 0x28f   : > { %vm1439_vm10 = vmor %vm9728_vm4, %vm6013_vm13  ;;  %vm9734_vm13 = vnez %v9662_v10  ;;  %9736 = vst [vmem:[#allocation38_spill] sm:$0xff] %v6281_v45  ;;  %v9739_v10 = vmov 0  ;;  %v1722_v35 = vadd.f32 %v1721_v52, %v1720_v28  ;;  %vm9744_vm3 = vcmp.eq.f32.partialorder %v9636_v6, %v9674_v2 }
 0x290   : > { %vm6269_vm12 = vmand %vm9731_vm8, %vm9730_vm0  ;;  %v6279_v36 = vsel %vm1439_vm10, 1.0, %v9448_v61  ;;  %vm9737_vm0 = vcmp.lt.s32.totalorder %v4613_v55, 5  ;;  %vm9738_vm8 = vcmp.eq.f32.partialorder %v9636_v6, %v9666_v13  ;;  %vm9741_vm10 = vcmp.lt.f32.partialorder %v9583_v4, %v9582_v25 }
 0x291   : > { %v9733_v51 = vsel %vm6269_vm12, 4294967295, %v9732_v51  ;;  %vm1440_vm4 = vmor %vm9735_vm7, %vm9734_vm13  ;;  %vm9742_vm7 = vcmask 261120   ;;  %v1728_v52 = vrot.slane %v1727_v22, 2  ;;  %v6344_v20 = vadd.f32 %v1716_v19, %v1715_v49  ;;  %v9761_v19 = vld [vmem:[#allocation27_spill] sm:$0xff] }
 0x292   : > { %vm6290_vm12 = vmand %vm9738_vm8, %vm9737_vm0  ;;  %v6300_v47 = vsel %vm1440_vm4, 1.0, %v9448_v61  ;;  %v1732_v32 = vsel %vm9742_vm7, %v5799_v56, 0.0  ;;  %vm1247_vm0 = vcmp.lt.f32.partialorder %v9636_v6, %v9674_v2  ;;  %vm9743_vm8 = vcmp.lt.s32.totalorder %v4613_v55, 6  ;;  %v9782_v2 = vld [vmem:[#allocation31_spill] sm:$0xff] }
 0x293   : > { %v9740_v10 = vsel %vm6290_vm12, 4294967295, %v9739_v10  ;;  %vm1442_vm13 = vmor %vm9741_vm10, %vm6059_vm14  ;;  %vm9747_vm14 = vcmp.lt.f32.partialorder %v9583_v4, %v5105_v38  ;;  %v6323_v56 = vadd.f32 %v1709_v23, %v1708_v9  ;;  %v1733_v28 = vrot.slane %v1732_v32, 4  ;;  %9755 = vst [vmem:[#allocation40_spill] sm:$0xff] %v6344_v20 }
 0x294   : > { %vm6311_vm12 = vmand %vm9744_vm3, %vm9743_vm8  ;;  %v6321_v25 = vsel %vm1442_vm13, 1.0, %v9448_v61  ;;  %vm9749_vm3 = vcmp.lt.s32.totalorder %v4613_v55, 7  ;;  %vm9750_vm7 = vcmp.eq.f32.partialorder %v9636_v6, %v9681_v44  ;;  %vm9754_vm13 = vcmp.lt.f32.partialorder %v9583_v4, %v5112_v27  ;;  %v9756_v55 = vld [vmem:[#allocation25_spill] sm:$0xff] }
 0x295   : > { %vm1443_vm4 = vmor %vm9747_vm14, %vm6084_vm1  ;;  %9748 = vst [vmem:[#allocation39_spill] sm:$0xff] %v6323_v56  ;;  %vm9753_vm1 = vnez %v9685_v24  ;;  %v1723_v9 = vrot.slane %v1722_v35, 1  ;;  %vm9757_vm10 = vcmask 261120   ;;  %v1729_v27 = vadd.f32 %v1728_v52, %v1727_v22 }
 0x296   : > { %vm6332_vm8 = vmand %vm9750_vm7, %vm9749_vm3  ;;  %v6342_v38 = vsel %vm1443_vm4, 1.0, %v9448_v61  ;;  %v1739_v21 = vsel %vm9757_vm10, %v9756_v55, 0.0  ;;  %vm9758_vm3 = vcmp.lt.f32.partialorder %v9583_v4, %v9605_v0  ;;  %v1734_v23 = vadd.f32 %v1733_v28, %v1732_v32  ;;  %v9762_v55 = vld [vmem:[#allocation28_spill] sm:$0xff]  ;;  %v9767_v28 = vld [vmem:[#allocation29_spill] sm:$0xff] }
 0x297   : > { %vm1444_vm14 = vmor %vm9754_vm13, %vm9753_vm1  ;;  %v1740_v18 = vrot.slane %v1739_v21, 4  ;;  %vm9759_vm4 = vcmp.lt.f32.partialorder %v9583_v4, %v9613_v30  ;;  %v6364_v41 = vadd.f32 %v1723_v9, %v1722_v35  ;;  %v1746_v0 = vsel %vm9757_vm10, %v9761_v19, 0.0 }
 0x298   : > { %vm1445_vm7 = vmor %vm9758_vm3, %vm6128_vm9  ;;  %v6354_v24 = vsel %vm1444_vm14, 1.0, %v9448_v61  ;;  %vm9764_vm13 = vcmp.lt.f32.partialorder %v9583_v4, %v9620_v31  ;;  %v1730_v62 = vrot.slane %v1729_v27, 1  ;;  %v1735_v22 = vrot.slane %v1734_v23, 2 }
 0x299   : > { %vm1446_vm1 = vmor %vm9759_vm4, %vm6149_vm5  ;;  %v6362_v49 = vsel %vm1445_vm7, 1.0, %v9448_v61  ;;  %9760 = vst [vmem:[#allocation41_spill] sm:$0xff] %v6364_v41  ;;  %v1741_v32 = vadd.f32 %v1740_v18, %v1739_v21  ;;  %vm9765_vm5 = vnez %v9710_v34  ;;  %vm9766_vm3 = vcmp.lt.f32.partialorder %v9583_v4, %v9628_v33 }
 0x29a   : > { %vm9763_vm9 = vmmov %vm9757_vm10  ;;  %v6376_v30 = vsel %vm1446_vm1, 1.0, %v9448_v61  ;;  %v1747_v46 = vrot.slane %v1746_v0, 4  ;;  %v6396_v34 = vadd.f32 %v1730_v62, %v1729_v27  ;;  %v1736_v33 = vadd.f32 %v1735_v22, %v1734_v23 }
 0x29b   : > { %v1760_v20 = vsel %vm9763_vm9, %v9762_v55, 0.0  ;;  %vm1447_vm14 = vmor %vm9764_vm13, %vm6170_vm2  ;;  %vm9769_vm2 = vcmp.lt.f32.partialorder %v9636_v6, %v9635_v15  ;;  %v1742_v9 = vrot.slane %v1741_v32, 2  ;;  %vm9771_vm10 = vcmp.lt.f32.partialorder %v9636_v6, %v9643_v14  ;;  %v9773_v55 = vld [vmem:[#allocation30_spill] sm:$0xff] }
 0x29c   : > { %vm1448_vm7 = vmor %vm9766_vm3, %vm9765_vm5  ;;  %v6384_v35 = vsel %vm1447_vm14, 1.0, %v9448_v61  ;;  %v1761_v52 = vrot.slane %v1760_v20, 4  ;;  %9770 = vst [vmem:[#allocation42_spill] sm:$0xff] %v6396_v34  ;;  %v1748_v3 = vadd.f32 %v1747_v46, %v1746_v0  ;;  %v1737_v54 = vrot.slane %v1736_v33, 1 }
 0x29d   : > { %vm9768_vm4 = vmmov %vm9763_vm9  ;;  %v6394_v18 = vsel %vm1448_vm7, 1.0, %v9448_v61  ;;  %v1743_v23 = vadd.f32 %v1742_v9, %v1741_v32  ;;  %vm9776_vm5 = vcmp.lt.f32.partialorder %v9636_v6, %v9658_v1  ;;  %vm9778_vm7 = vcmp.lt.f32.partialorder %v9636_v6, %v9666_v13 }
 0x29e   : > { %v1767_v31 = vsel %vm9768_vm4, %v9767_v28, 0.0  ;;  %vm1450_vm1 = vmor %vm9769_vm2, %vm6210_vm15  ;;  %v1762_v19 = vadd.f32 %v1761_v52, %v1760_v20  ;;  %vm9772_vm15 = vcmp.lt.f32.partialorder %v9636_v6, %v9651_v63  ;;  %v1749_v20 = vrot.slane %v1748_v3, 2 }
 0x29f   : > { %vm1451_vm9 = vmor %vm9771_vm10, %vm6229_vm6  ;;  %v6404_v21 = vsel %vm1450_vm1, 1.0, %v9448_v61  ;;  %v1768_v15 = vrot.slane %v1767_v31, 4  ;;  %vm9775_vm6 = vnez %v9733_v51  ;;  %v6432_v51 = vadd.f32 %v1737_v54, %v1736_v33 }
 0x2a0   : > { %vm1452_vm13 = vmor %vm9772_vm15, %vm6248_vm11  ;;  %v6412_v27 = vsel %vm1451_vm9, 1.0, %v9448_v61  ;;  %v1763_v63 = vrot.slane %v1762_v19, 2  ;;  %vm9777_vm11 = vnez %v9740_v10  ;;  %v1744_v22 = vrot.slane %v1743_v23, 1 }
 0x2a1   : > { %vm9774_vm14 = vmmov %vm9768_vm4  ;;  %v6422_v40 = vsel %vm1452_vm13, 1.0, %v9448_v61  ;;  %v1769_v0 = vadd.f32 %v1768_v15, %v1767_v31  ;;  %9779 = vst [vmem:[#allocation43_spill] sm:$0xff] %v6432_v51  ;;  %v1750_v10 = vadd.f32 %v1749_v20, %v1748_v3  ;;  %vm9780_vm1 = vcmp.lt.f32.partialorder %v9636_v6, %v9681_v44 }
 0x2a2   : > { %v1774_v14 = vsel %vm9774_vm14, %v9773_v55, 0.0  ;;  %vm1453_vm3 = vmor %vm9776_vm5, %vm9775_vm6  ;;  %v1764_v46 = vadd.f32 %v1763_v63, %v1762_v19  ;;  %v6450_v58 = vadd.f32 %v1744_v22, %v1743_v23 }
 0x2a3   : > { %vm1454_vm4 = vmor %vm9778_vm7, %vm9777_vm11  ;;  %v6430_v62 = vsel %vm1453_vm3, 1.0, %v9448_v61  ;;  %v1775_v1 = vrot.slane %v1774_v14, 4  ;;  %v1770_v13 = vrot.slane %v1769_v0, 2  ;;  %v1751_v9 = vrot.slane %v1750_v10, 1 }
 0x2a4   : > { %vm1455_vm2 = vmor %vm1247_vm0, %vm6311_vm12  ;;  %v6440_v32 = vsel %vm1454_vm4, 1.0, %v9448_v61  ;;  %9781 = vst [vmem:[#allocation44_spill] sm:$0xff] %v6450_v58  ;;  %v1765_v3 = vrot.slane %v1764_v46, 1 }
 0x2a5   : > { %vm1456_vm10 = vmor %vm9780_vm1, %vm6332_vm8  ;;  %v6448_v52 = vsel %vm1455_vm2, 1.0, %v9448_v61  ;;  %v1776_v28 = vadd.f32 %v1775_v1, %v1774_v14  ;;  %v1771_v19 = vadd.f32 %v1770_v13, %v1769_v0  ;;  %v6461_v23 = vadd.f32 %v1751_v9, %v1750_v10 }
 0x2a6   : > { %vm9783_vm12 = vmmov %vm9774_vm14  ;;  %v6455_v33 = vsel %vm1456_vm10, 1.0, %v9448_v61  ;;  %v6463_v55 = vadd.f32 %v1765_v3, %v1764_v46 }
 0x2a7   : > { %v1781_v31 = vsel %vm9783_vm12, %v9782_v2, 0.0  ;;  %v1777_v42 = vrot.slane %v1776_v28, 2  ;;  %vm9784_vm0 = vmmov %vm9783_vm12  ;;  %9786 = vst [vmem:[#allocation25_spill] sm:$0xff] %v6461_v23  ;;  %v1772_v14 = vrot.slane %v1771_v19, 1 }
 0x2a8   : > { %v1782_v15 = vrot.slane %v1781_v31, 4  ;;  %v1788_v44 = vsel %vm9784_vm0, %v5954_v11, 0.0  ;;  %vm9785_vm8 = vmmov %vm9784_vm0  ;;  %9787 = vst [vmem:[#allocation27_spill] sm:$0xff] %v6463_v55 }
 0x2a9   : > { %v1795_v54 = vsel %vm9785_vm8, %v5977_v57, 0.0  ;;  %v1789_v20 = vrot.slane %v1788_v44, 4  ;;  %v1778_v63 = vadd.f32 %v1777_v42, %v1776_v28  ;;  %vm9788_vm9 = vmmov %vm9784_vm0  ;;  %v6467_v1 = vadd.f32 %v1772_v14, %v1771_v19 }
 0x2aa   : > { %v1783_v61 = vadd.f32 %v1782_v15, %v1781_v31  ;;  %v1796_v22 = vrot.slane %v1795_v54, 4  ;;  %v1802_v0 = vsel %vm9788_vm9, %v5998_v8, 0.0  ;;  %vm9790_vm15 = vmmov %vm9784_vm0 }
 0x2ab   : > { %9789 = vst [vmem:[#allocation28_spill] sm:$0xff] %v6467_v1  ;;  %v1790_v13 = vadd.f32 %v1789_v20, %v1788_v44  ;;  %v1803_v2 = vrot.slane %v1802_v0, 4  ;;  %v1816_v11 = vsel %vm9790_vm15, %v6023_v53, 0.0  ;;  %v1779_v57 = vrot.slane %v1778_v63, 1  ;;  %vm9791_vm13 = vmmov %vm9784_vm0 }
 0x2ac   : > { %v1784_v10 = vrot.slane %v1783_v61, 2  ;;  %v1797_v9 = vadd.f32 %v1796_v22, %v1795_v54  ;;  %v1817_v46 = vrot.slane %v1816_v11, 4  ;;  %v1823_v28 = vsel %vm9791_vm13, %v6046_v12, 0.0  ;;  %vm9792_vm14 = vmmov %vm9784_vm0 }
 0x2ad   : > { %v1791_v3 = vrot.slane %v1790_v13, 2  ;;  %v1804_v6 = vadd.f32 %v1803_v2, %v1802_v0  ;;  %v1830_v31 = vsel %vm9792_vm14, %v6069_v17, 0.0  ;;  %v6475_v8 = vadd.f32 %v1779_v57, %v1778_v63  ;;  %vm9794_vm6 = vmmov %vm9784_vm0 }
 0x2ae   : > { %v1785_v19 = vadd.f32 %v1784_v10, %v1783_v61  ;;  %v1798_v42 = vrot.slane %v1797_v9, 2  ;;  %v1818_v15 = vadd.f32 %v1817_v46, %v1816_v11  ;;  %v1824_v53 = vrot.slane %v1823_v28, 4  ;;  %vm9798_vm5 = vmmov %vm9784_vm0 }
 0x2af   : > { %9793 = vst [vmem:[#allocation29_spill] sm:$0xff] %v6475_v8  ;;  %v1792_v44 = vadd.f32 %v1791_v3, %v1790_v13  ;;  %v1805_v14 = vrot.slane %v1804_v6, 2  ;;  %v1831_v20 = vrot.slane %v1830_v31, 4  ;;  %v1837_v0 = vsel %vm9794_vm6, %v6094_v43, 0.0  ;;  %vm9801_vm3 = vmmov %vm9784_vm0 }
 0x2b0   : > { %v1786_v4 = vrot.slane %v1785_v19, 1  ;;  %v1799_v54 = vadd.f32 %v1798_v42, %v1797_v9  ;;  %v1819_v22 = vrot.slane %v1818_v15, 2  ;;  %v1825_v1 = vadd.f32 %v1824_v53, %v1823_v28  ;;  %vm9802_vm11 = vmmov %vm9784_vm0 }
 0x2b1   : > { %v1793_v2 = vrot.slane %v1792_v44, 1  ;;  %v1806_v12 = vadd.f32 %v1805_v14, %v1804_v6  ;;  %v1832_v55 = vadd.f32 %v1831_v20, %v1830_v31  ;;  %v1838_v57 = vrot.slane %v1837_v0, 4  ;;  %vm9803_vm7 = vmmov %vm9784_vm0 }
 0x2b2   : > { %v6479_v17 = vadd.f32 %v1786_v4, %v1785_v19  ;;  %v1800_v63 = vrot.slane %v1799_v54, 1  ;;  %v1820_v61 = vadd.f32 %v1819_v22, %v1818_v15  ;;  %v1826_v10 = vrot.slane %v1825_v1, 2  ;;  %vm9804_vm4 = vmmov %vm9784_vm0 }
 0x2b3   : > { %v6481_v11 = vadd.f32 %v1793_v2, %v1792_v44  ;;  %v1807_v13 = vrot.slane %v1806_v12, 1  ;;  %v1833_v46 = vrot.slane %v1832_v55, 2  ;;  %v1839_v42 = vadd.f32 %v1838_v57, %v1837_v0  ;;  %vm9807_vm2 = vmmov %vm9784_vm0 }
 0x2b4   : > { %9795 = vst [vmem:[#allocation30_spill] sm:$0xff] %v6479_v17  ;;  %v6483_v3 = vadd.f32 %v1800_v63, %v1799_v54  ;;  %v1821_v9 = vrot.slane %v1820_v61, 1  ;;  %v1844_v43 = vsel %vm9798_vm5, %v6117_v50, 0.0  ;;  %v1827_v28 = vadd.f32 %v1826_v10, %v1825_v1  ;;  %vm9808_vm1 = vmmov %vm9784_vm0 }
 0x2b5   : > { %9796 = vst [vmem:[#allocation31_spill] sm:$0xff] %v6481_v11  ;;  %v6487_v6 = vadd.f32 %v1807_v13, %v1806_v12  ;;  %v1834_v4 = vadd.f32 %v1833_v46, %v1832_v55  ;;  %v1845_v31 = vrot.slane %v1844_v43, 4  ;;  %v1840_v15 = vrot.slane %v1839_v42, 2  ;;  %vm9810_vm10 = vmmov %vm9784_vm0 }
 0x2b6   : > { %9797 = vst [vmem:[#allocation58_spill] sm:$0xff] %v6483_v3  ;;  %v6489_v19 = vadd.f32 %v1821_v9, %v1820_v61  ;;  %v1851_v44 = vsel %vm9801_vm3, %v6138_v48, 0.0  ;;  %v1858_v14 = vsel %vm9802_vm11, %v6159_v26, 0.0  ;;  %v1828_v53 = vrot.slane %v1827_v28, 1  ;;  %vm9813_vm12 = vmmov %vm9784_vm0 }
 0x2b7   : > { %9799 = vst [vmem:[#allocation59_spill] sm:$0xff] %v6487_v6  ;;  %v1835_v20 = vrot.slane %v1834_v4, 1  ;;  %v1846_v54 = vadd.f32 %v1845_v31, %v1844_v43  ;;  %v1852_v22 = vrot.slane %v1851_v44, 4  ;;  %v1841_v0 = vadd.f32 %v1840_v15, %v1839_v42  ;;  %vm9817_vm8 = vmmov %vm9784_vm0 }
 0x2b8   : > { %9800 = vst [vmem:[#allocation60_spill] sm:$0xff] %v6489_v19  ;;  %v1859_v50 = vrot.slane %v1858_v14, 4  ;;  %v1872_v1 = vsel %vm9803_vm7, %v6180_v60, 0.0  ;;  %v1879_v55 = vsel %vm9804_vm4, %v6199_v5, 0.0  ;;  %v6499_v2 = vadd.f32 %v1828_v53, %v1827_v28  ;;  %vm9818_vm9 = vmmov %vm9784_vm0 }
 0x2b9   : > { %v6501_v12 = vadd.f32 %v1835_v20, %v1834_v4  ;;  %v1847_v48 = vrot.slane %v1846_v54, 2  ;;  %v1853_v63 = vadd.f32 %v1852_v22, %v1851_v44  ;;  %v1842_v61 = vrot.slane %v1841_v0, 1  ;;  %vm9821_vm15 = vmmov %vm9784_vm0 }
 0x2ba   : > { %9805 = vst [vmem:[#allocation61_spill] sm:$0xff] %v6499_v2  ;;  %v1860_v26 = vadd.f32 %v1859_v50, %v1858_v14  ;;  %v1873_v57 = vrot.slane %v1872_v1, 4  ;;  %v1880_v13 = vrot.slane %v1879_v55, 4  ;;  %v1886_v9 = vsel %vm9807_vm2, %v6220_v39, 0.0  ;;  %vm9822_vm13 = vmmov %vm9784_vm0 }
 0x2bb   : > { %9806 = vst [vmem:[#allocation62_spill] sm:$0xff] %v6501_v12  ;;  %v1848_v10 = vadd.f32 %v1847_v48, %v1846_v54  ;;  %v1854_v46 = vrot.slane %v1853_v63, 2  ;;  %v1893_v60 = vsel %vm9808_vm1, %v6239_v29, 0.0  ;;  %v6507_v42 = vadd.f32 %v1842_v61, %v1841_v0  ;;  %vm9824_vm14 = vmmov %vm9784_vm0 }
 0x2bc   : > { %v1861_v5 = vrot.slane %v1860_v26, 2  ;;  %v1874_v43 = vadd.f32 %v1873_v57, %v1872_v1  ;;  %v1881_v28 = vadd.f32 %v1880_v13, %v1879_v55  ;;  %v1887_v15 = vrot.slane %v1886_v9, 4  ;;  %vm9826_vm6 = vmmov %vm9784_vm0 }
 0x2bd   : > { %9809 = vst [vmem:[#allocation63_spill] sm:$0xff] %v6507_v42  ;;  %v1849_v4 = vrot.slane %v1848_v10, 1  ;;  %v1855_v31 = vadd.f32 %v1854_v46, %v1853_v63  ;;  %v1894_v44 = vrot.slane %v1893_v60, 4  ;;  %v1900_v54 = vsel %vm9810_vm10, %v6258_v37, 0.0  ;;  %vm9828_vm5 = vmmov %vm9784_vm0 }
 0x2be   : > { %v1862_v14 = vadd.f32 %v1861_v5, %v1860_v26  ;;  %v1875_v53 = vrot.slane %v1874_v43, 2  ;;  %v1882_v20 = vrot.slane %v1881_v28, 2  ;;  %v1888_v50 = vadd.f32 %v1887_v15, %v1886_v9  ;;  %vm9831_vm3 = vmmov %vm9784_vm0 }
 0x2bf   : > { %v6511_v22 = vadd.f32 %v1849_v4, %v1848_v10  ;;  %v1856_v39 = vrot.slane %v1855_v31, 1  ;;  %v1895_v29 = vadd.f32 %v1894_v44, %v1893_v60  ;;  %v1901_v1 = vrot.slane %v1900_v54, 4  ;;  %vm9833_vm11 = vmmov %vm9784_vm0 }
 0x2c0   : > { %v1863_v0 = vrot.slane %v1862_v14, 1  ;;  %v1876_v48 = vadd.f32 %v1875_v53, %v1874_v43  ;;  %v1883_v61 = vadd.f32 %v1882_v20, %v1881_v28  ;;  %v1889_v63 = vrot.slane %v1888_v50, 2  ;;  %vm9834_vm7 = vmmov %vm9784_vm0 }
 0x2c1   : > { %9811 = vst [vmem:[#allocation64_spill] sm:$0xff] %v6511_v22  ;;  %v6513_v55 = vadd.f32 %v1856_v39, %v1855_v31  ;;  %v1896_v57 = vrot.slane %v1895_v29, 2  ;;  %v1907_v26 = vsel %vm9813_vm12, %v6279_v36, 0.0  ;;  %v1902_v10 = vadd.f32 %v1901_v1, %v1900_v54  ;;  %vm9836_vm4 = vmmov %vm9784_vm0 }
 0x2c2   : > { %v6517_v13 = vadd.f32 %v1863_v0, %v1862_v14  ;;  %v1877_v46 = vrot.slane %v1876_v48, 1  ;;  %v1884_v37 = vrot.slane %v1883_v61, 1  ;;  %v1890_v5 = vadd.f32 %v1889_v63, %v1888_v50  ;;  %vm9838_vm2 = vmmov %vm9784_vm0 }
 0x2c3   : > { %9812 = vst [vmem:[#allocation65_spill] sm:$0xff] %v6513_v55  ;;  %v1897_v4 = vadd.f32 %v1896_v57, %v1895_v29  ;;  %v1908_v9 = vrot.slane %v1907_v26, 4  ;;  %v1914_v60 = vsel %vm9784_vm0, %v6300_v47, 0.0  ;;  %v1903_v31 = vrot.slane %v1902_v10, 2  ;;  %vm9840_vm1 = vmmov %vm9784_vm0 }
 0x2c4   : > { %9814 = vst [vmem:[#allocation66_spill] sm:$0xff] %v6517_v13  ;;  %v6521_v43 = vadd.f32 %v1877_v46, %v1876_v48  ;;  %v6523_v28 = vadd.f32 %v1884_v37, %v1883_v61  ;;  %v1915_v15 = vrot.slane %v1914_v60, 4  ;;  %v1891_v44 = vrot.slane %v1890_v5, 1  ;;  %vm9842_vm10 = vmmov %vm9784_vm0 }
 0x2c5   : > { %v1898_v53 = vrot.slane %v1897_v4, 1  ;;  %v1909_v36 = vadd.f32 %v1908_v9, %v1907_v26  ;;  %v1928_v14 = vsel %vm9817_vm8, %v6321_v25, 0.0  ;;  %v1904_v20 = vadd.f32 %v1903_v31, %v1902_v10 }
 0x2c6   : > { %9815 = vst [vmem:[#allocation67_spill] sm:$0xff] %v6521_v43  ;;  %9816 = vst [vmem:[#allocation68_spill] sm:$0xff] %v6523_v28  ;;  %v1916_v54 = vadd.f32 %v1915_v15, %v1914_v60  ;;  %v1929_v39 = vrot.slane %v1928_v14, 4  ;;  %v1935_v50 = vsel %vm9818_vm9, %v6342_v38, 0.0  ;;  %v6529_v29 = vadd.f32 %v1891_v44, %v1890_v5 }
 0x2c7   : > { %v6531_v47 = vadd.f32 %v1898_v53, %v1897_v4  ;;  %v1910_v0 = vrot.slane %v1909_v36, 2  ;;  %v1936_v48 = vrot.slane %v1935_v50, 4  ;;  %v1905_v61 = vrot.slane %v1904_v20, 1 }
 0x2c8   : > { %9819 = vst [vmem:[#allocation69_spill] sm:$0xff] %v6529_v29  ;;  %v1917_v1 = vrot.slane %v1916_v54, 2  ;;  %v1930_v63 = vadd.f32 %v1929_v39, %v1928_v14  ;;  %v1942_v57 = vsel %vm9821_vm15, %v6354_v24, 0.0  ;;  %v1949_v37 = vsel %vm9822_vm13, %v6362_v49, 0.0 }
 0x2c9   : > { %9820 = vst [vmem:[#allocation70_spill] sm:$0xff] %v6531_v47  ;;  %v1911_v26 = vadd.f32 %v1910_v0, %v1909_v36  ;;  %v1937_v25 = vadd.f32 %v1936_v48, %v1935_v50  ;;  %v1943_v46 = vrot.slane %v1942_v57, 4  ;;  %v6537_v10 = vadd.f32 %v1905_v61, %v1904_v20 }
 0x2ca   : > { %v1918_v38 = vadd.f32 %v1917_v1, %v1916_v54  ;;  %v1931_v5 = vrot.slane %v1930_v63, 2  ;;  %v1950_v4 = vrot.slane %v1949_v37, 4  ;;  %v1956_v15 = vsel %vm9824_vm14, %v6376_v30, 0.0 }
 0x2cb   : > { %9823 = vst [vmem:[#allocation71_spill] sm:$0xff] %v6537_v10  ;;  %v1912_v9 = vrot.slane %v1911_v26, 1  ;;  %v1938_v60 = vrot.slane %v1937_v25, 2  ;;  %v1944_v31 = vadd.f32 %v1943_v46, %v1942_v57  ;;  %v1957_v36 = vrot.slane %v1956_v15, 4 }
 0x2cc   : > { %v1919_v44 = vrot.slane %v1918_v38, 1  ;;  %v1932_v53 = vadd.f32 %v1931_v5, %v1930_v63  ;;  %v1951_v24 = vadd.f32 %v1950_v4, %v1949_v37  ;;  %v1963_v49 = vsel %vm9826_vm6, %v6384_v35, 0.0  ;;  %vm10021_vm6 = vmmov %vm9840_vm1 }
 0x2cd   : > { %v6541_v14 = vadd.f32 %v1912_v9, %v1911_v26  ;;  %v1939_v39 = vadd.f32 %v1938_v60, %v1937_v25  ;;  %v1945_v50 = vrot.slane %v1944_v31, 2  ;;  %v1958_v48 = vadd.f32 %v1957_v36, %v1956_v15 }
 0x2ce   : > { %v6545_v20 = vadd.f32 %v1919_v44, %v1918_v38  ;;  %v1933_v54 = vrot.slane %v1932_v53, 1  ;;  %v1952_v0 = vrot.slane %v1951_v24, 2  ;;  %v1964_v57 = vrot.slane %v1963_v49, 4 }
 0x2cf   : > { %9825 = vst [vmem:[#allocation72_spill] sm:$0xff] %v6541_v14  ;;  %v1940_v61 = vrot.slane %v1939_v39, 1  ;;  %v1946_v1 = vadd.f32 %v1945_v50, %v1944_v31  ;;  %v1970_v30 = vsel %vm9828_vm5, %v6394_v18, 0.0  ;;  %v1959_v46 = vrot.slane %v1958_v48, 2  ;;  %vm10022_vm5 = vmmov %vm9840_vm1 }
 0x2d0   : > { %9827 = vst [vmem:[#allocation73_spill] sm:$0xff] %v6545_v20  ;;  %v6549_v63 = vadd.f32 %v1933_v54, %v1932_v53  ;;  %v1953_v26 = vadd.f32 %v1952_v0, %v1951_v24  ;;  %v1971_v25 = vrot.slane %v1970_v30, 4  ;;  %v1965_v35 = vadd.f32 %v1964_v57, %v1963_v49 }
 0x2d1   : > { %v6551_v37 = vadd.f32 %v1940_v61, %v1939_v39  ;;  %v1947_v5 = vrot.slane %v1946_v1, 1  ;;  %v1984_v38 = vsel %vm9831_vm3, %v6404_v21, 0.0  ;;  %v1960_v9 = vadd.f32 %v1959_v46, %v1958_v48  ;;  %vm10023_vm3 = vmmov %vm9840_vm1 }
 0x2d2   : > { %9829 = vst [vmem:[#allocation74_spill] sm:$0xff] %v6549_v63  ;;  %v1954_v4 = vrot.slane %v1953_v26, 1  ;;  %v1972_v60 = vadd.f32 %v1971_v25, %v1970_v30  ;;  %v1985_v31 = vrot.slane %v1984_v38, 4  ;;  %v1966_v44 = vrot.slane %v1965_v35, 2 }
 0x2d3   : > { %9830 = vst [vmem:[#allocation75_spill] sm:$0xff] %v6551_v37  ;;  %v6555_v15 = vadd.f32 %v1947_v5, %v1946_v1  ;;  %v1991_v18 = vsel %vm9833_vm11, %v6412_v27, 0.0  ;;  %v1998_v53 = vsel %vm9834_vm7, %v6422_v40, 0.0  ;;  %v1961_v36 = vrot.slane %v1960_v9, 1  ;;  %vm10024_vm11 = vmmov %vm9840_vm1 }
 0x2d4   : > { %v6561_v24 = vadd.f32 %v1954_v4, %v1953_v26  ;;  %v1973_v39 = vrot.slane %v1972_v60, 2  ;;  %v1986_v50 = vadd.f32 %v1985_v31, %v1984_v38  ;;  %v1967_v49 = vadd.f32 %v1966_v44, %v1965_v35  ;;  %vm10025_vm7 = vmmov %vm9840_vm1 }
 0x2d5   : > { %9832 = vst [vmem:[#allocation76_spill] sm:$0xff] %v6555_v15  ;;  %v1992_v21 = vrot.slane %v1991_v18, 4  ;;  %v1999_v54 = vrot.slane %v1998_v53, 4  ;;  %v2005_v0 = vsel %vm9836_vm4, %v6430_v62, 0.0  ;;  %v6565_v48 = vadd.f32 %v1961_v36, %v1960_v9  ;;  %vm10026_vm4 = vmmov %vm9840_vm1 }
 0x2d6   : > { %9835 = vst [vmem:[#allocation77_spill] sm:$0xff] %v6561_v24  ;;  %v1974_v61 = vadd.f32 %v1973_v39, %v1972_v60  ;;  %v1987_v1 = vrot.slane %v1986_v50, 2  ;;  %v2006_v57 = vrot.slane %v2005_v0, 4  ;;  %v1968_v27 = vrot.slane %v1967_v49, 1 }
 0x2d7   : > { %9837 = vst [vmem:[#allocation78_spill] sm:$0xff] %v6565_v48  ;;  %v1993_v30 = vadd.f32 %v1992_v21, %v1991_v18  ;;  %v2000_v46 = vadd.f32 %v1999_v54, %v1998_v53  ;;  %v2012_v40 = vsel %vm9838_vm2, %v6440_v32, 0.0  ;;  %v2019_v62 = vsel %vm9840_vm1, %v6448_v52, 0.0  ;;  %v9844_v52 = vld [vmem:[#allocation20_spill] sm:$0xff]  ;;  %vm10027_vm2 = vmmov %vm9840_vm1 }
 0x2d8   : > { %v1975_v26 = vrot.slane %v1974_v61, 1  ;;  %v1988_v25 = vadd.f32 %v1987_v1, %v1986_v50  ;;  %v2007_v5 = vadd.f32 %v2006_v57, %v2005_v0  ;;  %v2013_v35 = vrot.slane %v2012_v40, 4 }
 0x2d9   : > { %v6569_v38 = vadd.f32 %v1968_v27, %v1967_v49  ;;  %v1994_v4 = vrot.slane %v1993_v30, 2  ;;  %v2001_v31 = vrot.slane %v2000_v46, 2  ;;  %v2020_v39 = vrot.slane %v2019_v62, 4 }
 0x2da   : > { %v6573_v9 = vadd.f32 %v1975_v26, %v1974_v61  ;;  %v1989_v60 = vrot.slane %v1988_v25, 1  ;;  %v2008_v44 = vrot.slane %v2007_v5, 2  ;;  %v2014_v18 = vadd.f32 %v2013_v35, %v2012_v40 }
 0x2db   : > { %9839 = vst [vmem:[#allocation79_spill] sm:$0xff] %v6569_v38  ;;  %v1995_v53 = vadd.f32 %v1994_v4, %v1993_v30  ;;  %v2002_v36 = vadd.f32 %v2001_v31, %v2000_v46  ;;  %v2026_v32 = vsel %vm9842_vm10, %v6455_v33, 0.0  ;;  %v2021_v57 = vadd.f32 %v2020_v39, %v2019_v62  ;;  %v9845_v30 = vld [vmem:[#allocation21_spill] sm:$0xff]  ;;  %vm10268_vm10 = vmmov %vm9840_vm1 }
 0x2dc   : > { %9841 = vst [vmem:[#allocation80_spill] sm:$0xff] %v6573_v9  ;;  %v6577_v50 = vadd.f32 %v1989_v60, %v1988_v25  ;;  %v2009_v49 = vadd.f32 %v2008_v44, %v2007_v5  ;;  %v2015_v21 = vrot.slane %v2014_v18, 2  ;;  %v2027_v54 = vrot.slane %v2026_v32, 4  ;;  %v9848_v5 = vld [vmem:[#allocation22_spill] sm:$0xff]  ;;  %v9850_v44 = vld [vmem:[#allocation23_spill] sm:$0xff] }
 0x2dd   : > { %v1996_v0 = vrot.slane %v1995_v53, 1  ;;  %v2003_v1 = vrot.slane %v2002_v36, 1  ;;  %v6580_v61 = vadd.f32 -7.0, %v9844_v52  ;;  %v6583_v46 = vadd.f32 -7.0, %v9845_v30  ;;  %v9856_v30 = vld [vmem:[#allocation34_spill] sm:$0xff] }
 0x2de   : > { %9843 = vst [vmem:[#allocation81_spill] sm:$0xff] %v6577_v50  ;;  %v2010_v27 = vrot.slane %v2009_v49, 1  ;;  %v2016_v26 = vadd.f32 %v2015_v21, %v2014_v18  ;;  %v2028_v40 = vadd.f32 %v2027_v54, %v2026_v32  ;;  %v2022_v25 = vrot.slane %v2021_v57, 2  ;;  %v9851_v32 = vld [vmem:[#allocation24_spill] sm:$0xff]  ;;  %v9852_v54 = vld [vmem:[#allocation26_spill] sm:$0xff] }
 0x2df   : > { %v6585_v35 = vadd.f32 %v1996_v0, %v1995_v53  ;;  %v6587_v33 = vadd.f32 %v2003_v1, %v2002_v36  ;;  %v6590_v4 = vadd.f32 -7.0, %v9848_v5  ;;  %v6595_v39 = vadd.f32 -7.0, %v9850_v44  ;;  %v9853_v36 = vld [vmem:[#allocation32_spill] sm:$0xff] }
 0x2e0   : > { %v6592_v31 = vadd.f32 %v2010_v27, %v2009_v49  ;;  %v2017_v62 = vrot.slane %v2016_v26, 1  ;;  %v2029_v60 = vrot.slane %v2028_v40, 2  ;;  %v2023_v18 = vadd.f32 %v2022_v25, %v2021_v57  ;;  %v9855_v49 = vld [vmem:[#allocation33_spill] sm:$0xff] }
 0x2e1   : > { %9846 = vst [vmem:[#allocation82_spill] sm:$0xff] %v6585_v35  ;;  %9847 = vst [vmem:[#allocation83_spill] sm:$0xff] %v6587_v33  ;;  %v6598_v21 = vadd.f32 -7.0, %v9851_v32  ;;  %v6601_v53 = vadd.f32 -7.0, %v9852_v54  ;;  %v6604_v0 = vadd.f32 -7.0, %v9853_v36  ;;  %v6609_v27 = vadd.f32 -7.0, %v9855_v49 }
 0x2e2   : > { %9849 = vst [vmem:[#allocation84_spill] sm:$0xff] %v6592_v31  ;;  %v6606_v1 = vadd.f32 %v2017_v62, %v2016_v26  ;;  %v2030_v5 = vadd.f32 %v2029_v60, %v2028_v40  ;;  %v6612_v52 = vadd.f32 -7.0, %v9856_v30  ;;  %v2024_v44 = vrot.slane %v2023_v18, 1  ;;  %v9857_v54 = vld [vmem:[#allocation36_spill] sm:$0xff] }
 0x2e3   : > { %v6615_v57 = vadd.f32 -7.0, %v6071_v59  ;;  %v6618_v25 = vadd.f32 -7.0, %v6073_v7  ;;  %v6621_v32 = vadd.f32 -7.0, %v9857_v54  ;;  %v6624_v26 = vadd.f32 -7.0, %v6260_v16  ;;  %v9859_v59 = vld [vmem:[#allocation40_spill] sm:$0xff] }
 0x2e4   : > { %9854 = vst [vmem:[#allocation85_spill] sm:$0xff] %v6606_v1  ;;  %v2031_v36 = vrot.slane %v2030_v5, 1  ;;  %v6627_v40 = vadd.f32 -7.0, %v6281_v45  ;;  %v6630_v62 = vadd.f32 -7.0, %v6323_v56  ;;  %v6632_v60 = vadd.f32 %v2024_v44, %v2023_v18  ;;  %v9861_v18 = vld [vmem:[#allocation27_spill] sm:$0xff]  ;;  %v9862_v56 = vld [vmem:[#allocation28_spill] sm:$0xff] }
 0x2e5   : > { %v6635_v30 = vadd.f32 -7.0, %v9859_v59  ;;  %v6638_v7 = vadd.f32 -7.0, %v6364_v41  ;;  %v6641_v54 = vadd.f32 -7.0, %v6396_v34  ;;  %v6646_v16 = vadd.f32 -7.0, %v6432_v51 }
 0x2e6   : > { %9858 = vst [vmem:[#allocation86_spill] sm:$0xff] %v6632_v60  ;;  %v6643_v49 = vadd.f32 %v2031_v36, %v2030_v5  ;;  %v6649_v45 = vadd.f32 -7.0, %v6450_v58  ;;  %v6652_v44 = vadd.f32 -7.0, %v6461_v23  ;;  %v6655_v59 = vadd.f32 -7.0, %v9861_v18 }
 0x2e7   : > { %v6658_v41 = vadd.f32 -7.0, %v9862_v56  ;;  %v6661_v34 = vadd.f32 -7.0, %v6475_v8  ;;  %v6664_v5 = vadd.f32 -7.0, %v6479_v17  ;;  %v6667_v36 = vadd.f32 -7.0, %v6481_v11 }
 0x2e8   : > { %9860 = vst [vmem:[#allocation87_spill] sm:$0xff] %v6643_v49  ;;  %v6670_v58 = vadd.f32 -7.0, %v6483_v3  ;;  %v6673_v23 = vadd.f32 -7.0, %v6487_v6  ;;  %v6676_v18 = vadd.f32 -7.0, %v6489_v19  ;;  %v6679_v56 = vadd.f32 -7.0, %v6499_v2 }
 0x2e9   : > { %9863 = vst [vmem:[#allocation88_spill] sm:$0xff] %v6667_v36  ;;  %v6682_v8 = vadd.f32 -7.0, %v6501_v12  ;;  %v6685_v17 = vadd.f32 -7.0, %v6507_v42  ;;  %v6688_v11 = vadd.f32 -7.0, %v6511_v22  ;;  %v6691_v3 = vadd.f32 -7.0, %v6513_v55  ;;  %v9878_v36 = vld [vmem:[#allocation57_spill] sm:$0xff] }
 0x2ea   : > { %v6694_v6 = vadd.f32 -7.0, %v6517_v13  ;;  %v6697_v19 = vadd.f32 -7.0, %v6521_v43  ;;  %v6700_v2 = vadd.f32 -7.0, %v6523_v28  ;;  %v6703_v12 = vadd.f32 -7.0, %v6529_v29 }
 0x2eb   : > { %9864 = vst [vmem:[#allocation89_spill] sm:$0xff] %v6688_v11  ;;  %v6706_v42 = vadd.f32 -7.0, %v6531_v47  ;;  %v6709_v22 = vadd.f32 -7.0, %v6537_v10  ;;  %v6712_v55 = vadd.f32 -7.0, %v6541_v14  ;;  %v6715_v13 = vadd.f32 -7.0, %v6545_v20  ;;  %v9879_v11 = vld [vmem:[#allocation19_spill] sm:$0xff] }
 0x2ec   : > { %v6718_v43 = vadd.f32 -7.0, %v6549_v63  ;;  %v6721_v28 = vadd.f32 -7.0, %v6551_v37  ;;  %v6724_v29 = vadd.f32 -7.0, %v6555_v15  ;;  %v6727_v47 = vadd.f32 -7.0, %v6561_v24 }
 0x2ed   : > { %9865 = vst [vmem:[#allocation90_spill] sm:$0xff] %v6709_v22  ;;  %v6730_v10 = vadd.f32 -7.0, %v6565_v48  ;;  %v6733_v14 = vadd.f32 -7.0, %v6569_v38  ;;  %v6736_v20 = vadd.f32 -7.0, %v6573_v9  ;;  %v6739_v63 = vadd.f32 -7.0, %v6577_v50  ;;  %v9880_v22 = vld [vmem:[#allocation18_spill] sm:$0xff] }
 0x2ee   : > { %9866 = vst [vmem:[#allocation91_spill] sm:$0xff] %v6718_v43  ;;  %9867 = vst [vmem:[#allocation92_spill] sm:$0xff] %v6721_v28  ;;  %v6742_v37 = vadd.f32 -7.0, %v6585_v35  ;;  %v6745_v15 = vadd.f32 -7.0, %v6587_v33  ;;  %v6748_v24 = vadd.f32 -7.0, %v6592_v31  ;;  %v6751_v48 = vadd.f32 -7.0, %v6606_v1 }
 0x2ef   : > { %9868 = vst [vmem:[#allocation93_spill] sm:$0xff] %v6724_v29  ;;  %9869 = vst [vmem:[#allocation94_spill] sm:$0xff] %v6727_v47  ;;  %v6754_v38 = vadd.f32 -7.0, %v6632_v60  ;;  %v6757_v9 = vadd.f32 -7.0, %v6643_v49  ;;  %v3385_v50 = vand.u32 2147483647, %v6580_v61 }
 0x2f0   : > { %9870 = vst [vmem:[#allocation95_spill] sm:$0xff] %v6730_v10  ;;  %9871 = vst [vmem:[#allocation96_spill] sm:$0xff] %v6733_v14  ;;  %v3386_v35 = vand.u32 2147483647, %v6583_v46  ;;  %v3387_v51 = vand.u32 2147483647, %v6590_v4 }
 0x2f1   : > { %9872 = vst [vmem:[#allocation97_spill] sm:$0xff] %v6748_v24  ;;  %9873 = vst [vmem:[#allocation98_spill] sm:$0xff] %v6751_v48  ;;  %v3388_v33 = vand.u32 2147483647, %v6595_v39  ;;  %v3389_v31 = vand.u32 2147483647, %v6598_v21 }
 0x2f2   : > { %9874 = vst [vmem:[#allocation99_spill] sm:$0xff] %v6754_v38  ;;  %9875 = vst [vmem:[#allocation100_spill] sm:$0xff] %v6757_v9  ;;  %v3390_v24 = vand.u32 2147483647, %v6601_v53  ;;  %v3391_v1 = vand.u32 2147483647, %v6604_v0 }
 0x2f3   : > { %v3393_v60 = vand.u32 2147483647, %v6609_v27  ;;  %v3394_v38 = vand.u32 2147483647, %v6612_v52  ;;  %v3395_v49 = vand.u32 2147483647, %v6615_v57 }
 0x2f4   : > { %v3396_v61 = vand.u32 2147483647, %v6618_v25  ;;  %v3397_v46 = vand.u32 2147483647, %v6621_v32  ;;  %v3398_v4 = vand.u32 2147483647, %v6624_v26 }
 0x2f5   : > { %v3399_v39 = vand.u32 2147483647, %v6627_v40  ;;  %v9876_v9 = vld [vmem:[#allocation55_spill] sm:$0xff]  ;;  %v3401_v53 = vand.u32 2147483647, %v6630_v62  ;;  %v9877_v48 = vld [vmem:[#allocation56_spill] sm:$0xff] }
 0x2f6   : > { %v3400_v21 = vand.u32 2147483647, %v9876_v9  ;;  %v3402_v0 = vand.u32 2147483647, %v6635_v30  ;;  %v3403_v27 = vand.u32 2147483647, %v6638_v7 }
 0x2f7   : > { %v3404_v52 = vand.u32 2147483647, %v6641_v54  ;;  %v3405_v57 = vand.u32 2147483647, %v6646_v16  ;;  %v3406_v25 = vand.u32 2147483647, %v6649_v45 }
 0x2f8   : > { %v3407_v32 = vand.u32 2147483647, %v6652_v44  ;;  %v9881_v43 = vld [vmem:[#allocation97_spill] sm:$0xff]  ;;  %v9882_v28 = vld [vmem:[#allocation98_spill] sm:$0xff]  ;;  %v9885_v10 = vld [vmem:[#allocation48_spill] sm:$0xff]  ;;  %v6824_v26 = vsub.f32 1.0, %v3385_v50 }
 0x2f9   : > { %v9883_v29 = vld [vmem:[#allocation99_spill] sm:$0xff]  ;;  %v9886_v44 = vand.u32 2147483647, %v9885_v10  ;;  %v6826_v40 = vsub.f32 1.0, %v3386_v35  ;;  %v6828_v9 = vsub.f32 1.0, %v3387_v51  ;;  %v6830_v62 = vsub.f32 1.0, %v3388_v33 }
 0x2fa   : > { %v6832_v30 = vsub.f32 1.0, %v3389_v31  ;;  %v6834_v7 = vsub.f32 1.0, %v3390_v24  ;;  %v6836_v54 = vsub.f32 1.0, %v3391_v1  ;;  %v9888_v16 = vld [vmem:[#allocation53_spill] sm:$0xff]  ;;  %v6842_v10 = vsub.f32 1.0, %v3393_v60 }
 0x2fb   : > { %v6822_v14 = vsub.f32 1.0, %v9886_v44  ;;  %v9889_v45 = vand.u32 2147483647, %v9888_v16  ;;  %v6844_v50 = vsub.f32 1.0, %v3394_v38  ;;  %v6846_v35 = vsub.f32 1.0, %v3395_v49 }
 0x2fc   : > { %9887 = vst [vmem:[#allocation55_spill] sm:$0xff] %v6836_v54  ;;  %v6848_v51 = vsub.f32 1.0, %v3396_v61  ;;  %v6850_v33 = vsub.f32 1.0, %v3397_v46  ;;  %v6852_v31 = vsub.f32 1.0, %v3398_v4  ;;  %v6854_v24 = vsub.f32 1.0, %v3399_v39  ;;  %v9892_v4 = vld [vmem:[#allocation16_spill] sm:$0xff] }
 0x2fd   : > { %v6840_v47 = vsub.f32 1.0, %v9889_v45  ;;  %v6856_v1 = vsub.f32 1.0, %v3400_v21  ;;  %v6858_v44 = vsub.f32 1.0, %v3401_v53  ;;  %v6860_v16 = vsub.f32 1.0, %v3402_v0 }
 0x2fe   : > { %9890 = vst [vmem:[#allocation56_spill] sm:$0xff] %v6854_v24  ;;  %v6862_v60 = vsub.f32 1.0, %v3403_v27  ;;  %v6864_v38 = vsub.f32 1.0, %v3404_v52  ;;  %v6866_v49 = vsub.f32 1.0, %v3405_v57  ;;  %v6868_v61 = vsub.f32 1.0, %v3406_v25 }
 0x2ff   : > { %v6870_v46 = vsub.f32 1.0, %v3407_v32  ;;  %v9893_v45 = vand.u32 2147483647, %v9892_v4  ;;  %v9894_v21 = vand.u32 2147483647, %v6655_v59  ;;  %vm2289_vm12 = vcmask 1041409  }
 0x300   : > { %v9895_v0 = vand.u32 2147483647, %v6658_v41  ;;  %v9896_v52 = vand.u32 2147483647, %v6661_v34  ;;  %v9897_v25 = vand.u32 2147483647, %v6664_v5 }
 0x301   : > { %9891 = vst [vmem:[#allocation57_spill] sm:$0xff] %v6870_v46  ;;  %v6874_v39 = vsub.f32 1.0, %v9893_v45  ;;  %v6878_v53 = vsub.f32 1.0, %v9894_v21  ;;  %v9898_v46 = vld [vmem:[#allocation88_spill] sm:$0xff]  ;;  %v9900_v59 = vand.u32 2147483647, %v6670_v58 }
 0x302   : > { %v6882_v27 = vsub.f32 1.0, %v9895_v0  ;;  %v6886_v57 = vsub.f32 1.0, %v9896_v52  ;;  %v6890_v32 = vsub.f32 1.0, %v9897_v25  ;;  %v9899_v4 = vand.u32 2147483647, %v9898_v46 }
 0x303   : > { %v6898_v21 = vsub.f32 1.0, %v9900_v59  ;;  %v9901_v41 = vand.u32 2147483647, %v6673_v23  ;;  %v9903_v34 = vand.u32 2147483647, %v9877_v48  ;;  %vm2291_vm0 = vcmask 1042434  }
 0x304   : > { %v6894_v45 = vsub.f32 1.0, %v9899_v4  ;;  %v9904_v5 = vand.u32 2147483647, %v6676_v18  ;;  %v9906_v46 = vand.u32 2147483647, %v6679_v56  ;;  %vm2293_vm8 = vcmask 1043459  }
 0x305   : > { %v6902_v0 = vsub.f32 1.0, %v9901_v41  ;;  %v6906_v52 = vsub.f32 1.0, %v9903_v34  ;;  %v9908_v58 = vand.u32 2147483647, %v6682_v8  ;;  %v9910_v23 = vand.u32 2147483647, %v6685_v17 }
 0x306   : > { %v6910_v25 = vsub.f32 1.0, %v9904_v5  ;;  %v6914_v4 = vsub.f32 1.0, %v9906_v46  ;;  %v9915_v18 = vand.u32 2147483647, %v6691_v3  ;;  %v9916_v56 = vand.u32 2147483647, %v6694_v6 }
 0x307   : > { %9902 = vst [vmem:[#allocation19_spill] sm:$0xff] %v6902_v0  ;;  %v6918_v59 = vsub.f32 1.0, %v9908_v58  ;;  %v6922_v41 = vsub.f32 1.0, %v9910_v23  ;;  %v9912_v0 = vld [vmem:[#allocation89_spill] sm:$0xff]  ;;  %v9918_v8 = vand.u32 2147483647, %v9878_v36 }
 0x308   : > { %9905 = vst [vmem:[#allocation18_spill] sm:$0xff] %v6910_v25  ;;  %9907 = vst [vmem:[#allocation97_spill] sm:$0xff] %v6914_v4  ;;  %v9913_v48 = vand.u32 2147483647, %v9912_v0  ;;  %v6930_v5 = vsub.f32 1.0, %v9915_v18  ;;  %v6934_v46 = vsub.f32 1.0, %v9916_v56 }
 0x309   : > { %9909 = vst [vmem:[#allocation98_spill] sm:$0xff] %v6918_v59  ;;  %9911 = vst [vmem:[#allocation99_spill] sm:$0xff] %v6922_v41  ;;  %v6938_v58 = vsub.f32 1.0, %v9918_v8  ;;  %v9919_v17 = vand.u32 2147483647, %v6697_v19  ;;  %v9957_v54 = vld [vmem:[#allocation57_spill] sm:$0xff] }
 0x30a   : > { %v6926_v34 = vsub.f32 1.0, %v9913_v48  ;;  %9917 = vst [vmem:[#allocation53_spill] sm:$0xff] %v6934_v46  ;;  %v9920_v0 = vand.u32 2147483647, %v6700_v2  ;;  %v9921_v3 = vand.u32 2147483647, %v6703_v12 }
 0x30b   : > { %v6942_v23 = vsub.f32 1.0, %v9919_v17  ;;  %v9923_v6 = vand.u32 2147483647, %v6706_v42  ;;  %v9925_v46 = vld [vmem:[#allocation90_spill] sm:$0xff]  ;;  %v9928_v19 = vand.u32 2147483647, %v6712_v55 }
 0x30c   : > { %9914 = vst [vmem:[#allocation48_spill] sm:$0xff] %v6926_v34  ;;  %v6946_v48 = vsub.f32 1.0, %v9920_v0  ;;  %v6950_v18 = vsub.f32 1.0, %v9921_v3  ;;  %v9926_v36 = vand.u32 2147483647, %v9925_v46  ;;  %vm2295_vm9 = vcmask 1044484  }
 0x30d   : > { %v6954_v56 = vsub.f32 1.0, %v9923_v6  ;;  %v6962_v17 = vsub.f32 1.0, %v9928_v19  ;;  %v9930_v2 = vand.u32 2147483647, %v6715_v13  ;;  %v9932_v12 = vand.u32 2147483647, %v9879_v11 }
 0x30e   : > { %9922 = vst [vmem:[#allocation16_spill] sm:$0xff] %v6950_v18  ;;  %v6958_v8 = vsub.f32 1.0, %v9926_v36  ;;  %v9934_v18 = vld [vmem:[#allocation91_spill] sm:$0xff]  ;;  %v3552_v24 = vmax.f32 %v6938_v58, 0.0  ;;  %vm2297_vm15 = vcmask 1045509   ;;  %vm2299_vm13 = vcmask 1046534  }
 0x30f   : > { %9924 = vst [vmem:[#allocation88_spill] sm:$0xff] %v6954_v56  ;;  %9929 = vst [vmem:[#allocation90_spill] sm:$0xff] %v6962_v17  ;;  %v6966_v0 = vsub.f32 1.0, %v9930_v2  ;;  %v6970_v3 = vsub.f32 1.0, %v9932_v12  ;;  %v9935_v42 = vand.u32 2147483647, %v9934_v18 }
 0x310   : > { %9927 = vst [vmem:[#allocation89_spill] sm:$0xff] %v6958_v8  ;;  %v9936_v56 = vld [vmem:[#allocation92_spill] sm:$0xff]  ;;  %v9938_v8 = vld [vmem:[#allocation93_spill] sm:$0xff]  ;;  %v9940_v17 = vld [vmem:[#allocation94_spill] sm:$0xff]  ;;  %vm2301_vm14 = vcmask 1047559  }
 0x311   : > { %9931 = vst [vmem:[#allocation101_spill] sm:$0xff] %v6966_v0  ;;  %9933 = vst [vmem:[#allocation102_spill] sm:$0xff] %v6970_v3  ;;  %v6974_v6 = vsub.f32 1.0, %v9935_v42  ;;  %v9937_v46 = vand.u32 2147483647, %v9936_v56  ;;  %v9942_v0 = vld [vmem:[#allocation95_spill] sm:$0xff] }
 0x312   : > { %v9939_v55 = vand.u32 2147483647, %v9938_v8  ;;  %v9941_v13 = vand.u32 2147483647, %v9940_v17  ;;  %v9943_v11 = vand.u32 2147483647, %v9942_v0 }
 0x313   : > { %v6978_v36 = vsub.f32 1.0, %v9937_v46  ;;  %v9944_v3 = vld [vmem:[#allocation96_spill] sm:$0xff]  ;;  %v9946_v56 = vand.u32 2147483647, %v6736_v20  ;;  %v9947_v8 = vand.u32 2147483647, %v9880_v22 }
 0x314   : > { %v6982_v19 = vsub.f32 1.0, %v9939_v55  ;;  %v6986_v2 = vsub.f32 1.0, %v9941_v13  ;;  %v6990_v12 = vsub.f32 1.0, %v9943_v11  ;;  %v9945_v18 = vand.u32 2147483647, %v9944_v3 }
 0x315   : > { %v6998_v46 = vsub.f32 1.0, %v9946_v56  ;;  %v7002_v55 = vsub.f32 1.0, %v9947_v8  ;;  %v9948_v17 = vand.u32 2147483647, %v6739_v63  ;;  %v9950_v0 = vand.u32 2147483647, %v6742_v37 }
 0x316   : > { %v6994_v42 = vsub.f32 1.0, %v9945_v18  ;;  %v9951_v3 = vand.u32 2147483647, %v6745_v15  ;;  %v9952_v20 = vand.u32 2147483647, %v9881_v43  ;;  %v9960_v25 = vld [vmem:[#allocation16_spill] sm:$0xff] }
 0x317   : > { %v7006_v13 = vsub.f32 1.0, %v9948_v17  ;;  %v7010_v11 = vsub.f32 1.0, %v9950_v0  ;;  %v9953_v22 = vand.u32 2147483647, %v9882_v28  ;;  %v9954_v63 = vand.u32 2147483647, %v9883_v29 }
 0x318   : > { %v7014_v18 = vsub.f32 1.0, %v9951_v3  ;;  %v7018_v56 = vsub.f32 1.0, %v9952_v20  ;;  %v3528_v29 = vmax.f32 %v6856_v1, 0.0  ;;  %v3536_v28 = vmax.f32 %v6874_v39, 0.0  ;;  %v9958_v3 = vld [vmem:[#allocation19_spill] sm:$0xff]  ;;  %v9962_v4 = vld [vmem:[#allocation89_spill] sm:$0xff] }
 0x319   : > { %9949 = vst [vmem:[#allocation91_spill] sm:$0xff] %v7006_v13  ;;  %v7022_v8 = vsub.f32 1.0, %v9953_v22  ;;  %v7026_v17 = vsub.f32 1.0, %v9954_v63  ;;  %v9955_v13 = vld [vmem:[#allocation100_spill] sm:$0xff]  ;;  %v3529_v63 = vmax.f32 %v6858_v44, 0.0  ;;  %v3537_v22 = vmax.f32 %v6878_v53, 0.0 }
 0x31a   : > { %v9956_v37 = vand.u32 2147483647, %v9955_v13  ;;  %v3530_v13 = vmax.f32 %v6860_v16, 0.0  ;;  %v3538_v1 = vmax.f32 %v6882_v27, 0.0  ;;  %v3539_v44 = vmax.f32 %v6886_v57, 0.0  ;;  %v9961_v27 = vld [vmem:[#allocation88_spill] sm:$0xff] }
 0x31b   : > { %v3540_v16 = vmax.f32 %v6890_v32, 0.0  ;;  %v3553_v20 = vmax.f32 %v6942_v23, 0.0  ;;  %v3554_v39 = vmax.f32 %v6946_v48, 0.0  ;;  %v3555_v53 = vmax.f32 %v9960_v25, 0.0  ;;  %v9965_v15 = vld [vmem:[#allocation102_spill] sm:$0xff] }
 0x31c   : > { %v7030_v0 = vsub.f32 1.0, %v9956_v37  ;;  %v3541_v37 = vmax.f32 %v6894_v45, 0.0  ;;  %v3560_v43 = vmax.f32 %v9965_v15, 0.0  ;;  %v3561_v58 = vmax.f32 %v6974_v6, 0.0 }
 0x31d   : > { %v3562_v23 = vmax.f32 %v6978_v36, 0.0  ;;  %v3563_v48 = vmax.f32 %v6982_v19, 0.0  ;;  %v3564_v25 = vmax.f32 %v6986_v2, 0.0  ;;  %v3565_v59 = vmax.f32 %v6990_v12, 0.0 }
 0x31e   : > { %v3566_v57 = vmax.f32 %v6994_v42, 0.0  ;;  %v3568_v45 = vmax.f32 %v7002_v55, 0.0  ;;  %v3570_v15 = vmax.f32 %v7010_v11, 0.0  ;;  %v3571_v6 = vmax.f32 %v7014_v18, 0.0 }
 0x31f   : > { %v3572_v36 = vmax.f32 %v7018_v56, 0.0  ;;  %v3573_v19 = vmax.f32 %v7022_v8, 0.0  ;;  %v3574_v2 = vmax.f32 %v7026_v17, 0.0  ;;  %v3575_v12 = vmax.f32 %v7030_v0, 0.0 }
 0x320   : > { %v9966_v34 = vld [vmem:[#allocation91_spill] sm:$0xff]  ;;  %v9967_v42 = vmax.f32 %v6822_v14, 0.0  ;;  %v9968_v32 = vmax.f32 %v6824_v26, 0.0  ;;  %v9970_v11 = vmax.f32 %v6842_v10, 0.0  ;;  %v3654_v56 = vsel %vm2289_vm12, %v3529_v63, %v3528_v29 }
 0x321   : > { %v3569_v41 = vmax.f32 %v9966_v34, 0.0  ;;  %v9969_v34 = vmax.f32 %v6840_v47, 0.0  ;;  %v3661_v8 = vsel %vm2289_vm12, %v3537_v22, %v3536_v28  ;;  %v9971_v17 = vmax.f32 %v6826_v40, 0.0 }
 0x322   : > { %v3640_v55 = vsel %vm2289_vm12, %v9968_v32, %v9967_v42  ;;  %v9972_v14 = vmax.f32 %v6844_v50, 0.0  ;;  %v3655_v32 = vsel %vm2291_vm0, %v3530_v13, %v3654_v56  ;;  %v3662_v47 = vsel %vm2291_vm0, %v3538_v1, %v3661_v8 }
 0x323   : > { %v3647_v18 = vsel %vm2289_vm12, %v9970_v11, %v9969_v34  ;;  %v3641_v0 = vsel %vm2291_vm0, %v9971_v17, %v3640_v55  ;;  %v9973_v10 = vmax.f32 %v6828_v9, 0.0  ;;  %v9974_v29 = vmax.f32 %v6846_v35, 0.0 }
 0x324   : > { %v3648_v26 = vsel %vm2291_vm0, %v9972_v14, %v3647_v18  ;;  %v9975_v40 = vmax.f32 %v6862_v60, 0.0  ;;  %v3663_v50 = vsel %vm2293_vm8, %v3539_v44, %v3662_v47  ;;  %v9976_v63 = vmax.f32 %v6830_v62, 0.0  ;;  %v9986_v14 = vld [vmem:[#allocation55_spill] sm:$0xff] }
 0x325   : > { %v3642_v42 = vsel %vm2293_vm8, %v9973_v10, %v3641_v0  ;;  %v3649_v28 = vsel %vm2293_vm8, %v9974_v29, %v3648_v26  ;;  %v9977_v1 = vmax.f32 %v6848_v51, 0.0  ;;  %v9978_v55 = vmax.f32 %v6864_v38, 0.0  ;;  %v9993_v29 = vld [vmem:[#allocation18_spill] sm:$0xff] }
 0x326   : > { %v3656_v22 = vsel %vm2293_vm8, %v9975_v40, %v3655_v32  ;;  %v3643_v13 = vsel %vm2295_vm9, %v9976_v63, %v3642_v42  ;;  %v3664_v34 = vsel %vm2295_vm9, %v3540_v16, %v3663_v50  ;;  %v9979_v60 = vmax.f32 %v6832_v30, 0.0  ;;  %v9988_v32 = vld [vmem:[#allocation56_spill] sm:$0xff] }
 0x327   : > { %v3650_v9 = vsel %vm2295_vm9, %v9977_v1, %v3649_v28  ;;  %v3657_v35 = vsel %vm2295_vm9, %v9978_v55, %v3656_v22  ;;  %v9980_v44 = vmax.f32 %v6850_v33, 0.0  ;;  %v9981_v18 = vmax.f32 %v6866_v49, 0.0  ;;  %v9997_v55 = vld [vmem:[#allocation98_spill] sm:$0xff] }
 0x328   : > { %v3644_v11 = vsel %vm2297_vm15, %v9979_v60, %v3643_v13  ;;  %v3665_v56 = vsel %vm2297_vm15, %v3541_v37, %v3664_v34  ;;  %v9982_v38 = vmax.f32 %v6834_v7, 0.0  ;;  %v9983_v16 = vmax.f32 %v6852_v31, 0.0  ;;  %v9995_v13 = vld [vmem:[#allocation97_spill] sm:$0xff] }
 0x329   : > { %v3651_v62 = vsel %vm2297_vm15, %v9980_v44, %v3650_v9  ;;  %v3658_v51 = vsel %vm2297_vm15, %v9981_v18, %v3657_v35  ;;  %v9984_v17 = vmax.f32 %v6868_v61, 0.0  ;;  %v9985_v0 = vmax.f32 %v6898_v21, 0.0 }
 0x32a   : > { %v3645_v8 = vsel %vm2299_vm13, %v9982_v38, %v3644_v11  ;;  %v3652_v30 = vsel %vm2299_vm13, %v9983_v16, %v3651_v62  ;;  %v9987_v26 = vmax.f32 %v9986_v14, 0.0  ;;  %v9989_v7 = vmax.f32 %v9988_v32, 0.0  ;;  %v10002_v11 = vld [vmem:[#allocation48_spill] sm:$0xff]  ;;  %v10008_v16 = vld [vmem:[#allocation53_spill] sm:$0xff]  ;;  %v10015_v32 = vld [vmem:[#allocation10_spill] sm:$0xff] }
 0x32b   : > { %v3659_v33 = vsel %vm2299_vm13, %v9984_v17, %v3658_v51  ;;  %v3666_v49 = vsel %vm2299_vm13, %v9985_v0, %v3665_v56  ;;  %v9990_v31 = vmax.f32 %v9957_v54, 0.0  ;;  %v9991_v61 = vmax.f32 %v9958_v3, 0.0  ;;  %v10006_v56 = vld [vmem:[#allocation90_spill] sm:$0xff]  ;;  %v10010_v17 = vld [vmem:[#allocation101_spill] sm:$0xff] }
 0x32c   : > { %v3646_v37 = vsel %vm2301_vm14, %v9987_v26, %v3645_v8  ;;  %v3653_v47 = vsel %vm2301_vm14, %v9989_v7, %v3652_v30  ;;  %v9992_v21 = vmax.f32 %v6906_v52, 0.0  ;;  %v9994_v28 = vmax.f32 %v9993_v29, 0.0  ;;  %v10014_v26 = vld [vmem:[#allocation8_spill] sm:$0xff]  ;;  %v10016_v7 = vld [vmem:[#allocation11_spill] sm:$0xff]  ;;  %v10018_v29 = vld [vmem:[#allocation13_spill] sm:$0xff] }
 0x32d   : > { %v3660_v10 = vsel %vm2301_vm14, %v9990_v31, %v3659_v33  ;;  %v3667_v42 = vsel %vm2301_vm14, %v9991_v61, %v3666_v49  ;;  %v3675_v22 = vsel %vm2289_vm12, %v3553_v20, %v3552_v24  ;;  %v3682_v50 = vsel %vm2289_vm12, %v3561_v58, %v3560_v43  ;;  %v9999_v20 = vld [vmem:[#allocation99_spill] sm:$0xff]  ;;  %v10013_v49 = vld [vmem:[#allocation9_spill] sm:$0xff]  ;;  %v10017_v61 = vld [vmem:[#allocation12_spill] sm:$0xff] }
 0x32e   : > { %v3668_v40 = vsel %vm2289_vm12, %v9994_v28, %v9992_v21  ;;  %v3689_v63 = vsel %vm2289_vm12, %v3569_v41, %v3568_v45  ;;  %v9996_v54 = vmax.f32 %v9995_v13, 0.0  ;;  %v3676_v3 = vsel %vm2291_vm0, %v3554_v39, %v3675_v22 }
 0x32f   : > { %v3683_v9 = vsel %vm2291_vm0, %v3562_v23, %v3682_v50  ;;  %v3690_v52 = vsel %vm2291_vm0, %v3570_v15, %v3689_v63  ;;  %v9998_v35 = vmax.f32 %v9997_v55, 0.0  ;;  %v3677_v24 = vsel %vm2293_vm8, %v3555_v53, %v3676_v3  ;;  %v10020_v50 = vld [vmem:[#allocation15_spill] sm:$0xff] }
 0x330   : > { %v3669_v1 = vsel %vm2291_vm0, %v9996_v54, %v3668_v40  ;;  %v3684_v43 = vsel %vm2293_vm8, %v3563_v48, %v3683_v9  ;;  %v3691_v41 = vsel %vm2293_vm8, %v3571_v6, %v3690_v52  ;;  %v10000_v45 = vmax.f32 %v9999_v20, 0.0  ;;  %v10019_v40 = vld [vmem:[#allocation14_spill] sm:$0xff] }
 0x331   : > { %v3670_v34 = vsel %vm2293_vm8, %v9998_v35, %v3669_v1  ;;  %v10001_v39 = vmax.f32 %v9961_v27, 0.0  ;;  %v3685_v15 = vsel %vm2295_vm9, %v3564_v25, %v3684_v43  ;;  %v3692_v60 = vsel %vm2295_vm9, %v3572_v36, %v3691_v41 }
 0x332   : > { %v3671_v58 = vsel %vm2295_vm9, %v10000_v45, %v3670_v34  ;;  %v10003_v44 = vmax.f32 %v10002_v11, 0.0  ;;  %v10004_v48 = vmax.f32 %v9962_v4, 0.0  ;;  %v3686_v62 = vsel %vm2297_vm15, %v3565_v59, %v3685_v15 }
 0x333   : > { %v3678_v23 = vsel %vm2295_vm9, %v10001_v39, %v3677_v24  ;;  %v3693_v18 = vsel %vm2297_vm15, %v3573_v19, %v3692_v60  ;;  %v10005_v27 = vmax.f32 %v6930_v5, 0.0  ;;  %v10007_v25 = vmax.f32 %v10006_v56, 0.0 }
 0x334   : > { %v3672_v53 = vsel %vm2297_vm15, %v10003_v44, %v3671_v58  ;;  %v3679_v6 = vsel %vm2297_vm15, %v10004_v48, %v3678_v23  ;;  %v3687_v38 = vsel %vm2299_vm13, %v3566_v57, %v3686_v62  ;;  %v3694_v8 = vsel %vm2299_vm13, %v3574_v2, %v3693_v18 }
 0x335   : > { %v3673_v51 = vsel %vm2299_vm13, %v10005_v27, %v3672_v53  ;;  %v3680_v36 = vsel %vm2299_vm13, %v10007_v25, %v3679_v6  ;;  %v10009_v4 = vmax.f32 %v10008_v16, 0.0  ;;  %v10011_v59 = vmax.f32 %v10010_v17, 0.0 }
 0x336   : > { %v10012_v5 = vmax.f32 %v6998_v46, 0.0  ;;  %v3695_v0 = vsel %vm2301_vm14, %v3575_v12, %v3694_v8  ;;  %v3704_v14 = vmul.f32 %v3646_v37, %v10013_v49  ;;  %v3705_v57 = vmul.f32 %v3653_v47, %v10014_v26 }
 0x337   : > { %v3674_v30 = vsel %vm2301_vm14, %v10009_v4, %v3673_v51  ;;  %v3681_v19 = vsel %vm2301_vm14, %v10011_v59, %v3680_v36  ;;  %v3706_v2 = vmul.f32 %v3660_v10, %v10015_v32  ;;  %v3707_v31 = vmul.f32 %v3667_v42, %v10016_v7 }
 0x338   : > { %v3688_v33 = vsel %vm2301_vm14, %v10012_v5, %v3687_v38  ;;  %v3708_v21 = vmul.f32 %v3674_v30, %v10017_v61  ;;  %v3709_v28 = vmul.f32 %v3681_v19, %v10018_v29  ;;  %v3711_v46 = vmul.f32 %v3695_v0, %v10020_v50 }
 0x339   : > { %v3710_v22 = vmul.f32 %v3688_v33, %v10019_v40  ;;  %v3712_v63 = vsel %vm10021_vm6, %v3704_v14, 0.0  ;;  %v3719_v12 = vsel %vm10022_vm5, %v3705_v57, 0.0  ;;  %v3726_v37 = vsel %vm10023_vm3, %v3706_v2, 0.0  ;;  %vm10269_vm6 = vmmov %vm9840_vm1 }
 0x33a   : > { %v3733_v47 = vsel %vm10024_vm11, %v3707_v31, 0.0  ;;  %v3713_v13 = vrot.slane %v3712_v63, 4  ;;  %v3720_v10 = vrot.slane %v3719_v12, 4  ;;  %v3727_v54 = vrot.slane %v3726_v37, 4  ;;  %vm10270_vm5 = vmmov %vm9840_vm1 }
 0x33b   : > { %v3734_v42 = vrot.slane %v3733_v47, 4  ;;  %v3740_v1 = vsel %vm10025_vm7, %v3708_v21, 0.0  ;;  %v3747_v3 = vsel %vm10026_vm4, %v3709_v28, 0.0  ;;  %v3754_v9 = vsel %vm10027_vm2, %v3710_v22, 0.0  ;;  %v10028_v28 = vld [vmem:[#allocation45_spill] sm:$0xff]  ;;  %vm10271_vm3 = vmmov %vm9840_vm1 }
 0x33c   : > { %v3761_v52 = vsel %vm9840_vm1, %v3711_v46, 0.0  ;;  %v3714_v55 = vadd.f32 %v3713_v13, %v3712_v63  ;;  %v3721_v35 = vadd.f32 %v3720_v10, %v3719_v12  ;;  %v3728_v34 = vadd.f32 %v3727_v54, %v3726_v37  ;;  %v10029_v46 = vld [vmem:[#allocation20_spill] sm:$0xff]  ;;  %v10030_v12 = vld [vmem:[#allocation21_spill] sm:$0xff]  ;;  %vm10272_vm11 = vmmov %vm9840_vm1 }
 0x33d   : > { %v3735_v24 = vadd.f32 %v3734_v42, %v3733_v47  ;;  %v3741_v43 = vrot.slane %v3740_v1, 4  ;;  %v3748_v41 = vrot.slane %v3747_v3, 4  ;;  %v3755_v20 = vrot.slane %v3754_v9, 4  ;;  %vm10273_vm7 = vmmov %vm9840_vm1 }
 0x33e   : > { %v3762_v45 = vrot.slane %v3761_v52, 4  ;;  %v3715_v58 = vrot.slane %v3714_v55, 2  ;;  %v3722_v39 = vrot.slane %v3721_v35, 2  ;;  %v3729_v23 = vrot.slane %v3728_v34, 2  ;;  %vm10274_vm4 = vmmov %vm9840_vm1 }
 0x33f   : > { %v3736_v15 = vrot.slane %v3735_v24, 2  ;;  %v3742_v60 = vadd.f32 %v3741_v43, %v3740_v1  ;;  %v3749_v11 = vadd.f32 %v3748_v41, %v3747_v3  ;;  %v3756_v44 = vadd.f32 %v3755_v20, %v3754_v9  ;;  %v10031_v1 = vld [vmem:[#allocation22_spill] sm:$0xff]  ;;  %v10032_v9 = vld [vmem:[#allocation23_spill] sm:$0xff]  ;;  %v10035_v41 = vld [vmem:[#allocation32_spill] sm:$0xff] }
 0x340   : > { %v3763_v53 = vadd.f32 %v3762_v45, %v3761_v52  ;;  %v3716_v48 = vadd.f32 %v3715_v58, %v3714_v55  ;;  %v3723_v6 = vadd.f32 %v3722_v39, %v3721_v35  ;;  %v3730_v62 = vadd.f32 %v3729_v23, %v3728_v34  ;;  %v10033_v55 = vld [vmem:[#allocation24_spill] sm:$0xff]  ;;  %v10036_v45 = vld [vmem:[#allocation46_spill] sm:$0xff]  ;;  %v10037_v23 = vld [vmem:[#allocation33_spill] sm:$0xff] }
 0x341   : > { %v3737_v18 = vadd.f32 %v3736_v15, %v3735_v24  ;;  %v3743_v27 = vrot.slane %v3742_v60, 2  ;;  %v3750_v51 = vrot.slane %v3749_v11, 2  ;;  %v3757_v56 = vrot.slane %v3756_v44, 2  ;;  %v10034_v24 = vld [vmem:[#allocation26_spill] sm:$0xff]  ;;  %vm10275_vm2 = vmmov %vm9840_vm1 }
 0x342   : > { %v3764_v25 = vrot.slane %v3763_v53, 2  ;;  %v3717_v36 = vrot.slane %v3716_v48, 1  ;;  %v3724_v38 = vrot.slane %v3723_v6, 1  ;;  %v3731_v8 = vrot.slane %v3730_v62, 1 }
 0x343   : > { %v3738_v16 = vrot.slane %v3737_v18, 1  ;;  %v3744_v4 = vadd.f32 %v3743_v27, %v3742_v60  ;;  %v3751_v30 = vadd.f32 %v3750_v51, %v3749_v11  ;;  %v3758_v17 = vadd.f32 %v3757_v56, %v3756_v44  ;;  %v10038_v60 = vld [vmem:[#allocation34_spill] sm:$0xff]  ;;  %v10039_v44 = vld [vmem:[#allocation17_spill] sm:$0xff] }
 0x344   : > { %v3765_v59 = vadd.f32 %v3764_v25, %v3763_v53  ;;  %v3718_v19 = vadd.f32 %v3717_v36, %v3716_v48  ;;  %v3725_v5 = vadd.f32 %v3724_v38, %v3723_v6  ;;  %v3732_v33 = vadd.f32 %v3731_v8, %v3730_v62  ;;  %v10040_v6 = vld [vmem:[#allocation35_spill] sm:$0xff]  ;;  %v10042_v51 = vld [vmem:[#allocation37_spill] sm:$0xff]  ;;  %v10043_v36 = vld [vmem:[#allocation38_spill] sm:$0xff] }
 0x345   : > { %v3739_v0 = vadd.f32 %v3738_v16, %v3737_v18  ;;  %v3745_v14 = vrot.slane %v3744_v4, 1  ;;  %v3752_v57 = vrot.slane %v3751_v30, 1  ;;  %v3759_v2 = vrot.slane %v3758_v17, 1  ;;  %v10041_v18 = vld [vmem:[#allocation36_spill] sm:$0xff]  ;;  %v10044_v8 = vld [vmem:[#allocation49_spill] sm:$0xff] }
 0x346   : > { %v3766_v31 = vrot.slane %v3765_v59, 1  ;;  %v3828_v21 = vsel %vm2289_vm12, %v3725_v5, %v3718_v19  ;;  %v7242_v22 = vadd.f32 -2.3333335, %v10028_v28  ;;  %v7245_v63 = vadd.f32 -2.3333335, %v10029_v46  ;;  %v10047_v5 = vld [vmem:[#allocation41_spill] sm:$0xff] }
 0x347   : > { %v7248_v37 = vadd.f32 -2.3333335, %v10030_v12  ;;  %v3746_v47 = vadd.f32 %v3745_v14, %v3744_v4  ;;  %v3753_v13 = vadd.f32 %v3752_v57, %v3751_v30  ;;  %v3760_v10 = vadd.f32 %v3759_v2, %v3758_v17  ;;  %v10045_v4 = vld [vmem:[#allocation39_spill] sm:$0xff] }
 0x348   : > { %v3767_v54 = vadd.f32 %v3766_v31, %v3765_v59  ;;  %v3829_v42 = vsel %vm2291_vm0, %v3732_v33, %v3828_v21  ;;  %v7252_v3 = vadd.f32 -2.3333335, %v10031_v1  ;;  %v7255_v52 = vadd.f32 -2.3333335, %v10032_v9  ;;  %v10046_v59 = vld [vmem:[#allocation40_spill] sm:$0xff]  ;;  %v10049_v57 = vld [vmem:[#allocation43_spill] sm:$0xff] }
 0x349   : > { %v7258_v35 = vadd.f32 -2.3333335, %v10033_v55  ;;  %v3830_v34 = vsel %vm2293_vm8, %v3739_v0, %v3829_v42  ;;  %v7262_v43 = vadd.f32 -2.3333335, %v10034_v24  ;;  %v7265_v20 = vadd.f32 -2.3333335, %v10035_v41 }
 0x34a   : > { %v7268_v58 = vadd.f32 -2.3333335, %v10036_v45  ;;  %v3831_v39 = vsel %vm2295_vm9, %v3746_v47, %v3830_v34  ;;  %v7272_v15 = vadd.f32 -2.3333335, %v10037_v23  ;;  %v7275_v11 = vadd.f32 -2.3333335, %v10038_v60 }
 0x34b   : > { %v7278_v53 = vadd.f32 -2.3333335, %v10039_v44  ;;  %v3832_v48 = vsel %vm2297_vm15, %v3753_v13, %v3831_v39  ;;  %v7282_v62 = vadd.f32 -2.3333335, %v10040_v6  ;;  %v7285_v27 = vadd.f32 -2.3333335, %v10041_v18 }
 0x34c   : > { %v7288_v56 = vadd.f32 -2.3333335, %v10042_v51  ;;  %v3833_v25 = vsel %vm2299_vm13, %v3760_v10, %v3832_v48  ;;  %v7292_v38 = vadd.f32 -2.3333335, %v10043_v36  ;;  %v7295_v16 = vadd.f32 -2.3333335, %v10044_v8 }
 0x34d   : > { %v7298_v30 = vadd.f32 -2.3333335, %v10045_v4  ;;  %v3834_v17 = vsel %vm2301_vm14, %v3767_v54, %v3833_v25  ;;  %v7302_v19 = vadd.f32 -2.3333335, %v10046_v59  ;;  %v7305_v33 = vadd.f32 -2.3333335, %v10047_v5 }
 0x34e   : > { %v10048_v0 = vld [vmem:[#allocation42_spill] sm:$0xff]  ;;  %3835 = vrot.lane.b32.xlu1 %v3834_v17, %s4442_s5  ;;  %v7311_v2 = vadd.f32 -2.3333335, %v10049_v57  ;;  %v10050_v31 = vld [vmem:[#allocation44_spill] sm:$0xff]  ;;  %v10051_v47 = vld [vmem:[#allocation25_spill] sm:$0xff] }
 0x34f   : > { %v7308_v14 = vadd.f32 -2.3333335, %v10048_v0  ;;  %v7314_v21 = vadd.f32 -2.3333335, %v10050_v31  ;;  %v7317_v13 = vadd.f32 -2.3333335, %v10051_v47 }
 0x350   : > { %v10052_v10 = vld [vmem:[#allocation47_spill] sm:$0xff]  ;;  %v10054_v39 = vld [vmem:[#allocation28_spill] sm:$0xff]  ;;  %v10055_v25 = vld [vmem:[#allocation29_spill] sm:$0xff] }
 0x351   : > { %v7320_v54 = vadd.f32 -2.3333335, %v10052_v10  ;;  %v10053_v42 = vld [vmem:[#allocation27_spill] sm:$0xff]  ;;  %v7326_v48 = vadd.f32 -2.3333335, %v10054_v39  ;;  %v10056_v57 = vld [vmem:[#allocation30_spill] sm:$0xff] }
 0x352   : > { %v7323_v34 = vadd.f32 -2.3333335, %v10053_v42  ;;  %v7329_v17 = vadd.f32 -2.3333335, %v10055_v25  ;;  %v7332_v0 = vadd.f32 -2.3333335, %v10056_v57 }
 0x353   : > { %v10057_v31 = vld [vmem:[#allocation31_spill] sm:$0xff]  ;;  %v10058_v47 = vld [vmem:[#allocation58_spill] sm:$0xff]  ;;  %v10061_v39 = vld [vmem:[#allocation60_spill] sm:$0xff] }
 0x354   : > { %v7335_v5 = vadd.f32 -2.3333335, %v10057_v31  ;;  %v7338_v59 = vadd.f32 -2.3333335, %v10058_v47  ;;  %v10059_v10 = vld [vmem:[#allocation59_spill] sm:$0xff]  ;;  %v10060_v42 = vld [vmem:[#allocation50_spill] sm:$0xff] }
 0x355   : > { %v7341_v4 = vadd.f32 -2.3333335, %v10059_v10  ;;  %v7344_v8 = vadd.f32 -2.3333335, %v10060_v42  ;;  %v7347_v36 = vadd.f32 -2.3333335, %v10061_v39 }
 0x356   : > { %v10062_v25 = vld [vmem:[#allocation61_spill] sm:$0xff]  ;;  %v10063_v57 = vld [vmem:[#allocation62_spill] sm:$0xff]  ;;  %v10064_v31 = vld [vmem:[#allocation63_spill] sm:$0xff] }
 0x357   : > { %v7350_v51 = vadd.f32 -2.3333335, %v10062_v25  ;;  %v7353_v18 = vadd.f32 -2.3333335, %v10063_v57  ;;  %v7356_v6 = vadd.f32 -2.3333335, %v10064_v31 }
 0x358   : > { %v10065_v47 = vld [vmem:[#allocation64_spill] sm:$0xff]  ;;  %v10066_v10 = vld [vmem:[#allocation65_spill] sm:$0xff]  ;;  %v10067_v42 = vld [vmem:[#allocation66_spill] sm:$0xff] }
 0x359   : > { %v7359_v44 = vadd.f32 -2.3333335, %v10065_v47  ;;  %v7362_v60 = vadd.f32 -2.3333335, %v10066_v10  ;;  %v7365_v23 = vadd.f32 -2.3333335, %v10067_v42 }
 0x35a   : > { %v10069_v39 = vld [vmem:[#allocation51_spill] sm:$0xff]  ;;  %v10073_v57 = vld [vmem:[#allocation68_spill] sm:$0xff]  ;;  %v10075_v31 = vld [vmem:[#allocation69_spill] sm:$0xff] }
 0x35b   : > { %10068 = vst [vmem:[#allocation92_spill] sm:$0xff] %v7365_v23  ;;  %v7368_v45 = vadd.f32 -2.3333335, %v10069_v39  ;;  %v10071_v25 = vld [vmem:[#allocation67_spill] sm:$0xff]  ;;  %v7374_v24 = vadd.f32 -2.3333335, %v10073_v57 }
 0x35c   : > { %v7371_v41 = vadd.f32 -2.3333335, %v10071_v25  ;;  %v7377_v55 = vadd.f32 -2.3333335, %v10075_v31  ;;  %v10077_v47 = vld [vmem:[#allocation70_spill] sm:$0xff]  ;;  %v10079_v10 = vld [vmem:[#allocation71_spill] sm:$0xff] }
 0x35d   : > { %10070 = vst [vmem:[#allocation93_spill] sm:$0xff] %v7368_v45  ;;  %10074 = vst [vmem:[#allocation95_spill] sm:$0xff] %v7374_v24  ;;  %v7380_v9 = vadd.f32 -2.3333335, %v10077_v47  ;;  %v7383_v1 = vadd.f32 -2.3333335, %v10079_v10 }
 0x35e   : > { %10072 = vst [vmem:[#allocation94_spill] sm:$0xff] %v7371_v41  ;;  %10076 = vst [vmem:[#allocation96_spill] sm:$0xff] %v7377_v55  ;;  %v10081_v42 = vld [vmem:[#allocation72_spill] sm:$0xff]  ;;  %v10082_v39 = vld [vmem:[#allocation73_spill] sm:$0xff] }
 0x35f   : > { %10078 = vst [vmem:[#allocation100_spill] sm:$0xff] %v7380_v9  ;;  %10080 = vst [vmem:[#allocation57_spill] sm:$0xff] %v7383_v1  ;;  %v7386_v12 = vadd.f32 -2.3333335, %v10081_v42  ;;  %v7389_v46 = vadd.f32 -2.3333335, %v10082_v39 }
 0x360   : > { %v10084_v25 = vld [vmem:[#allocation54_spill] sm:$0xff]  ;;  %v10087_v31 = vld [vmem:[#allocation75_spill] sm:$0xff]  ;;  %v10089_v47 = vld [vmem:[#allocation76_spill] sm:$0xff] }
 0x361   : > { %10083 = vst [vmem:[#allocation19_spill] sm:$0xff] %v7389_v46  ;;  %v7392_v28 = vadd.f32 -2.3333335, %v10084_v25  ;;  %v10085_v57 = vld [vmem:[#allocation74_spill] sm:$0xff]  ;;  %v7398_v40 = vadd.f32 -2.3333335, %v10087_v31 }
 0x362   : > { %v7395_v50 = vadd.f32 -2.3333335, %v10085_v57  ;;  %v7401_v29 = vadd.f32 -2.3333335, %v10089_v47  ;;  %v10091_v10 = vld [vmem:[#allocation77_spill] sm:$0xff]  ;;  %v10093_v42 = vld [vmem:[#allocation78_spill] sm:$0xff] }
 0x363   : > { %10088 = vst [vmem:[#allocation88_spill] sm:$0xff] %v7398_v40  ;;  %v7404_v61 = vadd.f32 -2.3333335, %v10091_v10  ;;  %v7407_v7 = vadd.f32 -2.3333335, %v10093_v42  ;;  %v10095_v39 = vld [vmem:[#allocation79_spill] sm:$0xff] }
 0x364   : > { %10086 = vst [vmem:[#allocation16_spill] sm:$0xff] %v7395_v50  ;;  %10090 = vst [vmem:[#allocation89_spill] sm:$0xff] %v7401_v29  ;;  %v7410_v32 = vadd.f32 -2.3333335, %v10095_v39  ;;  %v10097_v25 = vld [vmem:[#allocation80_spill] sm:$0xff]  ;;  %v10101_v31 = vld [vmem:[#allocation81_spill] sm:$0xff] }
 0x365   : > { %10092 = vst [vmem:[#allocation102_spill] sm:$0xff] %v7404_v61  ;;  %10094 = vst [vmem:[#allocation91_spill] sm:$0xff] %v7407_v7  ;;  %v7413_v26 = vadd.f32 -2.3333335, %v10097_v25  ;;  %v10099_v57 = vld [vmem:[#allocation52_spill] sm:$0xff]  ;;  %v10102_v47 = vld [vmem:[#allocation82_spill] sm:$0xff] }
 0x366   : > { %10096 = vst [vmem:[#allocation55_spill] sm:$0xff] %v7410_v32  ;;  %v7416_v49 = vadd.f32 -2.3333335, %v10099_v57  ;;  %v7419_v40 = vadd.f32 -2.3333335, %v10101_v31  ;;  %v10104_v10 = vld [vmem:[#allocation83_spill] sm:$0xff] }
 0x367   : > { %10098 = vst [vmem:[#allocation56_spill] sm:$0xff] %v7413_v26  ;;  %v7422_v29 = vadd.f32 -2.3333335, %v10102_v47  ;;  %v7425_v61 = vadd.f32 -2.3333335, %v10104_v10  ;;  %v10105_v42 = vld [vmem:[#allocation84_spill] sm:$0xff] }
 0x368   : > { %10100 = vst [vmem:[#allocation18_spill] sm:$0xff] %v7416_v49  ;;  %v7428_v7 = vadd.f32 -2.3333335, %v10105_v42  ;;  %v10107_v39 = vld [vmem:[#allocation85_spill] sm:$0xff]  ;;  %v10108_v25 = vld [vmem:[#allocation86_spill] sm:$0xff]  ;;  %v10110_v57 = vld [vmem:[#allocation87_spill] sm:$0xff] }
 0x369   : > { %10103 = vst [vmem:[#allocation97_spill] sm:$0xff] %v7422_v29  ;;  %v7431_v32 = vadd.f32 -2.3333335, %v10107_v39  ;;  %v7434_v26 = vadd.f32 -2.3333335, %v10108_v25  ;;  %v10118_v46 = vmov %v7422_v29  ;;  %v10174_v10 = vld [vmem:[#allocation92_spill] sm:$0xff] }
 0x36a   : > { %10106 = vst [vmem:[#allocation98_spill] sm:$0xff] %v7428_v7  ;;  %v7437_v49 = vadd.f32 -2.3333335, %v10110_v57  ;;  %v10111_v23 = vld [vmem:[#allocation88_spill] sm:$0xff]  ;;  %v10119_v50 = vmov %v7428_v7  ;;  %v10121_v42 = vand.u32 2147483647, %v7242_v22 }
 0x36b   : > { %10109 = vst [vmem:[#allocation99_spill] sm:$0xff] %v7434_v26  ;;  %v10120_v45 = vmov %v7434_v26  ;;  %v10122_v39 = vand.u32 2147483647, %v7245_v63  ;;  %v10123_v26 = vand.u32 2147483647, %v7248_v37 }
 0x36c   : > { %v10113_v41 = vld [vmem:[#allocation102_spill] sm:$0xff]  ;;  %v10114_v24 = vld [vmem:[#allocation91_spill] sm:$0xff]  ;;  %v7505_v55 = vsub.f32 1.0, %v10121_v42  ;;  %v10124_v31 = vand.u32 2147483647, %v7252_v3 }
 0x36d   : > { %v7509_v7 = vsub.f32 1.0, %v10122_v39  ;;  %v7513_v25 = vsub.f32 1.0, %v10123_v26  ;;  %v10125_v29 = vand.u32 2147483647, %v7255_v52  ;;  %v10126_v22 = vand.u32 2147483647, %v7258_v35 }
 0x36e   : > { %v10116_v9 = vld [vmem:[#allocation56_spill] sm:$0xff]  ;;  %v7517_v57 = vsub.f32 1.0, %v10124_v31  ;;  %v10128_v63 = vand.u32 2147483647, %v7262_v43  ;;  %v10130_v37 = vand.u32 2147483647, %v7265_v20 }
 0x36f   : > { %v10117_v1 = vld [vmem:[#allocation18_spill] sm:$0xff]  ;;  %v7521_v47 = vsub.f32 1.0, %v10125_v29  ;;  %v7525_v42 = vsub.f32 1.0, %v10126_v22  ;;  %v10132_v3 = vand.u32 2147483647, %v7268_v58 }
 0x370   : > { %v7529_v39 = vsub.f32 1.0, %v10128_v63  ;;  %v7533_v26 = vsub.f32 1.0, %v10130_v37  ;;  %v10133_v52 = vand.u32 2147483647, %v7272_v15  ;;  %v10134_v35 = vand.u32 2147483647, %v7275_v11 }
 0x371   : > { %10127 = vst [vmem:[#allocation48_spill] sm:$0xff] %v7525_v42  ;;  %v7537_v31 = vsub.f32 1.0, %v10132_v3  ;;  %v10135_v43 = vand.u32 2147483647, %v7278_v53  ;;  %v10136_v20 = vand.u32 2147483647, %v7282_v62 }
 0x372   : > { %10129 = vst [vmem:[#allocation90_spill] sm:$0xff] %v7529_v39  ;;  %10131 = vst [vmem:[#allocation53_spill] sm:$0xff] %v7533_v26  ;;  %v7541_v29 = vsub.f32 1.0, %v10133_v52  ;;  %v7545_v22 = vsub.f32 1.0, %v10134_v35  ;;  %v10137_v58 = vand.u32 2147483647, %v7285_v27 }
 0x373   : > { %v7549_v63 = vsub.f32 1.0, %v10135_v43  ;;  %v7553_v37 = vsub.f32 1.0, %v10136_v20  ;;  %v10139_v15 = vand.u32 2147483647, %v7288_v56  ;;  %v10141_v11 = vand.u32 2147483647, %v7292_v38 }
 0x374   : > { %v7557_v3 = vsub.f32 1.0, %v10137_v58  ;;  %v10143_v53 = vand.u32 2147483647, %v7295_v16  ;;  %v10144_v62 = vand.u32 2147483647, %v7298_v30 }
 0x375   : > { %v7561_v52 = vsub.f32 1.0, %v10139_v15  ;;  %v7565_v35 = vsub.f32 1.0, %v10141_v11  ;;  %v10145_v27 = vand.u32 2147483647, %v7302_v19  ;;  %v10146_v56 = vand.u32 2147483647, %v7305_v33 }
 0x376   : > { %10138 = vst [vmem:[#allocation101_spill] sm:$0xff] %v7557_v3  ;;  %v7569_v43 = vsub.f32 1.0, %v10143_v53  ;;  %v7573_v20 = vsub.f32 1.0, %v10144_v62  ;;  %v10147_v38 = vand.u32 2147483647, %v7308_v14 }
 0x377   : > { %10140 = vst [vmem:[#allocation88_spill] sm:$0xff] %v7561_v52  ;;  %10142 = vst [vmem:[#allocation102_spill] sm:$0xff] %v7565_v35  ;;  %v7577_v58 = vsub.f32 1.0, %v10145_v27  ;;  %v7581_v15 = vsub.f32 1.0, %v10146_v56  ;;  %v10148_v16 = vand.u32 2147483647, %v7311_v2 }
 0x378   : > { %v7585_v11 = vsub.f32 1.0, %v10147_v38  ;;  %v10150_v30 = vand.u32 2147483647, %v7314_v21  ;;  %v10152_v19 = vand.u32 2147483647, %v7317_v13 }
 0x379   : > { %v7589_v53 = vsub.f32 1.0, %v10148_v16  ;;  %v10154_v33 = vand.u32 2147483647, %v7320_v54  ;;  %v10155_v14 = vand.u32 2147483647, %v7323_v34 }
 0x37a   : > { %v7593_v62 = vsub.f32 1.0, %v10150_v30  ;;  %v7597_v27 = vsub.f32 1.0, %v10152_v19  ;;  %v10156_v2 = vand.u32 2147483647, %v7326_v48  ;;  %v10157_v21 = vand.u32 2147483647, %v7329_v17 }
 0x37b   : > { %10149 = vst [vmem:[#allocation91_spill] sm:$0xff] %v7589_v53  ;;  %v7601_v56 = vsub.f32 1.0, %v10154_v33  ;;  %v7605_v38 = vsub.f32 1.0, %v10155_v14  ;;  %v10158_v13 = vand.u32 2147483647, %v7332_v0 }
 0x37c   : > { %10151 = vst [vmem:[#allocation56_spill] sm:$0xff] %v7593_v62  ;;  %10153 = vst [vmem:[#allocation18_spill] sm:$0xff] %v7597_v27  ;;  %v7609_v16 = vsub.f32 1.0, %v10156_v2  ;;  %v7613_v30 = vsub.f32 1.0, %v10157_v21  ;;  %v10159_v54 = vand.u32 2147483647, %v7335_v5 }
 0x37d   : > { %v7617_v19 = vsub.f32 1.0, %v10158_v13  ;;  %v10160_v34 = vand.u32 2147483647, %v7338_v59  ;;  %v10161_v48 = vand.u32 2147483647, %v7341_v4 }
 0x37e   : > { %v7621_v33 = vsub.f32 1.0, %v10159_v54  ;;  %v10162_v17 = vand.u32 2147483647, %v7344_v8  ;;  %v10163_v0 = vand.u32 2147483647, %v7347_v36 }
 0x37f   : > { %v7625_v14 = vsub.f32 1.0, %v10160_v34  ;;  %v7629_v2 = vsub.f32 1.0, %v10161_v48  ;;  %v10164_v5 = vand.u32 2147483647, %v7350_v51  ;;  %v10166_v59 = vand.u32 2147483647, %v7353_v18 }
 0x380   : > { %v7633_v21 = vsub.f32 1.0, %v10162_v17  ;;  %v7637_v13 = vsub.f32 1.0, %v10163_v0  ;;  %v10168_v4 = vand.u32 2147483647, %v7356_v6  ;;  %v10170_v8 = vand.u32 2147483647, %v7359_v44 }
 0x381   : > { %v7641_v54 = vsub.f32 1.0, %v10164_v5  ;;  %v7645_v34 = vsub.f32 1.0, %v10166_v59  ;;  %v10172_v36 = vand.u32 2147483647, %v7362_v60  ;;  %v10175_v51 = vand.u32 2147483647, %v10174_v10 }
 0x382   : > { %v7649_v48 = vsub.f32 1.0, %v10168_v4  ;;  %v7653_v17 = vsub.f32 1.0, %v10170_v8 }
 0x383   : > { %10165 = vst [vmem:[#allocation97_spill] sm:$0xff] %v7641_v54  ;;  %10167 = vst [vmem:[#allocation98_spill] sm:$0xff] %v7645_v34  ;;  %v7657_v0 = vsub.f32 1.0, %v10172_v36  ;;  %v7661_v5 = vsub.f32 1.0, %v10175_v51  ;;  %v10177_v54 = vld [vmem:[#allocation93_spill] sm:$0xff]  ;;  %v10179_v34 = vld [vmem:[#allocation94_spill] sm:$0xff] }
 0x384   : > { %10169 = vst [vmem:[#allocation99_spill] sm:$0xff] %v7649_v48  ;;  %10171 = vst [vmem:[#allocation103_spill] sm:$0xff] %v7653_v17  ;;  %v10178_v18 = vand.u32 2147483647, %v10177_v54  ;;  %v10180_v6 = vand.u32 2147483647, %v10179_v34 }
 0x385   : > { %10173 = vst [vmem:[#allocation104_spill] sm:$0xff] %v7657_v0  ;;  %10176 = vst [vmem:[#allocation92_spill] sm:$0xff] %v7661_v5  ;;  %v10182_v48 = vld [vmem:[#allocation95_spill] sm:$0xff]  ;;  %v10184_v17 = vld [vmem:[#allocation96_spill] sm:$0xff]  ;;  %v10192_v34 = vand.u32 2147483647, %v7386_v12 }
 0x386   : > { %v7665_v59 = vsub.f32 1.0, %v10178_v18  ;;  %v7669_v4 = vsub.f32 1.0, %v10180_v6  ;;  %v10183_v44 = vand.u32 2147483647, %v10182_v48  ;;  %v10185_v60 = vand.u32 2147483647, %v10184_v17 }
 0x387   : > { %v10187_v0 = vld [vmem:[#allocation100_spill] sm:$0xff]  ;;  %v10189_v5 = vld [vmem:[#allocation57_spill] sm:$0xff]  ;;  %v7689_v6 = vsub.f32 1.0, %v10192_v34  ;;  %v10195_v17 = vand.u32 2147483647, %v7392_v28 }
 0x388   : > { %10181 = vst [vmem:[#allocation93_spill] sm:$0xff] %v7669_v4  ;;  %v7673_v8 = vsub.f32 1.0, %v10183_v44  ;;  %v7677_v36 = vsub.f32 1.0, %v10185_v60  ;;  %v10188_v10 = vand.u32 2147483647, %v10187_v0  ;;  %v10193_v4 = vld [vmem:[#allocation19_spill] sm:$0xff] }
 0x389   : > { %v10190_v54 = vand.u32 2147483647, %v10189_v5  ;;  %v10194_v48 = vand.u32 2147483647, %v10193_v4  ;;  %v7697_v60 = vsub.f32 1.0, %v10195_v17 }
 0x38a   : > { %10186 = vst [vmem:[#allocation94_spill] sm:$0xff] %v7677_v36  ;;  %v7681_v51 = vsub.f32 1.0, %v10188_v10  ;;  %v10197_v36 = vld [vmem:[#allocation16_spill] sm:$0xff]  ;;  %v10199_v5 = vand.u32 2147483647, %v10111_v23  ;;  %v10215_v27 = vld [vmem:[#allocation97_spill] sm:$0xff] }
 0x38b   : > { %v7685_v18 = vsub.f32 1.0, %v10190_v54  ;;  %v7693_v44 = vsub.f32 1.0, %v10194_v48  ;;  %10196 = vst [vmem:[#allocation96_spill] sm:$0xff] %v7697_v60  ;;  %v10198_v0 = vand.u32 2147483647, %v10197_v36  ;;  %v10204_v60 = vld [vmem:[#allocation55_spill] sm:$0xff] }
 0x38c   : > { %v7705_v54 = vsub.f32 1.0, %v10199_v5  ;;  %v10202_v4 = vand.u32 2147483647, %v10113_v41  ;;  %v10203_v28 = vand.u32 2147483647, %v10114_v24  ;;  %v10216_v62 = vld [vmem:[#allocation98_spill] sm:$0xff] }
 0x38d   : > { %10191 = vst [vmem:[#allocation95_spill] sm:$0xff] %v7685_v18  ;;  %v7701_v10 = vsub.f32 1.0, %v10198_v0  ;;  %v10200_v18 = vld [vmem:[#allocation89_spill] sm:$0xff]  ;;  %v10205_v36 = vand.u32 2147483647, %v10204_v60  ;;  %v10217_v35 = vld [vmem:[#allocation99_spill] sm:$0xff] }
 0x38e   : > { %v10201_v12 = vand.u32 2147483647, %v10200_v18  ;;  %v7713_v48 = vsub.f32 1.0, %v10202_v4  ;;  %v7717_v17 = vsub.f32 1.0, %v10203_v28  ;;  %v10206_v23 = vand.u32 2147483647, %v10116_v9 }
 0x38f   : > { %v7721_v0 = vsub.f32 1.0, %v10205_v36  ;;  %v10207_v18 = vand.u32 2147483647, %v10117_v1  ;;  %v10208_v41 = vand.u32 2147483647, %v7419_v40  ;;  %v10219_v53 = vld [vmem:[#allocation104_spill] sm:$0xff] }
 0x390   : > { %v7709_v34 = vsub.f32 1.0, %v10201_v12  ;;  %v7725_v5 = vsub.f32 1.0, %v10206_v23  ;;  %v10209_v24 = vand.u32 2147483647, %v10118_v46  ;;  %v10210_v60 = vand.u32 2147483647, %v7425_v61 }
 0x391   : > { %v7729_v12 = vsub.f32 1.0, %v10207_v18  ;;  %v7733_v4 = vsub.f32 1.0, %v10208_v41  ;;  %v10211_v9 = vand.u32 2147483647, %v10119_v50  ;;  %v10212_v1 = vand.u32 2147483647, %v7431_v32 }
 0x392   : > { %v7737_v28 = vsub.f32 1.0, %v10209_v24  ;;  %v7741_v36 = vsub.f32 1.0, %v10210_v60  ;;  %v10213_v40 = vand.u32 2147483647, %v10120_v45  ;;  %v10214_v46 = vand.u32 2147483647, %v7437_v49 }
 0x393   : > { %v7745_v23 = vsub.f32 1.0, %v10211_v9  ;;  %v7749_v18 = vsub.f32 1.0, %v10212_v1  ;;  %v2624_v49 = vmax.f32 %v7537_v31, 0.0  ;;  %v2626_v61 = vmax.f32 %v7545_v22, 0.0  ;;  %v10220_v52 = vld [vmem:[#allocation92_spill] sm:$0xff]  ;;  %v10221_v39 = vld [vmem:[#allocation93_spill] sm:$0xff] }
 0x394   : > { %v7753_v41 = vsub.f32 1.0, %v10213_v40  ;;  %v7757_v24 = vsub.f32 1.0, %v10214_v46  ;;  %v2625_v46 = vmax.f32 %v7541_v29, 0.0  ;;  %v2627_v60 = vmax.f32 %v7549_v63, 0.0  ;;  %v10222_v3 = vld [vmem:[#allocation94_spill] sm:$0xff]  ;;  %v10223_v42 = vld [vmem:[#allocation95_spill] sm:$0xff] }
 0x395   : > { %v2632_v45 = vmax.f32 %v7569_v43, 0.0  ;;  %v2633_v40 = vmax.f32 %v7573_v20, 0.0  ;;  %v2634_v31 = vmax.f32 %v7577_v58, 0.0  ;;  %v2635_v29 = vmax.f32 %v7581_v15, 0.0  ;;  %v10224_v26 = vld [vmem:[#allocation96_spill] sm:$0xff] }
 0x396   : > { %v2636_v22 = vmax.f32 %v7585_v11, 0.0  ;;  %v2640_v32 = vmax.f32 %v7601_v56, 0.0  ;;  %v2641_v1 = vmax.f32 %v7605_v38, 0.0  ;;  %v2642_v43 = vmax.f32 %v7609_v16, 0.0 }
 0x397   : > { %v2643_v20 = vmax.f32 %v7613_v30, 0.0  ;;  %v2644_v58 = vmax.f32 %v7617_v19, 0.0  ;;  %v2645_v15 = vmax.f32 %v7621_v33, 0.0  ;;  %v2646_v11 = vmax.f32 %v7625_v14, 0.0 }
 0x398   : > { %v2647_v63 = vmax.f32 %v7629_v2, 0.0  ;;  %v2648_v50 = vmax.f32 %v7633_v21, 0.0  ;;  %v2649_v9 = vmax.f32 %v7637_v13, 0.0  ;;  %v2650_v56 = vmax.f32 %v10215_v27, 0.0 }
 0x399   : > { %v2656_v14 = vmax.f32 %v7665_v59, 0.0  ;;  %v2657_v2 = vmax.f32 %v10221_v39, 0.0  ;;  %v2658_v21 = vmax.f32 %v7673_v8, 0.0  ;;  %v2659_v13 = vmax.f32 %v10222_v3, 0.0 }
 0x39a   : > { %v2660_v27 = vmax.f32 %v7681_v51, 0.0  ;;  %v2664_v19 = vmax.f32 %v10224_v26, 0.0  ;;  %v2665_v33 = vmax.f32 %v7701_v10, 0.0  ;;  %v2666_v59 = vmax.f32 %v7705_v54, 0.0 }
 0x39b   : > { %v2667_v39 = vmax.f32 %v7709_v34, 0.0  ;;  %v2668_v8 = vmax.f32 %v7713_v48, 0.0  ;;  %v2669_v3 = vmax.f32 %v7717_v17, 0.0  ;;  %v2672_v16 = vmax.f32 %v7729_v12, 0.0 }
 0x39c   : > { %v2673_v30 = vmax.f32 %v7733_v4, 0.0  ;;  %v2674_v26 = vmax.f32 %v7737_v28, 0.0  ;;  %v2675_v10 = vmax.f32 %v7741_v36, 0.0  ;;  %v2676_v54 = vmax.f32 %v7745_v23, 0.0 }
 0x39d   : > { %v2677_v34 = vmax.f32 %v7749_v18, 0.0  ;;  %v2678_v48 = vmax.f32 %v7753_v41, 0.0  ;;  %v2679_v17 = vmax.f32 %v7757_v24, 0.0  ;;  %v10225_v51 = vmax.f32 %v7505_v55, 0.0 }
 0x39e   : > { %v10226_v38 = vmax.f32 %v7509_v7, 0.0  ;;  %v2751_v4 = vsel %vm2289_vm12, %v2625_v46, %v2624_v49  ;;  %v10227_v28 = vmax.f32 %v7513_v25, 0.0  ;;  %v2758_v18 = vsel %vm2289_vm12, %v2633_v40, %v2632_v45 }
 0x39f   : > { %v2752_v23 = vsel %vm2291_vm0, %v2626_v61, %v2751_v4  ;;  %v2765_v41 = vsel %vm2289_vm12, %v2641_v1, %v2640_v32  ;;  %v10228_v24 = vmax.f32 %v7517_v57, 0.0  ;;  %v10229_v25 = vmax.f32 %v7521_v47, 0.0  ;;  %v10231_v1 = vld [vmem:[#allocation48_spill] sm:$0xff]  ;;  %v10235_v4 = vld [vmem:[#allocation90_spill] sm:$0xff] }
 0x3a0   : > { %v2744_v12 = vsel %vm2289_vm12, %v10226_v38, %v10225_v51  ;;  %v2753_v7 = vsel %vm2293_vm8, %v2627_v60, %v2752_v23  ;;  %v2759_v38 = vsel %vm2291_vm0, %v2634_v31, %v2758_v18  ;;  %v2766_v49 = vsel %vm2291_vm0, %v2642_v43, %v2765_v41  ;;  %v10233_v51 = vld [vmem:[#allocation101_spill] sm:$0xff]  ;;  %v10239_v23 = vld [vmem:[#allocation91_spill] sm:$0xff] }
 0x3a1   : > { %v2745_v36 = vsel %vm2291_vm0, %v10227_v28, %v2744_v12  ;;  %v10230_v61 = vmax.f32 %v7553_v37, 0.0  ;;  %v2760_v32 = vsel %vm2293_vm8, %v2635_v29, %v2759_v38  ;;  %v2767_v57 = vsel %vm2293_vm8, %v2643_v20, %v2766_v49  ;;  %v10243_v38 = vld [vmem:[#allocation102_spill] sm:$0xff] }
 0x3a2   : > { %v2746_v55 = vsel %vm2293_vm8, %v10228_v24, %v2745_v36  ;;  %v10232_v40 = vmax.f32 %v10231_v1, 0.0  ;;  %v10234_v31 = vmax.f32 %v10233_v51, 0.0  ;;  %v2761_v47 = vsel %vm2295_vm9, %v2636_v22, %v2760_v32  ;;  %v10237_v36 = vld [vmem:[#allocation88_spill] sm:$0xff]  ;;  %v10247_v32 = vld [vmem:[#allocation18_spill] sm:$0xff] }
 0x3a3   : > { %v2747_v46 = vsel %vm2295_vm9, %v10229_v25, %v2746_v55  ;;  %v2754_v45 = vsel %vm2295_vm9, %v10230_v61, %v2753_v7  ;;  %v2768_v12 = vsel %vm2295_vm9, %v2644_v58, %v2767_v57  ;;  %v10236_v37 = vmax.f32 %v10235_v4, 0.0  ;;  %v10241_v55 = vld [vmem:[#allocation53_spill] sm:$0xff]  ;;  %v10245_v25 = vld [vmem:[#allocation56_spill] sm:$0xff] }
 0x3a4   : > { %v2748_v60 = vsel %vm2297_vm15, %v10232_v40, %v2747_v46  ;;  %v2755_v43 = vsel %vm2297_vm15, %v10234_v31, %v2754_v45  ;;  %v10238_v29 = vmax.f32 %v10237_v36, 0.0  ;;  %v10240_v18 = vmax.f32 %v10239_v23, 0.0  ;;  %v10261_v23 = vld [vmem:[#allocation8_spill] sm:$0xff] }
 0x3a5   : > { %v2749_v28 = vsel %vm2299_vm13, %v10236_v37, %v2748_v60  ;;  %v2769_v24 = vsel %vm2297_vm15, %v2645_v15, %v2768_v12  ;;  %v10242_v7 = vmax.f32 %v10241_v55, 0.0  ;;  %v10244_v58 = vmax.f32 %v10243_v38, 0.0  ;;  %v10265_v38 = vld [vmem:[#allocation13_spill] sm:$0xff] }
 0x3a6   : > { %v2756_v20 = vsel %vm2299_vm13, %v10238_v29, %v2755_v43  ;;  %v2762_v41 = vsel %vm2297_vm15, %v10240_v18, %v2761_v47  ;;  %v10246_v46 = vmax.f32 %v10245_v25, 0.0  ;;  %v2770_v45 = vsel %vm2299_vm13, %v2646_v11, %v2769_v24  ;;  %v10263_v24 = vld [vmem:[#allocation11_spill] sm:$0xff]  ;;  %v10266_v25 = vld [vmem:[#allocation14_spill] sm:$0xff] }
 0x3a7   : > { %v2750_v22 = vsel %vm2301_vm14, %v10242_v7, %v2749_v28  ;;  %v2757_v49 = vsel %vm2301_vm14, %v10244_v58, %v2756_v20  ;;  %v10248_v57 = vmax.f32 %v10247_v32, 0.0  ;;  %v2771_v15 = vsel %vm2301_vm14, %v2647_v63, %v2770_v45  ;;  %v10260_v20 = vld [vmem:[#allocation9_spill] sm:$0xff]  ;;  %v10264_v7 = vld [vmem:[#allocation12_spill] sm:$0xff] }
 0x3a8   : > { %v2763_v61 = vsel %vm2299_vm13, %v10246_v46, %v2762_v41  ;;  %v2772_v40 = vsel %vm2289_vm12, %v2649_v9, %v2648_v50  ;;  %v2779_v60 = vsel %vm2289_vm12, %v2657_v2, %v2656_v14  ;;  %v2786_v43 = vsel %vm2289_vm12, %v2665_v33, %v2664_v19  ;;  %v10262_v41 = vld [vmem:[#allocation10_spill] sm:$0xff]  ;;  %v10267_v46 = vld [vmem:[#allocation15_spill] sm:$0xff] }
 0x3a9   : > { %v2764_v1 = vsel %vm2301_vm14, %v10248_v57, %v2763_v61  ;;  %v2773_v51 = vsel %vm2291_vm0, %v2650_v56, %v2772_v40  ;;  %v2780_v31 = vsel %vm2291_vm0, %v2658_v21, %v2779_v60  ;;  %v2793_v47 = vsel %vm2289_vm12, %v2673_v30, %v2672_v16  ;;  %v10251_v30 = vld [vmem:[#allocation103_spill] sm:$0xff] }
 0x3aa   : > { %v10249_v11 = vmax.f32 %v10216_v62, 0.0  ;;  %v2781_v4 = vsel %vm2293_vm8, %v2659_v13, %v2780_v31  ;;  %v2787_v63 = vsel %vm2291_vm0, %v2666_v59, %v2786_v43  ;;  %v2794_v50 = vsel %vm2291_vm0, %v2674_v26, %v2793_v47 }
 0x3ab   : > { %v10250_v9 = vmax.f32 %v10217_v35, 0.0  ;;  %v2782_v14 = vsel %vm2295_vm9, %v2660_v27, %v2781_v4  ;;  %v2788_v19 = vsel %vm2293_vm8, %v2667_v39, %v2787_v63  ;;  %v2795_v16 = vsel %vm2293_vm8, %v2675_v10, %v2794_v50 }
 0x3ac   : > { %v2774_v12 = vsel %vm2293_vm8, %v10249_v11, %v2773_v51  ;;  %v10252_v62 = vmax.f32 %v10251_v30, 0.0  ;;  %v10253_v2 = vmax.f32 %v10223_v42, 0.0  ;;  %v2789_v13 = vsel %vm2295_vm9, %v2668_v8, %v2788_v19 }
 0x3ad   : > { %v2775_v56 = vsel %vm2295_vm9, %v10250_v9, %v2774_v12  ;;  %v2796_v35 = vsel %vm2295_vm9, %v2676_v54, %v2795_v16  ;;  %v10254_v59 = vmax.f32 %v10219_v53, 0.0  ;;  %v10255_v39 = vmax.f32 %v7689_v6, 0.0 }
 0x3ae   : > { %v2776_v33 = vsel %vm2297_vm15, %v10252_v62, %v2775_v56  ;;  %v2783_v21 = vsel %vm2297_vm15, %v10253_v2, %v2782_v14  ;;  %v2790_v10 = vsel %vm2297_vm15, %v2669_v3, %v2789_v13  ;;  %v2797_v37 = vsel %vm2297_vm15, %v2677_v34, %v2796_v35 }
 0x3af   : > { %v2777_v27 = vsel %vm2299_vm13, %v10254_v59, %v2776_v33  ;;  %v2784_v26 = vsel %vm2299_vm13, %v10255_v39, %v2783_v21  ;;  %v10256_v42 = vmax.f32 %v10220_v52, 0.0  ;;  %v10257_v8 = vmax.f32 %v7693_v44, 0.0 }
 0x3b0   : > { %v10258_v53 = vmax.f32 %v7721_v0, 0.0  ;;  %v2798_v6 = vsel %vm2299_vm13, %v2678_v48, %v2797_v37  ;;  %v10259_v29 = vmax.f32 %v7725_v5, 0.0  ;;  %v2808_v52 = vmul.f32 %v2750_v22, %v10260_v20 }
 0x3b1   : > { %v2778_v28 = vsel %vm2301_vm14, %v10256_v42, %v2777_v27  ;;  %v2785_v54 = vsel %vm2301_vm14, %v10257_v8, %v2784_v26  ;;  %v2799_v34 = vsel %vm2301_vm14, %v2679_v17, %v2798_v6  ;;  %v2809_v18 = vmul.f32 %v2757_v49, %v10261_v23 }
 0x3b2   : > { %v2791_v36 = vsel %vm2299_vm13, %v10258_v53, %v2790_v10  ;;  %v2810_v44 = vmul.f32 %v2764_v1, %v10262_v41  ;;  %v2811_v55 = vmul.f32 %v2771_v15, %v10263_v24  ;;  %v2812_v0 = vmul.f32 %v2778_v28, %v10264_v7 }
 0x3b3   : > { %v2792_v3 = vsel %vm2301_vm14, %v10259_v29, %v2791_v36  ;;  %v2813_v58 = vmul.f32 %v2785_v54, %v10265_v38  ;;  %v2815_v5 = vmul.f32 %v2799_v34, %v10267_v46  ;;  %v2816_v61 = vsel %vm10268_vm10, %v2808_v52, 0.0  ;;  %vm10516_vm10 = vmmov %vm9840_vm1 }
 0x3b4   : > { %v2814_v48 = vmul.f32 %v2792_v3, %v10266_v25  ;;  %v2823_v17 = vsel %vm10269_vm6, %v2809_v18, 0.0  ;;  %v2817_v45 = vrot.slane %v2816_v61, 4  ;;  %v2830_v49 = vsel %vm10270_vm5, %v2810_v44, 0.0  ;;  %vm10517_vm6 = vmmov %vm9840_vm1 }
 0x3b5   : > { %v2824_v22 = vrot.slane %v2823_v17, 4  ;;  %v2837_v32 = vsel %vm10271_vm3, %v2811_v55, 0.0  ;;  %v2831_v57 = vrot.slane %v2830_v49, 4  ;;  %v2844_v15 = vsel %vm10272_vm11, %v2812_v0, 0.0  ;;  %vm10518_vm5 = vmmov %vm9840_vm1 }
 0x3b6   : > { %v2838_v1 = vrot.slane %v2837_v32, 4  ;;  %v2851_v40 = vsel %vm10273_vm7, %v2813_v58, 0.0  ;;  %v2818_v60 = vadd.f32 %v2817_v45, %v2816_v61  ;;  %v2845_v31 = vrot.slane %v2844_v15, 4  ;;  %v10276_v58 = vld [vmem:[#allocation45_spill] sm:$0xff]  ;;  %v10277_v45 = vld [vmem:[#allocation20_spill] sm:$0xff]  ;;  %vm10519_vm3 = vmmov %vm9840_vm1 }
 0x3b7   : > { %v2825_v51 = vadd.f32 %v2824_v22, %v2823_v17  ;;  %v2852_v43 = vrot.slane %v2851_v40, 4  ;;  %v2832_v47 = vadd.f32 %v2831_v57, %v2830_v49  ;;  %v2858_v12 = vsel %vm10274_vm4, %v2814_v48, 0.0  ;;  %vm10520_vm11 = vmmov %vm9840_vm1 }
 0x3b8   : > { %v2839_v11 = vadd.f32 %v2838_v1, %v2837_v32  ;;  %v2865_v4 = vsel %vm10275_vm2, %v2815_v5, 0.0  ;;  %v2819_v63 = vrot.slane %v2818_v60, 2  ;;  %v2846_v9 = vadd.f32 %v2845_v31, %v2844_v15  ;;  %v10278_v32 = vld [vmem:[#allocation21_spill] sm:$0xff]  ;;  %v10279_v1 = vld [vmem:[#allocation22_spill] sm:$0xff]  ;;  %vm10521_vm7 = vmmov %vm9840_vm1 }
 0x3b9   : > { %v2826_v50 = vrot.slane %v2825_v51, 2  ;;  %v2853_v56 = vadd.f32 %v2852_v43, %v2851_v40  ;;  %v2833_v14 = vrot.slane %v2832_v47, 2  ;;  %v2859_v16 = vrot.slane %v2858_v12, 4  ;;  %v10280_v40 = vld [vmem:[#allocation23_spill] sm:$0xff]  ;;  %vm10522_vm4 = vmmov %vm9840_vm1 }
 0x3ba   : > { %v2840_v19 = vrot.slane %v2839_v11, 2  ;;  %v2866_v30 = vrot.slane %v2865_v4, 4  ;;  %v2820_v62 = vadd.f32 %v2819_v63, %v2818_v60  ;;  %v2847_v2 = vrot.slane %v2846_v9, 2  ;;  %vm10628_vm2 = vmmov %vm9840_vm1 }
 0x3bb   : > { %v2827_v33 = vadd.f32 %v2826_v50, %v2825_v51  ;;  %v2854_v21 = vrot.slane %v2853_v56, 2  ;;  %v2834_v13 = vadd.f32 %v2833_v14, %v2832_v47  ;;  %v2860_v59 = vadd.f32 %v2859_v16, %v2858_v12  ;;  %v10281_v47 = vld [vmem:[#allocation24_spill] sm:$0xff]  ;;  %v10285_v16 = vld [vmem:[#allocation33_spill] sm:$0xff] }
 0x3bc   : > { %v2841_v35 = vadd.f32 %v2840_v19, %v2839_v11  ;;  %v2867_v27 = vadd.f32 %v2866_v30, %v2865_v4  ;;  %v2821_v39 = vrot.slane %v2820_v62, 1  ;;  %v2848_v10 = vadd.f32 %v2847_v2, %v2846_v9  ;;  %v10282_v4 = vld [vmem:[#allocation26_spill] sm:$0xff]  ;;  %v10283_v50 = vld [vmem:[#allocation32_spill] sm:$0xff]  ;;  %v10287_v2 = vld [vmem:[#allocation17_spill] sm:$0xff] }
 0x3bd   : > { %v2828_v26 = vrot.slane %v2827_v33, 1  ;;  %v2855_v37 = vadd.f32 %v2854_v21, %v2853_v56  ;;  %v2835_v42 = vrot.slane %v2834_v13, 1  ;;  %v2861_v8 = vrot.slane %v2860_v59, 2  ;;  %v10284_v56 = vld [vmem:[#allocation46_spill] sm:$0xff] }
 0x3be   : > { %v2842_v28 = vrot.slane %v2841_v35, 1  ;;  %v2868_v54 = vrot.slane %v2867_v27, 2  ;;  %v2822_v53 = vadd.f32 %v2821_v39, %v2820_v62  ;;  %v2849_v6 = vrot.slane %v2848_v10, 1  ;;  %v10286_v62 = vld [vmem:[#allocation34_spill] sm:$0xff] }
 0x3bf   : > { %v2829_v36 = vadd.f32 %v2828_v26, %v2827_v33  ;;  %v2856_v29 = vrot.slane %v2855_v37, 1  ;;  %v2836_v3 = vadd.f32 %v2835_v42, %v2834_v13  ;;  %v2862_v52 = vadd.f32 %v2861_v8, %v2860_v59  ;;  %v10290_v26 = vld [vmem:[#allocation37_spill] sm:$0xff] }
 0x3c0   : > { %v2843_v34 = vadd.f32 %v2842_v28, %v2841_v35  ;;  %v2869_v18 = vadd.f32 %v2868_v54, %v2867_v27  ;;  %v2850_v44 = vadd.f32 %v2849_v6, %v2848_v10  ;;  %v7947_v48 = vadd.f32 -4.666667, %v10276_v58  ;;  %v10288_v35 = vld [vmem:[#allocation35_spill] sm:$0xff]  ;;  %v10289_v27 = vld [vmem:[#allocation36_spill] sm:$0xff]  ;;  %v10292_v28 = vld [vmem:[#allocation49_spill] sm:$0xff] }
 0x3c1   : > { %v2857_v55 = vadd.f32 %v2856_v29, %v2855_v37  ;;  %v3792_v0 = vsel %vm2289_vm12, %v2829_v36, %v2822_v53  ;;  %v2863_v5 = vrot.slane %v2862_v52, 1  ;;  %v7951_v22 = vadd.f32 -4.666667, %v10277_v45  ;;  %v10291_v37 = vld [vmem:[#allocation38_spill] sm:$0xff]  ;;  %v10293_v54 = vld [vmem:[#allocation39_spill] sm:$0xff]  ;;  %v10294_v36 = vld [vmem:[#allocation40_spill] sm:$0xff] }
 0x3c2   : > { %v2870_v61 = vrot.slane %v2869_v18, 1  ;;  %v3793_v17 = vsel %vm2291_vm0, %v2836_v3, %v3792_v0  ;;  %v7955_v57 = vadd.f32 -4.666667, %v10278_v32  ;;  %v7958_v15 = vadd.f32 -4.666667, %v10279_v1  ;;  %v10295_v29 = vld [vmem:[#allocation41_spill] sm:$0xff] }
 0x3c3   : > { %v3794_v49 = vsel %vm2293_vm8, %v2843_v34, %v3793_v17  ;;  %v7961_v60 = vadd.f32 -4.666667, %v10280_v40  ;;  %v2864_v51 = vadd.f32 %v2863_v5, %v2862_v52  ;;  %v7965_v11 = vadd.f32 -4.666667, %v10281_v47  ;;  %v10296_v34 = vld [vmem:[#allocation42_spill] sm:$0xff]  ;;  %v10299_v5 = vld [vmem:[#allocation25_spill] sm:$0xff] }
 0x3c4   : > { %v2871_v31 = vadd.f32 %v2870_v61, %v2869_v18  ;;  %v3795_v43 = vsel %vm2295_vm9, %v2850_v44, %v3794_v49  ;;  %v7969_v63 = vadd.f32 -4.666667, %v10282_v4  ;;  %v7972_v9 = vadd.f32 -4.666667, %v10283_v50  ;;  %v10297_v18 = vld [vmem:[#allocation43_spill] sm:$0xff]  ;;  %v10304_v50 = vld [vmem:[#allocation30_spill] sm:$0xff] }
 0x3c5   : > { %v3796_v12 = vsel %vm2297_vm15, %v2857_v55, %v3795_v43  ;;  %v7975_v14 = vadd.f32 -4.666667, %v10284_v56  ;;  %v7979_v30 = vadd.f32 -4.666667, %v10285_v16  ;;  %v7982_v33 = vadd.f32 -4.666667, %v10286_v62 }
 0x3c6   : > { %v3797_v19 = vsel %vm2299_vm13, %v2864_v51, %v3796_v12  ;;  %v7985_v21 = vadd.f32 -4.666667, %v10287_v2  ;;  %v7989_v59 = vadd.f32 -4.666667, %v10288_v35  ;;  %v7992_v39 = vadd.f32 -4.666667, %v10289_v27 }
 0x3c7   : > { %v3798_v13 = vsel %vm2301_vm14, %v2871_v31, %v3797_v19  ;;  %v7995_v10 = vadd.f32 -4.666667, %v10290_v26  ;;  %v7998_v42 = vadd.f32 -4.666667, %v10291_v37  ;;  %v8001_v8 = vadd.f32 -4.666667, %v10292_v28 }
 0x3c8   : > { %3799 = vrot.lane.b32.xlu0 %v3798_v13, %s4443_s6  ;;  %v8004_v53 = vadd.f32 -4.666667, %v10293_v54  ;;  %v8007_v6 = vadd.f32 -4.666667, %v10294_v36  ;;  %v8010_v3 = vadd.f32 -4.666667, %v10295_v29 }
 0x3c9   : > { %v8013_v52 = vadd.f32 -4.666667, %v10296_v34  ;;  %v8016_v44 = vadd.f32 -4.666667, %v10297_v18  ;;  %v10298_v55 = vld [vmem:[#allocation44_spill] sm:$0xff]  ;;  %v10300_v17 = vld [vmem:[#allocation47_spill] sm:$0xff] }
 0x3ca   : > { %v8019_v0 = vadd.f32 -4.666667, %v10298_v55  ;;  %v8022_v61 = vadd.f32 -4.666667, %v10299_v5  ;;  %v8025_v49 = vadd.f32 -4.666667, %v10300_v17 }
 0x3cb   : > { %v10301_v51 = vld [vmem:[#allocation27_spill] sm:$0xff]  ;;  %v10302_v43 = vld [vmem:[#allocation28_spill] sm:$0xff]  ;;  %v10303_v19 = vld [vmem:[#allocation29_spill] sm:$0xff]  ;;  %v8037_v18 = vadd.f32 -4.666667, %v10304_v50 }
 0x3cc   : > { %v8028_v31 = vadd.f32 -4.666667, %v10301_v51  ;;  %v8031_v12 = vadd.f32 -4.666667, %v10302_v43  ;;  %v8034_v13 = vadd.f32 -4.666667, %v10303_v19 }
 0x3cd   : > { %v10305_v55 = vld [vmem:[#allocation31_spill] sm:$0xff]  ;;  %v10306_v5 = vld [vmem:[#allocation58_spill] sm:$0xff]  ;;  %v10309_v43 = vld [vmem:[#allocation60_spill] sm:$0xff] }
 0x3ce   : > { %v8040_v34 = vadd.f32 -4.666667, %v10305_v55  ;;  %v8043_v29 = vadd.f32 -4.666667, %v10306_v5  ;;  %v10307_v17 = vld [vmem:[#allocation59_spill] sm:$0xff]  ;;  %v10308_v51 = vld [vmem:[#allocation50_spill] sm:$0xff] }
 0x3cf   : > { %v8046_v36 = vadd.f32 -4.666667, %v10307_v17  ;;  %v8049_v54 = vadd.f32 -4.666667, %v10308_v51  ;;  %v8052_v28 = vadd.f32 -4.666667, %v10309_v43 }
 0x3d0   : > { %v10310_v19 = vld [vmem:[#allocation61_spill] sm:$0xff]  ;;  %v10311_v50 = vld [vmem:[#allocation62_spill] sm:$0xff]  ;;  %v10312_v55 = vld [vmem:[#allocation63_spill] sm:$0xff] }
 0x3d1   : > { %v8055_v37 = vadd.f32 -4.666667, %v10310_v19  ;;  %v8058_v26 = vadd.f32 -4.666667, %v10311_v50  ;;  %v8061_v27 = vadd.f32 -4.666667, %v10312_v55 }
 0x3d2   : > { %v10313_v5 = vld [vmem:[#allocation64_spill] sm:$0xff]  ;;  %v10314_v17 = vld [vmem:[#allocation65_spill] sm:$0xff]  ;;  %v10315_v51 = vld [vmem:[#allocation66_spill] sm:$0xff] }
 0x3d3   : > { %v8064_v35 = vadd.f32 -4.666667, %v10313_v5  ;;  %v8067_v2 = vadd.f32 -4.666667, %v10314_v17  ;;  %v8070_v62 = vadd.f32 -4.666667, %v10315_v51 }
 0x3d4   : > { %v10317_v43 = vld [vmem:[#allocation51_spill] sm:$0xff]  ;;  %v10321_v50 = vld [vmem:[#allocation68_spill] sm:$0xff]  ;;  %v10323_v55 = vld [vmem:[#allocation69_spill] sm:$0xff] }
 0x3d5   : > { %10316 = vst [vmem:[#allocation100_spill] sm:$0xff] %v8070_v62  ;;  %v8073_v16 = vadd.f32 -4.666667, %v10317_v43  ;;  %v10319_v19 = vld [vmem:[#allocation67_spill] sm:$0xff]  ;;  %v8079_v4 = vadd.f32 -4.666667, %v10321_v50 }
 0x3d6   : > { %v8076_v56 = vadd.f32 -4.666667, %v10319_v19  ;;  %v8082_v47 = vadd.f32 -4.666667, %v10323_v55  ;;  %v10325_v5 = vld [vmem:[#allocation70_spill] sm:$0xff]  ;;  %v10327_v17 = vld [vmem:[#allocation71_spill] sm:$0xff] }
 0x3d7   : > { %10318 = vst [vmem:[#allocation57_spill] sm:$0xff] %v8073_v16  ;;  %10322 = vst [vmem:[#allocation16_spill] sm:$0xff] %v8079_v4  ;;  %v8085_v40 = vadd.f32 -4.666667, %v10325_v5  ;;  %v8088_v1 = vadd.f32 -4.666667, %v10327_v17 }
 0x3d8   : > { %10320 = vst [vmem:[#allocation19_spill] sm:$0xff] %v8076_v56  ;;  %10324 = vst [vmem:[#allocation89_spill] sm:$0xff] %v8082_v47  ;;  %v10329_v51 = vld [vmem:[#allocation72_spill] sm:$0xff]  ;;  %v10330_v43 = vld [vmem:[#allocation73_spill] sm:$0xff] }
 0x3d9   : > { %10326 = vst [vmem:[#allocation55_spill] sm:$0xff] %v8085_v40  ;;  %10328 = vst [vmem:[#allocation97_spill] sm:$0xff] %v8088_v1  ;;  %v8091_v32 = vadd.f32 -4.666667, %v10329_v51  ;;  %v8094_v45 = vadd.f32 -4.666667, %v10330_v43 }
 0x3da   : > { %v10332_v19 = vld [vmem:[#allocation54_spill] sm:$0xff]  ;;  %v10335_v55 = vld [vmem:[#allocation75_spill] sm:$0xff]  ;;  %v10337_v5 = vld [vmem:[#allocation76_spill] sm:$0xff] }
 0x3db   : > { %10331 = vst [vmem:[#allocation98_spill] sm:$0xff] %v8094_v45  ;;  %v8097_v58 = vadd.f32 -4.666667, %v10332_v19  ;;  %v10333_v50 = vld [vmem:[#allocation74_spill] sm:$0xff]  ;;  %v8103_v25 = vadd.f32 -4.666667, %v10335_v55 }
 0x3dc   : > { %v8100_v46 = vadd.f32 -4.666667, %v10333_v50  ;;  %v8106_v38 = vadd.f32 -4.666667, %v10337_v5  ;;  %v10339_v17 = vld [vmem:[#allocation77_spill] sm:$0xff]  ;;  %v10341_v51 = vld [vmem:[#allocation78_spill] sm:$0xff] }
 0x3dd   : > { %10336 = vst [vmem:[#allocation104_spill] sm:$0xff] %v8103_v25  ;;  %v8109_v7 = vadd.f32 -4.666667, %v10339_v17  ;;  %v8112_v24 = vadd.f32 -4.666667, %v10341_v51  ;;  %v10343_v43 = vld [vmem:[#allocation79_spill] sm:$0xff] }
 0x3de   : > { %10334 = vst [vmem:[#allocation99_spill] sm:$0xff] %v8100_v46  ;;  %10338 = vst [vmem:[#allocation92_spill] sm:$0xff] %v8106_v38  ;;  %v8115_v41 = vadd.f32 -4.666667, %v10343_v43  ;;  %v10345_v19 = vld [vmem:[#allocation80_spill] sm:$0xff]  ;;  %v10349_v55 = vld [vmem:[#allocation81_spill] sm:$0xff] }
 0x3df   : > { %10340 = vst [vmem:[#allocation93_spill] sm:$0xff] %v8109_v7  ;;  %10342 = vst [vmem:[#allocation94_spill] sm:$0xff] %v8112_v24  ;;  %v8118_v23 = vadd.f32 -4.666667, %v10345_v19  ;;  %v10347_v50 = vld [vmem:[#allocation52_spill] sm:$0xff]  ;;  %v10350_v5 = vld [vmem:[#allocation82_spill] sm:$0xff] }
 0x3e0   : > { %10344 = vst [vmem:[#allocation95_spill] sm:$0xff] %v8115_v41  ;;  %v8121_v20 = vadd.f32 -4.666667, %v10347_v50  ;;  %v8124_v25 = vadd.f32 -4.666667, %v10349_v55  ;;  %v10352_v17 = vld [vmem:[#allocation83_spill] sm:$0xff] }
 0x3e1   : > { %10346 = vst [vmem:[#allocation96_spill] sm:$0xff] %v8118_v23  ;;  %v8127_v38 = vadd.f32 -4.666667, %v10350_v5  ;;  %v8130_v7 = vadd.f32 -4.666667, %v10352_v17  ;;  %v10353_v51 = vld [vmem:[#allocation84_spill] sm:$0xff] }
 0x3e2   : > { %10348 = vst [vmem:[#allocation48_spill] sm:$0xff] %v8121_v20  ;;  %v8133_v24 = vadd.f32 -4.666667, %v10353_v51  ;;  %v10355_v43 = vld [vmem:[#allocation85_spill] sm:$0xff]  ;;  %v10356_v19 = vld [vmem:[#allocation86_spill] sm:$0xff]  ;;  %v10358_v50 = vld [vmem:[#allocation87_spill] sm:$0xff] }
 0x3e3   : > { %10351 = vst [vmem:[#allocation101_spill] sm:$0xff] %v8127_v38  ;;  %v8136_v41 = vadd.f32 -4.666667, %v10355_v43  ;;  %v8139_v23 = vadd.f32 -4.666667, %v10356_v19  ;;  %v10366_v45 = vmov %v8127_v38  ;;  %v10422_v17 = vld [vmem:[#allocation100_spill] sm:$0xff] }
 0x3e4   : > { %10354 = vst [vmem:[#allocation90_spill] sm:$0xff] %v8133_v24  ;;  %v8142_v20 = vadd.f32 -4.666667, %v10358_v50  ;;  %v10359_v62 = vld [vmem:[#allocation104_spill] sm:$0xff]  ;;  %v10367_v46 = vmov %v8133_v24  ;;  %v10369_v51 = vand.u32 2147483647, %v7947_v48 }
 0x3e5   : > { %10357 = vst [vmem:[#allocation88_spill] sm:$0xff] %v8139_v23  ;;  %v10368_v16 = vmov %v8139_v23  ;;  %v10370_v43 = vand.u32 2147483647, %v7951_v22  ;;  %v10371_v23 = vand.u32 2147483647, %v7955_v57 }
 0x3e6   : > { %v10361_v56 = vld [vmem:[#allocation93_spill] sm:$0xff]  ;;  %v10362_v4 = vld [vmem:[#allocation94_spill] sm:$0xff]  ;;  %v8210_v47 = vsub.f32 1.0, %v10369_v51  ;;  %v10372_v55 = vand.u32 2147483647, %v7958_v15 }
 0x3e7   : > { %v8214_v24 = vsub.f32 1.0, %v10370_v43  ;;  %v8218_v19 = vsub.f32 1.0, %v10371_v23  ;;  %v10373_v38 = vand.u32 2147483647, %v7961_v60  ;;  %v10374_v48 = vand.u32 2147483647, %v7965_v11 }
 0x3e8   : > { %v10364_v40 = vld [vmem:[#allocation96_spill] sm:$0xff]  ;;  %v8222_v50 = vsub.f32 1.0, %v10372_v55  ;;  %v10376_v22 = vand.u32 2147483647, %v7969_v63  ;;  %v10378_v57 = vand.u32 2147483647, %v7972_v9 }
 0x3e9   : > { %v10365_v1 = vld [vmem:[#allocation48_spill] sm:$0xff]  ;;  %v8226_v5 = vsub.f32 1.0, %v10373_v38  ;;  %v8230_v51 = vsub.f32 1.0, %v10374_v48  ;;  %v10380_v15 = vand.u32 2147483647, %v7975_v14 }
 0x3ea   : > { %v8234_v43 = vsub.f32 1.0, %v10376_v22  ;;  %v8238_v23 = vsub.f32 1.0, %v10378_v57  ;;  %v10381_v60 = vand.u32 2147483647, %v7979_v30  ;;  %v10382_v11 = vand.u32 2147483647, %v7982_v33 }
 0x3eb   : > { %10375 = vst [vmem:[#allocation91_spill] sm:$0xff] %v8230_v51  ;;  %v8242_v55 = vsub.f32 1.0, %v10380_v15  ;;  %v10383_v63 = vand.u32 2147483647, %v7985_v21  ;;  %v10384_v9 = vand.u32 2147483647, %v7989_v59 }
 0x3ec   : > { %10377 = vst [vmem:[#allocation53_spill] sm:$0xff] %v8234_v43  ;;  %10379 = vst [vmem:[#allocation102_spill] sm:$0xff] %v8238_v23  ;;  %v8246_v38 = vsub.f32 1.0, %v10381_v60  ;;  %v8250_v48 = vsub.f32 1.0, %v10382_v11  ;;  %v10385_v14 = vand.u32 2147483647, %v7992_v39 }
 0x3ed   : > { %v8254_v22 = vsub.f32 1.0, %v10383_v63  ;;  %v8258_v57 = vsub.f32 1.0, %v10384_v9  ;;  %v10387_v30 = vand.u32 2147483647, %v7995_v10  ;;  %v10389_v33 = vand.u32 2147483647, %v7998_v42 }
 0x3ee   : > { %v8262_v15 = vsub.f32 1.0, %v10385_v14  ;;  %v10391_v21 = vand.u32 2147483647, %v8001_v8  ;;  %v10392_v59 = vand.u32 2147483647, %v8004_v53 }
 0x3ef   : > { %v8266_v60 = vsub.f32 1.0, %v10387_v30  ;;  %v8270_v11 = vsub.f32 1.0, %v10389_v33  ;;  %v10393_v39 = vand.u32 2147483647, %v8007_v6  ;;  %v10394_v10 = vand.u32 2147483647, %v8010_v3 }
 0x3f0   : > { %10386 = vst [vmem:[#allocation56_spill] sm:$0xff] %v8262_v15  ;;  %v8274_v63 = vsub.f32 1.0, %v10391_v21  ;;  %v8278_v9 = vsub.f32 1.0, %v10392_v59  ;;  %v10395_v42 = vand.u32 2147483647, %v8013_v52 }
 0x3f1   : > { %10388 = vst [vmem:[#allocation18_spill] sm:$0xff] %v8266_v60  ;;  %10390 = vst [vmem:[#allocation103_spill] sm:$0xff] %v8270_v11  ;;  %v8282_v14 = vsub.f32 1.0, %v10393_v39  ;;  %v8286_v30 = vsub.f32 1.0, %v10394_v10  ;;  %v10396_v8 = vand.u32 2147483647, %v8016_v44 }
 0x3f2   : > { %v8290_v33 = vsub.f32 1.0, %v10395_v42  ;;  %v10398_v53 = vand.u32 2147483647, %v8019_v0  ;;  %v10400_v6 = vand.u32 2147483647, %v8022_v61 }
 0x3f3   : > { %v8294_v21 = vsub.f32 1.0, %v10396_v8  ;;  %v10402_v3 = vand.u32 2147483647, %v8025_v49  ;;  %v10403_v52 = vand.u32 2147483647, %v8028_v31 }
 0x3f4   : > { %v8298_v59 = vsub.f32 1.0, %v10398_v53  ;;  %v8302_v39 = vsub.f32 1.0, %v10400_v6  ;;  %v10404_v44 = vand.u32 2147483647, %v8031_v12  ;;  %v10405_v0 = vand.u32 2147483647, %v8034_v13 }
 0x3f5   : > { %10397 = vst [vmem:[#allocation104_spill] sm:$0xff] %v8294_v21  ;;  %v8306_v10 = vsub.f32 1.0, %v10402_v3  ;;  %v8310_v42 = vsub.f32 1.0, %v10403_v52  ;;  %v10406_v61 = vand.u32 2147483647, %v8037_v18 }
 0x3f6   : > { %10399 = vst [vmem:[#allocation93_spill] sm:$0xff] %v8298_v59  ;;  %10401 = vst [vmem:[#allocation94_spill] sm:$0xff] %v8302_v39  ;;  %v8314_v8 = vsub.f32 1.0, %v10404_v44  ;;  %v8318_v53 = vsub.f32 1.0, %v10405_v0  ;;  %v10407_v49 = vand.u32 2147483647, %v8040_v34 }
 0x3f7   : > { %v8322_v6 = vsub.f32 1.0, %v10406_v61  ;;  %v10408_v31 = vand.u32 2147483647, %v8043_v29  ;;  %v10409_v12 = vand.u32 2147483647, %v8046_v36 }
 0x3f8   : > { %v8326_v3 = vsub.f32 1.0, %v10407_v49  ;;  %v10410_v13 = vand.u32 2147483647, %v8049_v54  ;;  %v10411_v18 = vand.u32 2147483647, %v8052_v28 }
 0x3f9   : > { %v8330_v52 = vsub.f32 1.0, %v10408_v31  ;;  %v8334_v44 = vsub.f32 1.0, %v10409_v12  ;;  %v10412_v34 = vand.u32 2147483647, %v8055_v37  ;;  %v10414_v29 = vand.u32 2147483647, %v8058_v26 }
 0x3fa   : > { %v8338_v0 = vsub.f32 1.0, %v10410_v13  ;;  %v8342_v61 = vsub.f32 1.0, %v10411_v18  ;;  %v10416_v36 = vand.u32 2147483647, %v8061_v27  ;;  %v10418_v54 = vand.u32 2147483647, %v8064_v35 }
 0x3fb   : > { %v8346_v49 = vsub.f32 1.0, %v10412_v34  ;;  %v8350_v31 = vsub.f32 1.0, %v10414_v29  ;;  %v10420_v28 = vand.u32 2147483647, %v8067_v2  ;;  %v10423_v37 = vand.u32 2147483647, %v10422_v17 }
 0x3fc   : > { %v8354_v12 = vsub.f32 1.0, %v10416_v36  ;;  %v8358_v13 = vsub.f32 1.0, %v10418_v54 }
 0x3fd   : > { %10413 = vst [vmem:[#allocation96_spill] sm:$0xff] %v8346_v49  ;;  %10415 = vst [vmem:[#allocation48_spill] sm:$0xff] %v8350_v31  ;;  %v8362_v18 = vsub.f32 1.0, %v10420_v28  ;;  %v8366_v34 = vsub.f32 1.0, %v10423_v37  ;;  %v10425_v49 = vld [vmem:[#allocation57_spill] sm:$0xff]  ;;  %v10427_v31 = vld [vmem:[#allocation19_spill] sm:$0xff] }
 0x3fe   : > { %10417 = vst [vmem:[#allocation101_spill] sm:$0xff] %v8354_v12  ;;  %10419 = vst [vmem:[#allocation90_spill] sm:$0xff] %v8358_v13  ;;  %v10426_v26 = vand.u32 2147483647, %v10425_v49  ;;  %v10428_v27 = vand.u32 2147483647, %v10427_v31 }
 0x3ff   : > { %10421 = vst [vmem:[#allocation88_spill] sm:$0xff] %v8362_v18  ;;  %10424 = vst [vmem:[#allocation100_spill] sm:$0xff] %v8366_v34  ;;  %v10430_v12 = vld [vmem:[#allocation16_spill] sm:$0xff]  ;;  %v10432_v13 = vld [vmem:[#allocation89_spill] sm:$0xff]  ;;  %v10440_v31 = vand.u32 2147483647, %v8091_v32 }
 0x400   : > { %v8370_v29 = vsub.f32 1.0, %v10426_v26  ;;  %v8374_v36 = vsub.f32 1.0, %v10428_v27  ;;  %v10431_v35 = vand.u32 2147483647, %v10430_v12  ;;  %v10433_v2 = vand.u32 2147483647, %v10432_v13 }
 0x401   : > { %v10435_v18 = vld [vmem:[#allocation55_spill] sm:$0xff]  ;;  %v10437_v34 = vld [vmem:[#allocation97_spill] sm:$0xff]  ;;  %v8394_v27 = vsub.f32 1.0, %v10440_v31  ;;  %v10443_v13 = vand.u32 2147483647, %v8097_v58 }
 0x402   : > { %10429 = vst [vmem:[#allocation57_spill] sm:$0xff] %v8374_v36  ;;  %v8378_v54 = vsub.f32 1.0, %v10431_v35  ;;  %v8382_v28 = vsub.f32 1.0, %v10433_v2  ;;  %v10436_v17 = vand.u32 2147483647, %v10435_v18  ;;  %v10441_v36 = vld [vmem:[#allocation98_spill] sm:$0xff] }
 0x403   : > { %v10438_v49 = vand.u32 2147483647, %v10437_v34  ;;  %v10442_v12 = vand.u32 2147483647, %v10441_v36  ;;  %v8402_v2 = vsub.f32 1.0, %v10443_v13 }
 0x404   : > { %10434 = vst [vmem:[#allocation19_spill] sm:$0xff] %v8382_v28  ;;  %v8386_v37 = vsub.f32 1.0, %v10436_v17  ;;  %v10445_v28 = vld [vmem:[#allocation99_spill] sm:$0xff]  ;;  %v10447_v34 = vand.u32 2147483647, %v10359_v62  ;;  %v10463_v39 = vld [vmem:[#allocation96_spill] sm:$0xff] }
 0x405   : > { %v8390_v26 = vsub.f32 1.0, %v10438_v49  ;;  %v8398_v35 = vsub.f32 1.0, %v10442_v12  ;;  %10444 = vst [vmem:[#allocation89_spill] sm:$0xff] %v8402_v2  ;;  %v10446_v18 = vand.u32 2147483647, %v10445_v28  ;;  %v10452_v2 = vld [vmem:[#allocation95_spill] sm:$0xff] }
 0x406   : > { %v8410_v49 = vsub.f32 1.0, %v10447_v34  ;;  %v10450_v36 = vand.u32 2147483647, %v10361_v56  ;;  %v10451_v58 = vand.u32 2147483647, %v10362_v4  ;;  %v10464_v59 = vld [vmem:[#allocation48_spill] sm:$0xff] }
 0x407   : > { %10439 = vst [vmem:[#allocation16_spill] sm:$0xff] %v8390_v26  ;;  %v8406_v17 = vsub.f32 1.0, %v10446_v18  ;;  %v10448_v26 = vld [vmem:[#allocation92_spill] sm:$0xff]  ;;  %v10453_v28 = vand.u32 2147483647, %v10452_v2  ;;  %v10465_v11 = vld [vmem:[#allocation101_spill] sm:$0xff] }
 0x408   : > { %v10449_v32 = vand.u32 2147483647, %v10448_v26  ;;  %v8418_v12 = vsub.f32 1.0, %v10450_v36  ;;  %v8422_v13 = vsub.f32 1.0, %v10451_v58  ;;  %v10454_v62 = vand.u32 2147483647, %v10364_v40 }
 0x409   : > { %v8426_v18 = vsub.f32 1.0, %v10453_v28  ;;  %v10455_v26 = vand.u32 2147483647, %v10365_v1  ;;  %v10456_v56 = vand.u32 2147483647, %v8124_v25  ;;  %v10467_v21 = vld [vmem:[#allocation88_spill] sm:$0xff] }
 0x40a   : > { %v8414_v31 = vsub.f32 1.0, %v10449_v32  ;;  %v8430_v34 = vsub.f32 1.0, %v10454_v62  ;;  %v10457_v4 = vand.u32 2147483647, %v10366_v45  ;;  %v10458_v2 = vand.u32 2147483647, %v8130_v7 }
 0x40b   : > { %v8434_v32 = vsub.f32 1.0, %v10455_v26  ;;  %v8438_v36 = vsub.f32 1.0, %v10456_v56  ;;  %v10459_v40 = vand.u32 2147483647, %v10367_v46  ;;  %v10460_v1 = vand.u32 2147483647, %v8136_v41 }
 0x40c   : > { %v8442_v58 = vsub.f32 1.0, %v10457_v4  ;;  %v8446_v28 = vsub.f32 1.0, %v10458_v2  ;;  %v10461_v25 = vand.u32 2147483647, %v10368_v16  ;;  %v10462_v45 = vand.u32 2147483647, %v8142_v20 }
 0x40d   : > { %v8450_v62 = vsub.f32 1.0, %v10459_v40  ;;  %v8454_v26 = vsub.f32 1.0, %v10460_v1  ;;  %v3072_v20 = vmax.f32 %v8242_v55, 0.0  ;;  %v3074_v7 = vmax.f32 %v8250_v48, 0.0  ;;  %v10468_v60 = vld [vmem:[#allocation100_spill] sm:$0xff]  ;;  %v10469_v43 = vld [vmem:[#allocation57_spill] sm:$0xff] }
 0x40e   : > { %v8458_v56 = vsub.f32 1.0, %v10461_v25  ;;  %v8462_v4 = vsub.f32 1.0, %v10462_v45  ;;  %v3073_v45 = vmax.f32 %v8246_v38, 0.0  ;;  %v3075_v2 = vmax.f32 %v8254_v22, 0.0  ;;  %v10470_v15 = vld [vmem:[#allocation19_spill] sm:$0xff]  ;;  %v10471_v51 = vld [vmem:[#allocation16_spill] sm:$0xff] }
 0x40f   : > { %v3080_v16 = vmax.f32 %v8274_v63, 0.0  ;;  %v3081_v25 = vmax.f32 %v8278_v9, 0.0  ;;  %v3082_v55 = vmax.f32 %v8282_v14, 0.0  ;;  %v3083_v38 = vmax.f32 %v8286_v30, 0.0  ;;  %v10472_v23 = vld [vmem:[#allocation89_spill] sm:$0xff] }
 0x410   : > { %v3084_v48 = vmax.f32 %v8290_v33, 0.0  ;;  %v3088_v41 = vmax.f32 %v8306_v10, 0.0  ;;  %v3089_v1 = vmax.f32 %v8310_v42, 0.0  ;;  %v3090_v63 = vmax.f32 %v8314_v8, 0.0 }
 0x411   : > { %v3091_v9 = vmax.f32 %v8318_v53, 0.0  ;;  %v3092_v14 = vmax.f32 %v8322_v6, 0.0  ;;  %v3093_v30 = vmax.f32 %v8326_v3, 0.0  ;;  %v3094_v33 = vmax.f32 %v8330_v52, 0.0 }
 0x412   : > { %v3095_v22 = vmax.f32 %v8334_v44, 0.0  ;;  %v3096_v46 = vmax.f32 %v8338_v0, 0.0  ;;  %v3097_v40 = vmax.f32 %v8342_v61, 0.0  ;;  %v3098_v10 = vmax.f32 %v10463_v39, 0.0 }
 0x413   : > { %v3104_v52 = vmax.f32 %v8370_v29, 0.0  ;;  %v3105_v44 = vmax.f32 %v10469_v43, 0.0  ;;  %v3106_v0 = vmax.f32 %v8378_v54, 0.0  ;;  %v3107_v61 = vmax.f32 %v10470_v15, 0.0 }
 0x414   : > { %v3108_v39 = vmax.f32 %v8386_v37, 0.0  ;;  %v3112_v6 = vmax.f32 %v10472_v23, 0.0  ;;  %v3113_v3 = vmax.f32 %v8406_v17, 0.0  ;;  %v3114_v29 = vmax.f32 %v8410_v49, 0.0 }
 0x415   : > { %v3115_v43 = vmax.f32 %v8414_v31, 0.0  ;;  %v3116_v54 = vmax.f32 %v8418_v12, 0.0  ;;  %v3117_v15 = vmax.f32 %v8422_v13, 0.0  ;;  %v3120_v8 = vmax.f32 %v8434_v32, 0.0 }
 0x416   : > { %v3121_v53 = vmax.f32 %v8438_v36, 0.0  ;;  %v3122_v23 = vmax.f32 %v8442_v58, 0.0  ;;  %v3123_v17 = vmax.f32 %v8446_v28, 0.0  ;;  %v3124_v49 = vmax.f32 %v8450_v62, 0.0 }
 0x417   : > { %v3125_v31 = vmax.f32 %v8454_v26, 0.0  ;;  %v3126_v12 = vmax.f32 %v8458_v56, 0.0  ;;  %v3127_v13 = vmax.f32 %v8462_v4, 0.0  ;;  %v10473_v37 = vmax.f32 %v8210_v47, 0.0 }
 0x418   : > { %v10474_v42 = vmax.f32 %v8214_v24, 0.0  ;;  %v3199_v36 = vsel %vm2289_vm12, %v3073_v45, %v3072_v20  ;;  %v10475_v58 = vmax.f32 %v8218_v19, 0.0  ;;  %v3206_v26 = vsel %vm2289_vm12, %v3081_v25, %v3080_v16 }
 0x419   : > { %v3200_v62 = vsel %vm2291_vm0, %v3074_v7, %v3199_v36  ;;  %v3213_v56 = vsel %vm2289_vm12, %v3089_v1, %v3088_v41  ;;  %v10476_v4 = vmax.f32 %v8222_v50, 0.0  ;;  %v10477_v19 = vmax.f32 %v8226_v5, 0.0  ;;  %v10479_v1 = vld [vmem:[#allocation91_spill] sm:$0xff]  ;;  %v10483_v36 = vld [vmem:[#allocation53_spill] sm:$0xff] }
 0x41a   : > { %v3192_v32 = vsel %vm2289_vm12, %v10474_v42, %v10473_v37  ;;  %v3201_v24 = vsel %vm2293_vm8, %v3075_v2, %v3200_v62  ;;  %v3207_v42 = vsel %vm2291_vm0, %v3082_v55, %v3206_v26  ;;  %v3214_v20 = vsel %vm2291_vm0, %v3090_v63, %v3213_v56  ;;  %v10481_v37 = vld [vmem:[#allocation56_spill] sm:$0xff] }
 0x41b   : > { %v3193_v28 = vsel %vm2291_vm0, %v10475_v58, %v3192_v32  ;;  %v10478_v7 = vmax.f32 %v8258_v57, 0.0  ;;  %v3208_v41 = vsel %vm2293_vm8, %v3083_v38, %v3207_v42  ;;  %v3215_v50 = vsel %vm2293_vm8, %v3091_v9, %v3214_v20  ;;  %v10487_v62 = vld [vmem:[#allocation104_spill] sm:$0xff]  ;;  %v10491_v42 = vld [vmem:[#allocation103_spill] sm:$0xff] }
 0x41c   : > { %v3194_v47 = vsel %vm2293_vm8, %v10476_v4, %v3193_v28  ;;  %v10480_v25 = vmax.f32 %v10479_v1, 0.0  ;;  %v10482_v55 = vmax.f32 %v10481_v37, 0.0  ;;  %v3209_v5 = vsel %vm2295_vm9, %v3084_v48, %v3208_v41  ;;  %v10485_v28 = vld [vmem:[#allocation18_spill] sm:$0xff] }
 0x41d   : > { %v3195_v45 = vsel %vm2295_vm9, %v10477_v19, %v3194_v47  ;;  %v3202_v16 = vsel %vm2295_vm9, %v10478_v7, %v3201_v24  ;;  %v3216_v32 = vsel %vm2295_vm9, %v3092_v14, %v3215_v50  ;;  %v10484_v57 = vmax.f32 %v10483_v36, 0.0  ;;  %v10489_v47 = vld [vmem:[#allocation102_spill] sm:$0xff]  ;;  %v10493_v19 = vld [vmem:[#allocation93_spill] sm:$0xff] }
 0x41e   : > { %v3196_v2 = vsel %vm2297_vm15, %v10480_v25, %v3195_v45  ;;  %v3203_v63 = vsel %vm2297_vm15, %v10482_v55, %v3202_v16  ;;  %v10486_v38 = vmax.f32 %v10485_v28, 0.0  ;;  %v10488_v26 = vmax.f32 %v10487_v62, 0.0  ;;  %v10495_v41 = vld [vmem:[#allocation94_spill] sm:$0xff]  ;;  %v10509_v62 = vld [vmem:[#allocation8_spill] sm:$0xff] }
 0x41f   : > { %v3197_v58 = vsel %vm2299_vm13, %v10484_v57, %v3196_v2  ;;  %v3217_v4 = vsel %vm2297_vm15, %v3093_v30, %v3216_v32  ;;  %v10490_v24 = vmax.f32 %v10489_v47, 0.0  ;;  %v10492_v14 = vmax.f32 %v10491_v42, 0.0  ;;  %v10513_v42 = vld [vmem:[#allocation13_spill] sm:$0xff] }
 0x420   : > { %v3204_v9 = vsel %vm2299_vm13, %v10486_v38, %v3203_v63  ;;  %v3210_v56 = vsel %vm2297_vm15, %v10488_v26, %v3209_v5  ;;  %v10494_v45 = vmax.f32 %v10493_v19, 0.0  ;;  %v3218_v16 = vsel %vm2299_vm13, %v3094_v33, %v3217_v4  ;;  %v10511_v4 = vld [vmem:[#allocation11_spill] sm:$0xff]  ;;  %v10514_v19 = vld [vmem:[#allocation14_spill] sm:$0xff] }
 0x421   : > { %v3198_v48 = vsel %vm2301_vm14, %v10490_v24, %v3197_v58  ;;  %v3205_v20 = vsel %vm2301_vm14, %v10492_v14, %v3204_v9  ;;  %v10496_v50 = vmax.f32 %v10495_v41, 0.0  ;;  %v3219_v30 = vsel %vm2301_vm14, %v3095_v22, %v3218_v16  ;;  %v10508_v9 = vld [vmem:[#allocation9_spill] sm:$0xff]  ;;  %v10512_v24 = vld [vmem:[#allocation12_spill] sm:$0xff] }
 0x422   : > { %v3211_v7 = vsel %vm2299_vm13, %v10494_v45, %v3210_v56  ;;  %v3220_v25 = vsel %vm2289_vm12, %v3097_v40, %v3096_v46  ;;  %v3227_v2 = vsel %vm2289_vm12, %v3105_v44, %v3104_v52  ;;  %v3234_v63 = vsel %vm2289_vm12, %v3113_v3, %v3112_v6  ;;  %v10510_v56 = vld [vmem:[#allocation10_spill] sm:$0xff]  ;;  %v10515_v45 = vld [vmem:[#allocation15_spill] sm:$0xff] }
 0x423   : > { %v3212_v1 = vsel %vm2301_vm14, %v10496_v50, %v3211_v7  ;;  %v3221_v37 = vsel %vm2291_vm0, %v3098_v10, %v3220_v25  ;;  %v3228_v55 = vsel %vm2291_vm0, %v3106_v0, %v3227_v2  ;;  %v3241_v5 = vsel %vm2289_vm12, %v3121_v53, %v3120_v8  ;;  %v10499_v53 = vld [vmem:[#allocation90_spill] sm:$0xff] }
 0x424   : > { %v10497_v33 = vmax.f32 %v10464_v59, 0.0  ;;  %v3229_v36 = vsel %vm2293_vm8, %v3107_v61, %v3228_v55  ;;  %v3235_v22 = vsel %vm2291_vm0, %v3114_v29, %v3234_v63  ;;  %v3242_v46 = vsel %vm2291_vm0, %v3122_v23, %v3241_v5 }
 0x425   : > { %v10498_v40 = vmax.f32 %v10465_v11, 0.0  ;;  %v3230_v52 = vsel %vm2295_vm9, %v3108_v39, %v3229_v36  ;;  %v3236_v6 = vsel %vm2293_vm8, %v3115_v43, %v3235_v22  ;;  %v3243_v8 = vsel %vm2293_vm8, %v3123_v17, %v3242_v46 }
 0x426   : > { %v3222_v32 = vsel %vm2293_vm8, %v10497_v33, %v3221_v37  ;;  %v10500_v59 = vmax.f32 %v10499_v53, 0.0  ;;  %v10501_v44 = vmax.f32 %v10471_v51, 0.0  ;;  %v3237_v61 = vsel %vm2295_vm9, %v3116_v54, %v3236_v6 }
 0x427   : > { %v3223_v10 = vsel %vm2295_vm9, %v10498_v40, %v3222_v32  ;;  %v3244_v11 = vsel %vm2295_vm9, %v3124_v49, %v3243_v8  ;;  %v10502_v29 = vmax.f32 %v10467_v21, 0.0  ;;  %v10503_v43 = vmax.f32 %v8394_v27, 0.0 }
 0x428   : > { %v3224_v3 = vsel %vm2297_vm15, %v10500_v59, %v3223_v10  ;;  %v3231_v0 = vsel %vm2297_vm15, %v10501_v44, %v3230_v52  ;;  %v3238_v17 = vsel %vm2297_vm15, %v3117_v15, %v3237_v61  ;;  %v3245_v57 = vsel %vm2297_vm15, %v3125_v31, %v3244_v11 }
 0x429   : > { %v3225_v39 = vsel %vm2299_vm13, %v10502_v29, %v3224_v3  ;;  %v3232_v23 = vsel %vm2299_vm13, %v10503_v43, %v3231_v0  ;;  %v10504_v51 = vmax.f32 %v10468_v60, 0.0  ;;  %v10505_v54 = vmax.f32 %v8398_v35, 0.0 }
 0x42a   : > { %v10506_v21 = vmax.f32 %v8426_v18, 0.0  ;;  %v3246_v27 = vsel %vm2299_vm13, %v3126_v12, %v3245_v57  ;;  %v10507_v38 = vmax.f32 %v8430_v34, 0.0  ;;  %v3256_v60 = vmul.f32 %v3198_v48, %v10508_v9  ;;  %v10574_v9 = vld [vmem:[#allocation77_spill] sm:$0xff] }
 0x42b   : > { %v3226_v58 = vsel %vm2301_vm14, %v10504_v51, %v3225_v39  ;;  %v3233_v49 = vsel %vm2301_vm14, %v10505_v54, %v3232_v23  ;;  %v3247_v31 = vsel %vm2301_vm14, %v3127_v13, %v3246_v27  ;;  %v3257_v26 = vmul.f32 %v3205_v20, %v10509_v62  ;;  %v10576_v62 = vld [vmem:[#allocation79_spill] sm:$0xff] }
 0x42c   : > { %v3239_v28 = vsel %vm2299_vm13, %v10506_v21, %v3238_v17  ;;  %v3258_v35 = vmul.f32 %v3212_v1, %v10510_v56  ;;  %v3259_v47 = vmul.f32 %v3219_v30, %v10511_v4  ;;  %v3260_v18 = vmul.f32 %v3226_v58, %v10512_v24  ;;  %v10572_v4 = vld [vmem:[#allocation75_spill] sm:$0xff]  ;;  %v10573_v24 = vld [vmem:[#allocation76_spill] sm:$0xff]  ;;  %v10575_v56 = vld [vmem:[#allocation78_spill] sm:$0xff] }
 0x42d   : > { %v3240_v15 = vsel %vm2301_vm14, %v10507_v38, %v3239_v28  ;;  %v3261_v14 = vmul.f32 %v3233_v49, %v10513_v42  ;;  %v3263_v34 = vmul.f32 %v3247_v31, %v10515_v45  ;;  %v3264_v7 = vsel %vm9840_vm1, %v3256_v60, 0.0  ;;  %v10569_v45 = vld [vmem:[#allocation73_spill] sm:$0xff]  ;;  %v10570_v42 = vld [vmem:[#allocation54_spill] sm:$0xff] }
 0x42e   : > { %v3262_v12 = vmul.f32 %v3240_v15, %v10514_v19  ;;  %v3271_v13 = vsel %vm10516_vm10, %v3257_v26, 0.0  ;;  %v3265_v16 = vrot.slane %v3264_v7, 4  ;;  %v3278_v20 = vsel %vm10517_vm6, %v3258_v35, 0.0  ;;  %v10571_v19 = vld [vmem:[#allocation74_spill] sm:$0xff]  ;;  %vm10630_vm10 = vmmov %vm9840_vm1 }
 0x42f   : > { %v3272_v48 = vrot.slane %v3271_v13, 4  ;;  %v3285_v41 = vsel %vm10518_vm5, %v3259_v47, 0.0  ;;  %v3279_v50 = vrot.slane %v3278_v20, 4  ;;  %v3292_v30 = vsel %vm10519_vm3, %v3260_v18, 0.0  ;;  %vm10634_vm6 = vmmov %vm9840_vm1 }
 0x430   : > { %v3286_v1 = vrot.slane %v3285_v41, 4  ;;  %v3299_v25 = vsel %vm10520_vm11, %v3261_v14, 0.0  ;;  %v3266_v2 = vadd.f32 %v3265_v16, %v3264_v7  ;;  %v3293_v55 = vrot.slane %v3292_v30, 4  ;;  %vm10636_vm5 = vmmov %vm9840_vm1 }
 0x431   : > { %v3273_v37 = vadd.f32 %v3272_v48, %v3271_v13  ;;  %v3300_v63 = vrot.slane %v3299_v25, 4  ;;  %v3280_v5 = vadd.f32 %v3279_v50, %v3278_v20  ;;  %v3306_v32 = vsel %vm10521_vm7, %v3262_v12, 0.0  ;;  %vm10637_vm3 = vmmov %vm9840_vm1 }
 0x432   : > { %v3287_v33 = vadd.f32 %v3286_v1, %v3285_v41  ;;  %v3313_v36 = vsel %vm10522_vm4, %v3263_v34, 0.0  ;;  %v3267_v22 = vrot.slane %v3266_v2, 2  ;;  %v3294_v40 = vadd.f32 %v3293_v55, %v3292_v30  ;;  %v10523_v1 = vld [vmem:[#allocation45_spill] sm:$0xff]  ;;  %vm10639_vm11 = vmmov %vm9840_vm1 }
 0x433   : > { %v3274_v46 = vrot.slane %v3273_v37, 2  ;;  %v3301_v10 = vadd.f32 %v3300_v63, %v3299_v25  ;;  %v3281_v52 = vrot.slane %v3280_v5, 2  ;;  %v3307_v8 = vrot.slane %v3306_v32, 4  ;;  %v10524_v25 = vld [vmem:[#allocation20_spill] sm:$0xff]  ;;  %v10526_v63 = vld [vmem:[#allocation22_spill] sm:$0xff]  ;;  %vm10640_vm7 = vmmov %vm9840_vm1 }
 0x434   : > { %v3288_v6 = vrot.slane %v3287_v33, 2  ;;  %v3314_v53 = vrot.slane %v3313_v36, 4  ;;  %v3268_v59 = vadd.f32 %v3267_v22, %v3266_v2  ;;  %v3295_v44 = vrot.slane %v3294_v40, 2 }
 0x435   : > { %v3275_v3 = vadd.f32 %v3274_v46, %v3273_v37  ;;  %v3302_v0 = vrot.slane %v3301_v10, 2  ;;  %v3282_v61 = vadd.f32 %v3281_v52, %v3280_v5  ;;  %v3308_v29 = vadd.f32 %v3307_v8, %v3306_v32  ;;  %v10525_v37 = vld [vmem:[#allocation21_spill] sm:$0xff]  ;;  %v10529_v46 = vld [vmem:[#allocation26_spill] sm:$0xff] }
 0x436   : > { %v3289_v11 = vadd.f32 %v3288_v6, %v3287_v33  ;;  %v3315_v39 = vadd.f32 %v3314_v53, %v3313_v36  ;;  %v3269_v43 = vrot.slane %v3268_v59, 1  ;;  %v3296_v17 = vadd.f32 %v3295_v44, %v3294_v40  ;;  %v10527_v33 = vld [vmem:[#allocation23_spill] sm:$0xff]  ;;  %v10528_v36 = vld [vmem:[#allocation24_spill] sm:$0xff]  ;;  %v10531_v6 = vld [vmem:[#allocation33_spill] sm:$0xff] }
 0x437   : > { %v3276_v23 = vrot.slane %v3275_v3, 1  ;;  %v3303_v57 = vadd.f32 %v3302_v0, %v3301_v10  ;;  %v3283_v51 = vrot.slane %v3282_v61, 1  ;;  %v3309_v54 = vrot.slane %v3308_v29, 2  ;;  %v10530_v10 = vld [vmem:[#allocation46_spill] sm:$0xff]  ;;  %v10534_v0 = vld [vmem:[#allocation35_spill] sm:$0xff] }
 0x438   : > { %v3290_v58 = vrot.slane %v3289_v11, 1  ;;  %v3316_v49 = vrot.slane %v3315_v39, 2  ;;  %v3270_v21 = vadd.f32 %v3269_v43, %v3268_v59  ;;  %v3297_v27 = vrot.slane %v3296_v17, 1  ;;  %v10532_v53 = vld [vmem:[#allocation34_spill] sm:$0xff] }
 0x439   : > { %v3277_v28 = vadd.f32 %v3276_v23, %v3275_v3  ;;  %v3304_v38 = vrot.slane %v3303_v57, 1  ;;  %v3284_v15 = vadd.f32 %v3283_v51, %v3282_v61  ;;  %v3310_v31 = vadd.f32 %v3309_v54, %v3308_v29  ;;  %v10533_v3 = vld [vmem:[#allocation17_spill] sm:$0xff]  ;;  %v10537_v23 = vld [vmem:[#allocation38_spill] sm:$0xff] }
 0x43a   : > { %v3317_v60 = vadd.f32 %v3316_v49, %v3315_v39  ;;  %v3291_v26 = vadd.f32 %v3290_v58, %v3289_v11  ;;  %v3298_v35 = vadd.f32 %v3297_v27, %v3296_v17  ;;  %v2033_v30 = vand.u32 2147483647, %v10523_v1  ;;  %v10535_v11 = vld [vmem:[#allocation36_spill] sm:$0xff]  ;;  %v10536_v39 = vld [vmem:[#allocation37_spill] sm:$0xff]  ;;  %v10539_v58 = vld [vmem:[#allocation39_spill] sm:$0xff] }
 0x43b   : > { %v3810_v47 = vsel %vm2289_vm12, %v3277_v28, %v3270_v21  ;;  %v3311_v18 = vrot.slane %v3310_v31, 1  ;;  %v3305_v34 = vadd.f32 %v3304_v38, %v3303_v57  ;;  %v2034_v2 = vand.u32 2147483647, %v10524_v25  ;;  %v10538_v57 = vld [vmem:[#allocation49_spill] sm:$0xff]  ;;  %v10540_v49 = vld [vmem:[#allocation40_spill] sm:$0xff]  ;;  %v10542_v38 = vld [vmem:[#allocation42_spill] sm:$0xff] }
 0x43c   : > { %v3318_v14 = vrot.slane %v3317_v60, 1  ;;  %v3811_v12 = vsel %vm2291_vm0, %v3284_v15, %v3810_v47  ;;  %v2035_v55 = vand.u32 2147483647, %v10525_v37  ;;  %v2036_v5 = vand.u32 2147483647, %v10526_v63  ;;  %v10541_v28 = vld [vmem:[#allocation41_spill] sm:$0xff] }
 0x43d   : > { %v3812_v7 = vsel %vm2293_vm8, %v3291_v26, %v3811_v12  ;;  %v3312_v13 = vadd.f32 %v3311_v18, %v3310_v31  ;;  %v2037_v32 = vand.u32 2147483647, %v10527_v33  ;;  %v2038_v22 = vand.u32 2147483647, %v10528_v36  ;;  %v10543_v31 = vld [vmem:[#allocation43_spill] sm:$0xff]  ;;  %v10544_v26 = vld [vmem:[#allocation44_spill] sm:$0xff] }
 0x43e   : > { %v3813_v16 = vsel %vm2295_vm9, %v3298_v35, %v3812_v7  ;;  %v3319_v48 = vadd.f32 %v3318_v14, %v3317_v60  ;;  %v2039_v40 = vand.u32 2147483647, %v10529_v46  ;;  %v2041_v52 = vand.u32 2147483647, %v10530_v10  ;;  %v10545_v47 = vld [vmem:[#allocation25_spill] sm:$0xff]  ;;  %v10546_v14 = vld [vmem:[#allocation47_spill] sm:$0xff] }
 0x43f   : > { %v3814_v20 = vsel %vm2297_vm15, %v3305_v34, %v3813_v16  ;;  %v2042_v8 = vand.u32 2147483647, %v10531_v6  ;;  %v2043_v59 = vand.u32 2147483647, %v10532_v53  ;;  %v2044_v44 = vand.u32 2147483647, %v10533_v3 }
 0x440   : > { %v3815_v41 = vsel %vm2299_vm13, %v3312_v13, %v3814_v20  ;;  %v2045_v61 = vand.u32 2147483647, %v10534_v0  ;;  %v2046_v29 = vand.u32 2147483647, %v10535_v11  ;;  %v2047_v43 = vand.u32 2147483647, %v10536_v39 }
 0x441   : > { %v3816_v50 = vsel %vm2301_vm14, %v3319_v48, %v3815_v41  ;;  %v2048_v17 = vand.u32 2147483647, %v10537_v23  ;;  %v2049_v51 = vand.u32 2147483647, %v10538_v57  ;;  %v2050_v54 = vand.u32 2147483647, %v10539_v58 }
 0x442   : > { %3817 = vrot.lane.b32.xlu0 %v3816_v50, %s4444_s28  ;;  %v2051_v21 = vand.u32 2147483647, %v10540_v49  ;;  %v2052_v27 = vand.u32 2147483647, %v10541_v28  ;;  %v2053_v15 = vand.u32 2147483647, %v10542_v38 }
 0x443   : > { %v2054_v60 = vand.u32 2147483647, %v10543_v31  ;;  %v2055_v35 = vand.u32 2147483647, %v10544_v26  ;;  %v2056_v18 = vand.u32 2147483647, %v10545_v47 }
 0x444   : > { %v2057_v12 = vand.u32 2147483647, %v10546_v14  ;;  %v10547_v34 = vld [vmem:[#allocation27_spill] sm:$0xff]  ;;  %v10548_v13 = vld [vmem:[#allocation28_spill] sm:$0xff]  ;;  %v10549_v48 = vld [vmem:[#allocation29_spill] sm:$0xff] }
 0x445   : > { %v2058_v7 = vand.u32 2147483647, %v10547_v34  ;;  %v2059_v16 = vand.u32 2147483647, %v10548_v13  ;;  %v2060_v20 = vand.u32 2147483647, %v10549_v48 }
 0x446   : > { %v10550_v41 = vld [vmem:[#allocation30_spill] sm:$0xff]  ;;  %v10551_v1 = vld [vmem:[#allocation31_spill] sm:$0xff]  ;;  %v10555_v6 = vld [vmem:[#allocation60_spill] sm:$0xff] }
 0x447   : > { %v2061_v50 = vand.u32 2147483647, %v10550_v41  ;;  %v2062_v25 = vand.u32 2147483647, %v10551_v1  ;;  %v10552_v37 = vld [vmem:[#allocation58_spill] sm:$0xff]  ;;  %v10553_v33 = vld [vmem:[#allocation59_spill] sm:$0xff] }
 0x448   : > { %v2063_v63 = vand.u32 2147483647, %v10552_v37  ;;  %v2064_v36 = vand.u32 2147483647, %v10553_v33  ;;  %v10554_v46 = vld [vmem:[#allocation50_spill] sm:$0xff]  ;;  %v10556_v3 = vld [vmem:[#allocation61_spill] sm:$0xff] }
 0x449   : > { %v2065_v10 = vand.u32 2147483647, %v10554_v46  ;;  %v2066_v53 = vand.u32 2147483647, %v10555_v6  ;;  %v2067_v0 = vand.u32 2147483647, %v10556_v3 }
 0x44a   : > { %v10557_v11 = vld [vmem:[#allocation62_spill] sm:$0xff]  ;;  %v10558_v23 = vld [vmem:[#allocation63_spill] sm:$0xff]  ;;  %v10559_v58 = vld [vmem:[#allocation64_spill] sm:$0xff] }
 0x44b   : > { %v2068_v39 = vand.u32 2147483647, %v10557_v11  ;;  %v2069_v57 = vand.u32 2147483647, %v10558_v23  ;;  %v2070_v49 = vand.u32 2147483647, %v10559_v58 }
 0x44c   : > { %v10560_v28 = vld [vmem:[#allocation65_spill] sm:$0xff]  ;;  %v10561_v31 = vld [vmem:[#allocation66_spill] sm:$0xff]  ;;  %v10562_v47 = vld [vmem:[#allocation51_spill] sm:$0xff]  ;;  %v2080_v58 = vand.u32 2147483647, %v10569_v45 }
 0x44d   : > { %v2071_v38 = vand.u32 2147483647, %v10560_v28  ;;  %v2072_v26 = vand.u32 2147483647, %v10561_v31  ;;  %v2073_v14 = vand.u32 2147483647, %v10562_v47 }
 0x44e   : > { %v10563_v34 = vld [vmem:[#allocation67_spill] sm:$0xff]  ;;  %v10564_v48 = vld [vmem:[#allocation68_spill] sm:$0xff]  ;;  %v10565_v1 = vld [vmem:[#allocation69_spill] sm:$0xff]  ;;  %v2081_v28 = vand.u32 2147483647, %v10570_v42 }
 0x44f   : > { %v2074_v13 = vand.u32 2147483647, %v10563_v34  ;;  %v2075_v41 = vand.u32 2147483647, %v10564_v48  ;;  %v2076_v37 = vand.u32 2147483647, %v10565_v1 }
 0x450   : > { %v10566_v33 = vld [vmem:[#allocation70_spill] sm:$0xff]  ;;  %v10567_v6 = vld [vmem:[#allocation71_spill] sm:$0xff]  ;;  %v10568_v11 = vld [vmem:[#allocation72_spill] sm:$0xff]  ;;  %v2082_v31 = vand.u32 2147483647, %v10571_v19 }
 0x451   : > { %v2077_v46 = vand.u32 2147483647, %v10566_v33  ;;  %v2078_v3 = vand.u32 2147483647, %v10567_v6  ;;  %v2079_v23 = vand.u32 2147483647, %v10568_v11 }
 0x452   : > { %v2083_v47 = vand.u32 2147483647, %v10572_v4  ;;  %v2084_v34 = vand.u32 2147483647, %v10573_v24  ;;  %v2085_v48 = vand.u32 2147483647, %v10574_v9 }
 0x453   : > { %v2086_v1 = vand.u32 2147483647, %v10575_v56  ;;  %v2087_v33 = vand.u32 2147483647, %v10576_v62  ;;  %v10577_v6 = vld [vmem:[#allocation80_spill] sm:$0xff]  ;;  %v10579_v19 = vld [vmem:[#allocation81_spill] sm:$0xff] }
 0x454   : > { %v2088_v11 = vand.u32 2147483647, %v10577_v6  ;;  %v10578_v45 = vld [vmem:[#allocation52_spill] sm:$0xff]  ;;  %v2090_v4 = vand.u32 2147483647, %v10579_v19  ;;  %v10580_v24 = vld [vmem:[#allocation82_spill] sm:$0xff] }
 0x455   : > { %v2089_v42 = vand.u32 2147483647, %v10578_v45  ;;  %v2091_v9 = vand.u32 2147483647, %v10580_v24  ;;  %v10581_v56 = vld [vmem:[#allocation83_spill] sm:$0xff]  ;;  %v10582_v6 = vld [vmem:[#allocation84_spill] sm:$0xff] }
 0x456   : > { %v2092_v62 = vand.u32 2147483647, %v10581_v56  ;;  %v2093_v45 = vand.u32 2147483647, %v10582_v6  ;;  %v10583_v19 = vld [vmem:[#allocation85_spill] sm:$0xff]  ;;  %v10584_v56 = vld [vmem:[#allocation86_spill] sm:$0xff] }
 0x457   : > { %v2094_v24 = vand.u32 2147483647, %v10583_v19  ;;  %v2095_v6 = vand.u32 2147483647, %v10584_v56  ;;  %v8720_v19 = vsub.f32 1.0, %v2033_v30  ;;  %v8722_v56 = vsub.f32 1.0, %v2034_v2 }
 0x458   : > { %v8724_v30 = vsub.f32 1.0, %v2035_v55  ;;  %v8728_v2 = vsub.f32 1.0, %v2037_v32  ;;  %v8732_v55 = vsub.f32 1.0, %v2039_v40  ;;  %v8740_v32 = vsub.f32 1.0, %v2044_v44 }
 0x459   : > { %10586 = vst [vmem:[#allocation55_spill] sm:$0xff] %v8720_v19  ;;  %10587 = vst [vmem:[#allocation97_spill] sm:$0xff] %v8722_v56  ;;  %v8726_v19 = vsub.f32 1.0, %v2036_v5  ;;  %v8730_v56 = vsub.f32 1.0, %v2038_v22  ;;  %v8736_v5 = vsub.f32 1.0, %v2042_v8  ;;  %v8744_v22 = vsub.f32 1.0, %v2046_v29 }
 0x45a   : > { %10588 = vst [vmem:[#allocation98_spill] sm:$0xff] %v8724_v30  ;;  %10590 = vst [vmem:[#allocation92_spill] sm:$0xff] %v8728_v2  ;;  %v8734_v30 = vsub.f32 1.0, %v2041_v52  ;;  %v8742_v2 = vsub.f32 1.0, %v2045_v61  ;;  %v8748_v40 = vsub.f32 1.0, %v2048_v17  ;;  %v8752_v52 = vsub.f32 1.0, %v2050_v54 }
 0x45b   : > { %10589 = vst [vmem:[#allocation99_spill] sm:$0xff] %v8726_v19  ;;  %10591 = vst [vmem:[#allocation95_spill] sm:$0xff] %v8730_v56  ;;  %v8738_v19 = vsub.f32 1.0, %v2043_v59  ;;  %v8746_v56 = vsub.f32 1.0, %v2047_v43  ;;  %v8756_v8 = vsub.f32 1.0, %v2052_v27  ;;  %v8758_v59 = vsub.f32 1.0, %v2053_v15 }
 0x45c   : > { %10592 = vst [vmem:[#allocation96_spill] sm:$0xff] %v8732_v55  ;;  %10593 = vst [vmem:[#allocation48_spill] sm:$0xff] %v8734_v30  ;;  %v8750_v55 = vsub.f32 1.0, %v2049_v51  ;;  %v8754_v30 = vsub.f32 1.0, %v2051_v21  ;;  %v8760_v44 = vsub.f32 1.0, %v2054_v60  ;;  %v8762_v61 = vsub.f32 1.0, %v2055_v35 }
 0x45d   : > { %v8764_v29 = vsub.f32 1.0, %v2056_v18  ;;  %v8766_v43 = vsub.f32 1.0, %v2057_v12  ;;  %v8768_v17 = vsub.f32 1.0, %v2058_v7  ;;  %v8770_v51 = vsub.f32 1.0, %v2059_v16 }
 0x45e   : > { %v8772_v54 = vsub.f32 1.0, %v2060_v20  ;;  %v8774_v21 = vsub.f32 1.0, %v2061_v50  ;;  %v8776_v27 = vsub.f32 1.0, %v2062_v25  ;;  %v8778_v15 = vsub.f32 1.0, %v2063_v63 }
 0x45f   : > { %v8780_v60 = vsub.f32 1.0, %v2064_v36  ;;  %v8782_v35 = vsub.f32 1.0, %v2065_v10  ;;  %v8784_v18 = vsub.f32 1.0, %v2066_v53  ;;  %v8786_v12 = vsub.f32 1.0, %v2067_v0 }
 0x460   : > { %v8788_v7 = vsub.f32 1.0, %v2068_v39  ;;  %v8790_v16 = vsub.f32 1.0, %v2069_v57  ;;  %v8792_v20 = vsub.f32 1.0, %v2070_v49  ;;  %v8794_v50 = vsub.f32 1.0, %v2071_v38 }
 0x461   : > { %v8796_v25 = vsub.f32 1.0, %v2072_v26  ;;  %v8798_v63 = vsub.f32 1.0, %v2073_v14  ;;  %v8800_v36 = vsub.f32 1.0, %v2074_v13  ;;  %v8802_v10 = vsub.f32 1.0, %v2075_v41 }
 0x462   : > { %v8804_v53 = vsub.f32 1.0, %v2076_v37  ;;  %v8806_v0 = vsub.f32 1.0, %v2077_v46  ;;  %v8808_v39 = vsub.f32 1.0, %v2078_v3  ;;  %v8810_v57 = vsub.f32 1.0, %v2079_v23 }
 0x463   : > { %v8812_v49 = vsub.f32 1.0, %v2080_v58  ;;  %v8814_v38 = vsub.f32 1.0, %v2081_v28  ;;  %v8816_v26 = vsub.f32 1.0, %v2082_v31  ;;  %v8818_v14 = vsub.f32 1.0, %v2083_v47 }
 0x464   : > { %10594 = vst [vmem:[#allocation101_spill] sm:$0xff] %v8808_v39  ;;  %10595 = vst [vmem:[#allocation88_spill] sm:$0xff] %v8810_v57  ;;  %v8820_v13 = vsub.f32 1.0, %v2084_v34  ;;  %v8822_v41 = vsub.f32 1.0, %v2085_v48  ;;  %v8824_v37 = vsub.f32 1.0, %v2086_v1  ;;  %v8826_v46 = vsub.f32 1.0, %v2087_v33 }
 0x465   : > { %10596 = vst [vmem:[#allocation100_spill] sm:$0xff] %v8812_v49  ;;  %v8828_v3 = vsub.f32 1.0, %v2088_v11  ;;  %v8830_v23 = vsub.f32 1.0, %v2089_v42  ;;  %v8832_v58 = vsub.f32 1.0, %v2090_v4  ;;  %v8834_v28 = vsub.f32 1.0, %v2091_v9  ;;  %v10602_v1 = vld [vmem:[#allocation55_spill] sm:$0xff] }
 0x466   : > { %10597 = vst [vmem:[#allocation57_spill] sm:$0xff] %v8824_v37  ;;  %10598 = vst [vmem:[#allocation19_spill] sm:$0xff] %v8826_v46  ;;  %v8836_v31 = vsub.f32 1.0, %v2092_v62  ;;  %v8838_v47 = vsub.f32 1.0, %v2093_v45  ;;  %v8840_v34 = vsub.f32 1.0, %v2094_v24  ;;  %v8842_v48 = vsub.f32 1.0, %v2095_v6 }
 0x467   : > { %10599 = vst [vmem:[#allocation16_spill] sm:$0xff] %v8828_v3  ;;  %v2161_v49 = vmax.f32 %v10602_v1, 0.0  ;;  %v10603_v33 = vld [vmem:[#allocation97_spill] sm:$0xff]  ;;  %v10604_v11 = vld [vmem:[#allocation98_spill] sm:$0xff]  ;;  %v2170_v42 = vmax.f32 %v8736_v5, 0.0  ;;  %v10605_v4 = vld [vmem:[#allocation99_spill] sm:$0xff] }
 0x468   : > { %10600 = vst [vmem:[#allocation89_spill] sm:$0xff] %v8840_v34  ;;  %10601 = vst [vmem:[#allocation91_spill] sm:$0xff] %v8842_v48  ;;  %v2162_v57 = vmax.f32 %v10603_v33, 0.0  ;;  %v2163_v3 = vmax.f32 %v10604_v11, 0.0  ;;  %v2164_v46 = vmax.f32 %v10605_v4, 0.0  ;;  %v10606_v9 = vld [vmem:[#allocation92_spill] sm:$0xff] }
 0x469   : > { %v10607_v62 = vld [vmem:[#allocation95_spill] sm:$0xff]  ;;  %v2178_v45 = vmax.f32 %v8752_v52, 0.0  ;;  %v10608_v24 = vld [vmem:[#allocation96_spill] sm:$0xff]  ;;  %v2171_v1 = vmax.f32 %v8738_v19, 0.0  ;;  %v2172_v33 = vmax.f32 %v8740_v32, 0.0  ;;  %v2173_v11 = vmax.f32 %v8742_v2, 0.0 }
 0x46a   : > { %v10609_v6 = vld [vmem:[#allocation48_spill] sm:$0xff]  ;;  %v2174_v5 = vmax.f32 %v8744_v22, 0.0  ;;  %v2177_v39 = vmax.f32 %v8750_v55, 0.0  ;;  %v2179_v52 = vmax.f32 %v8754_v30, 0.0  ;;  %v2180_v34 = vmax.f32 %v8756_v8, 0.0 }
 0x46b   : > { %v2169_v48 = vmax.f32 %v10609_v6, 0.0  ;;  %v2181_v19 = vmax.f32 %v8758_v59, 0.0  ;;  %v2182_v32 = vmax.f32 %v8760_v44, 0.0  ;;  %v2194_v2 = vmax.f32 %v8784_v18, 0.0 }
 0x46c   : > { %v2310_v22 = vsel %vm2289_vm12, %v2178_v45, %v2177_v39  ;;  %v2183_v4 = vmax.f32 %v8762_v61, 0.0  ;;  %v2184_v55 = vmax.f32 %v8764_v29, 0.0  ;;  %v2185_v37 = vmax.f32 %v8766_v43, 0.0  ;;  %v10618_v29 = vld [vmem:[#allocation8_spill] sm:$0xff] }
 0x46d   : > { %v2303_v6 = vsel %vm2289_vm12, %v2170_v42, %v2169_v48  ;;  %v2186_v30 = vmax.f32 %v8768_v17, 0.0  ;;  %v2187_v8 = vmax.f32 %v8770_v51, 0.0  ;;  %v2188_v48 = vmax.f32 %v8772_v54, 0.0 }
 0x46e   : > { %v2193_v59 = vmax.f32 %v8782_v35, 0.0  ;;  %v2304_v44 = vsel %vm2291_vm0, %v2171_v1, %v2303_v6  ;;  %v2189_v18 = vmax.f32 %v8774_v21, 0.0  ;;  %v2195_v39 = vmax.f32 %v8786_v12, 0.0 }
 0x46f   : > { %v2290_v61 = vsel %vm2289_vm12, %v2162_v57, %v2161_v49  ;;  %v2311_v42 = vsel %vm2291_vm0, %v2179_v52, %v2310_v22  ;;  %v2190_v43 = vmax.f32 %v8776_v27, 0.0  ;;  %v2191_v17 = vmax.f32 %v8778_v15, 0.0 }
 0x470   : > { %v2210_v51 = vmax.f32 %v8816_v26, 0.0  ;;  %v2324_v54 = vsel %vm2289_vm12, %v2194_v2, %v2193_v59  ;;  %v2192_v35 = vmax.f32 %v8780_v60, 0.0  ;;  %v2202_v45 = vmax.f32 %v8800_v36, 0.0 }
 0x471   : > { %v2305_v21 = vsel %vm2293_vm8, %v2172_v33, %v2304_v44  ;;  %v2317_v12 = vsel %vm2289_vm12, %v2186_v30, %v2185_v37  ;;  %v2196_v57 = vmax.f32 %v8788_v7, 0.0  ;;  %v2209_v49 = vmax.f32 %v8814_v38, 0.0  ;;  %v10611_v44 = vld [vmem:[#allocation32_spill] sm:$0xff] }
 0x472   : > { %v2292_v27 = vsel %vm2291_vm0, %v2163_v3, %v2290_v61  ;;  %v2312_v1 = vsel %vm2293_vm8, %v2180_v34, %v2311_v42  ;;  %v2197_v26 = vmax.f32 %v8790_v16, 0.0  ;;  %v2201_v52 = vmax.f32 %v8798_v63, 0.0 }
 0x473   : > { %v2211_v6 = vmax.f32 %v8818_v14, 0.0  ;;  %v2325_v36 = vsel %vm2291_vm0, %v2195_v39, %v2324_v54  ;;  %v2203_v33 = vmax.f32 %v8802_v10, 0.0  ;;  %v2306_v37 = vsel %vm2295_vm9, %v2173_v11, %v2305_v21 }
 0x474   : > { %v2318_v7 = vsel %vm2291_vm0, %v2187_v8, %v2317_v12  ;;  %v2338_v38 = vsel %vm2289_vm12, %v2210_v51, %v2209_v49  ;;  %v2218_v3 = vmax.f32 %v8832_v58, 0.0  ;;  %v2294_v34 = vsel %vm2293_vm8, %v2164_v46, %v2292_v27 }
 0x475   : > { %v2313_v16 = vsel %vm2295_vm9, %v2181_v19, %v2312_v1  ;;  %v2331_v63 = vsel %vm2289_vm12, %v2202_v45, %v2201_v52  ;;  %v2198_v14 = vmax.f32 %v8792_v20, 0.0  ;;  %v2204_v2 = vmax.f32 %v8804_v53, 0.0 }
 0x476   : > { %v2212_v10 = vmax.f32 %v8820_v13, 0.0  ;;  %v2326_v11 = vsel %vm2293_vm8, %v2196_v57, %v2325_v36  ;;  %v2217_v22 = vmax.f32 %v8830_v23, 0.0  ;;  %v2307_v30 = vsel %vm2297_vm15, %v2174_v5, %v2306_v37 }
 0x477   : > { %v2319_v58 = vsel %vm2293_vm8, %v2188_v48, %v2318_v7  ;;  %v2339_v46 = vsel %vm2291_vm0, %v2211_v6, %v2338_v38  ;;  %v2219_v19 = vmax.f32 %v8834_v28, 0.0  ;;  %v10610_v8 = vmax.f32 %v10606_v9, 0.0 }
 0x478   : > { %v2314_v53 = vsel %vm2297_vm15, %v2182_v32, %v2313_v16  ;;  %v2332_v13 = vsel %vm2291_vm0, %v2203_v33, %v2331_v63  ;;  %v2199_v59 = vmax.f32 %v8794_v50, 0.0  ;;  %v2327_v23 = vsel %vm2295_vm9, %v2197_v26, %v2326_v11 }
 0x479   : > { %v2296_v20 = vsel %vm2295_vm9, %v10610_v8, %v2294_v34  ;;  %v2345_v5 = vsel %vm2289_vm12, %v2218_v3, %v2217_v22  ;;  %v2040_v48 = vand.u32 2147483647, %v10611_v44  ;;  %v2213_v39 = vmax.f32 %v8822_v41, 0.0  ;;  %v10620_v34 = vld [vmem:[#allocation10_spill] sm:$0xff]  ;;  %v10624_v22 = vld [vmem:[#allocation89_spill] sm:$0xff] }
 0x47a   : > { %v10612_v28 = vmax.f32 %v8746_v56, 0.0  ;;  %v2320_v61 = vsel %vm2295_vm9, %v2189_v18, %v2319_v58  ;;  %v2340_v32 = vsel %vm2293_vm8, %v2212_v10, %v2339_v46  ;;  %v2220_v42 = vmax.f32 %v8836_v31, 0.0 }
 0x47b   : > { %v10613_v50 = vmax.f32 %v10607_v62, 0.0  ;;  %v2315_v54 = vsel %vm2299_vm13, %v2183_v4, %v2314_v53  ;;  %v2333_v45 = vsel %vm2293_vm8, %v2204_v2, %v2332_v13  ;;  %v2200_v41 = vmax.f32 %v8796_v25, 0.0  ;;  %v10615_v4 = vld [vmem:[#allocation57_spill] sm:$0xff]  ;;  %v10627_v13 = vld [vmem:[#allocation16_spill] sm:$0xff] }
 0x47c   : > { %v2308_v9 = vsel %vm2299_vm13, %v10612_v28, %v2307_v30  ;;  %v2205_v56 = vmax.f32 %v8806_v0, 0.0  ;;  %v2328_v21 = vsel %vm2297_vm15, %v2198_v14, %v2327_v23  ;;  %v2346_v18 = vsel %vm2291_vm0, %v2219_v19, %v2345_v5  ;;  %v10621_v14 = vld [vmem:[#allocation87_spill] sm:$0xff]  ;;  %v10625_v19 = vld [vmem:[#allocation9_spill] sm:$0xff] }
 0x47d   : > { %v2298_v51 = vsel %vm2297_vm15, %v10613_v50, %v2296_v20  ;;  %v10614_v12 = vmax.f32 %v8748_v40, 0.0  ;;  %v2321_v62 = vsel %vm2297_vm15, %v2190_v43, %v2320_v61  ;;  %v2341_v57 = vsel %vm2295_vm9, %v2213_v39, %v2340_v32  ;;  %v10617_v40 = vld [vmem:[#allocation101_spill] sm:$0xff]  ;;  %v10626_v20 = vld [vmem:[#allocation100_spill] sm:$0xff]  ;;  %v10631_v28 = vld [vmem:[#allocation91_spill] sm:$0xff] }
 0x47e   : > { %v2104_v49 = vsub.f32 1.0, %v2040_v48  ;;  %v2214_v27 = vmax.f32 %v10615_v4, 0.0  ;;  %v10616_v1 = vmax.f32 %v10608_v24, 0.0  ;;  %v2316_v0 = vsel %vm2301_vm14, %v2184_v55, %v2315_v54  ;;  %v10619_v55 = vld [vmem:[#allocation19_spill] sm:$0xff]  ;;  %v10629_v48 = vld [vmem:[#allocation12_spill] sm:$0xff] }
 0x47f   : > { %v2309_v31 = vsel %vm2301_vm14, %v10614_v12, %v2308_v9  ;;  %v2334_v26 = vsel %vm2295_vm9, %v2205_v56, %v2333_v45  ;;  %v2206_v52 = vmax.f32 %v10617_v40, 0.0  ;;  %v2329_v6 = vsel %vm2299_vm13, %v2199_v59, %v2328_v21  ;;  %v10632_v32 = vld [vmem:[#allocation11_spill] sm:$0xff]  ;;  %v10633_v21 = vld [vmem:[#allocation14_spill] sm:$0xff] }
 0x480   : > { %v2300_v25 = vsel %vm2299_vm13, %v10616_v1, %v2298_v51  ;;  %v2347_v43 = vsel %vm2293_vm8, %v2220_v42, %v2346_v18  ;;  %v2168_v36 = vmax.f32 %v2104_v49, 0.0  ;;  %v2221_v33 = vmax.f32 %v8838_v47, 0.0  ;;  %v10623_v47 = vld [vmem:[#allocation88_spill] sm:$0xff]  ;;  %v10638_v40 = vld [vmem:[#allocation15_spill] sm:$0xff] }
 0x481   : > { %v2322_v24 = vsel %vm2299_vm13, %v2191_v17, %v2321_v62  ;;  %v2342_v37 = vsel %vm2297_vm15, %v2214_v27, %v2341_v57  ;;  %v2361_v7 = vmul.f32 %v2309_v31, %v10618_v29  ;;  %v2215_v38 = vmax.f32 %v10619_v55, 0.0  ;;  %v10635_v31 = vld [vmem:[#allocation13_spill] sm:$0xff] }
 0x482   : > { %v2335_v3 = vsel %vm2297_vm15, %v2206_v52, %v2334_v26  ;;  %v2362_v16 = vmul.f32 %v2316_v0, %v10620_v34  ;;  %v2302_v63 = vsel %vm2301_vm14, %v2168_v36, %v2300_v25  ;;  %v10622_v2 = vand.u32 2147483647, %v10621_v14 }
 0x483   : > { %v2207_v11 = vmax.f32 %v10623_v47, 0.0  ;;  %v2330_v15 = vsel %vm2301_vm14, %v2200_v41, %v2329_v6  ;;  %v2348_v17 = vsel %vm2295_vm9, %v2221_v33, %v2347_v43  ;;  %v2222_v30 = vmax.f32 %v10624_v22, 0.0 }
 0x484   : > { %v2160_v10 = vsub.f32 1.0, %v10622_v2  ;;  %v2323_v58 = vsel %vm2301_vm14, %v2192_v35, %v2322_v24  ;;  %v2343_v46 = vsel %vm2299_vm13, %v2215_v38, %v2342_v37  ;;  %v2360_v8 = vmul.f32 %v2302_v63, %v10625_v19 }
 0x485   : > { %v2208_v53 = vmax.f32 %v10626_v20, 0.0  ;;  %v2216_v59 = vmax.f32 %v10627_v13, 0.0  ;;  %v2336_v23 = vsel %vm2299_vm13, %v2207_v11, %v2335_v3  ;;  %v2375_v5 = vsel %vm10628_vm2, %v2361_v7, 0.0 }
 0x486   : > { %v2349_v44 = vsel %vm2297_vm15, %v2222_v30, %v2348_v17  ;;  %v2364_v39 = vmul.f32 %v2330_v15, %v10629_v48  ;;  %v2382_v60 = vsel %vm9840_vm1, %v2362_v16, 0.0  ;;  %v2368_v35 = vsel %vm10630_vm10, %v2360_v8, 0.0 }
 0x487   : > { %v2223_v9 = vmax.f32 %v10631_v28, 0.0  ;;  %v2344_v61 = vsel %vm2301_vm14, %v2216_v59, %v2343_v46  ;;  %v2363_v42 = vmul.f32 %v2323_v58, %v10632_v32  ;;  %v2337_v50 = vsel %vm2301_vm14, %v2208_v53, %v2336_v23 }
 0x488   : > { %v2376_v51 = vrot.slane %v2375_v5, 4  ;;  %v2369_v54 = vrot.slane %v2368_v35, 4  ;;  %v2383_v41 = vrot.slane %v2382_v60, 4  ;;  %v2224_v56 = vmax.f32 %v2160_v10, 0.0 }
 0x489   : > { %v2350_v45 = vsel %vm2299_vm13, %v2223_v9, %v2349_v44  ;;  %v2366_v18 = vmul.f32 %v2344_v61, %v10633_v21  ;;  %v2396_v12 = vsel %vm10634_vm6, %v2364_v39, 0.0  ;;  %v2365_v62 = vmul.f32 %v2337_v50, %v10635_v31  ;;  %v3836_v31 = vpop.permute.xlu1 %3835 }
 0x48a   : > { %v2389_v57 = vsel %vm10636_vm5, %v2363_v42, 0.0  ;;  %v2351_v49 = vsel %vm2301_vm14, %v2224_v56, %v2350_v45  ;;  %v2377_v4 = vadd.f32 %v2376_v51, %v2375_v5  ;;  %v2370_v27 = vadd.f32 %v2369_v54, %v2368_v35  ;;  %v3800_v54 = vpop.permute.xlu0 %3799 }
 0x48b   : > { %v2384_v1 = vadd.f32 %v2383_v41, %v2382_v60  ;;  %v2397_v25 = vrot.slane %v2396_v12, 4  ;;  %v2390_v0 = vrot.slane %v2389_v57, 4  ;;  %v2410_v26 = vsel %vm10637_vm3, %v2366_v18, 0.0 }
 0x48c   : > { %v2367_v52 = vmul.f32 %v2351_v49, %v10638_v40  ;;  %v2403_v6 = vsel %vm10639_vm11, %v2365_v62, 0.0  ;;  %v2378_v43 = vrot.slane %v2377_v4, 2  ;;  %v2371_v36 = vrot.slane %v2370_v27, 2 }
 0x48d   : > { %v2385_v33 = vrot.slane %v2384_v1, 2  ;;  %v2398_v24 = vadd.f32 %v2397_v25, %v2396_v12  ;;  %v2411_v37 = vrot.slane %v2410_v26, 4  ;;  %v2391_v29 = vadd.f32 %v2390_v0, %v2389_v57 }
 0x48e   : > { %v2404_v7 = vrot.slane %v2403_v6, 4  ;;  %v2417_v55 = vsel %vm10640_vm7, %v2367_v52, 0.0  ;;  %v2379_v38 = vadd.f32 %v2378_v43, %v2377_v4  ;;  %v2372_v3 = vadd.f32 %v2371_v36, %v2370_v27 }
 0x48f   : > { %v2386_v34 = vadd.f32 %v2385_v33, %v2384_v1  ;;  %v2399_v16 = vrot.slane %v2398_v24, 2  ;;  %v2412_v63 = vadd.f32 %v2411_v37, %v2410_v26  ;;  %v2392_v14 = vrot.slane %v2391_v29, 2 }
 0x490   : > { %v2405_v2 = vadd.f32 %v2404_v7, %v2403_v6  ;;  %v2418_v10 = vrot.slane %v2417_v55, 4  ;;  %v2380_v47 = vrot.slane %v2379_v38, 1  ;;  %v2373_v11 = vrot.slane %v2372_v3, 1 }
 0x491   : > { %v2387_v15 = vrot.slane %v2386_v34, 1  ;;  %v2400_v17 = vadd.f32 %v2399_v16, %v2398_v24  ;;  %v2413_v22 = vrot.slane %v2412_v63, 2  ;;  %v2393_v30 = vadd.f32 %v2392_v14, %v2391_v29 }
 0x492   : > { %v2406_v58 = vrot.slane %v2405_v2, 2  ;;  %v2419_v46 = vadd.f32 %v2418_v10, %v2417_v55  ;;  %v2381_v19 = vadd.f32 %v2380_v47, %v2379_v38  ;;  %v2374_v8 = vadd.f32 %v2373_v11, %v2372_v3 }
 0x493   : > { %v2388_v20 = vadd.f32 %v2387_v15, %v2386_v34  ;;  %v2401_v53 = vrot.slane %v2400_v17, 1  ;;  %v2414_v13 = vadd.f32 %v2413_v22, %v2412_v63  ;;  %v2394_v59 = vrot.slane %v2393_v30, 1 }
 0x494   : > { %v2407_v23 = vadd.f32 %v2406_v58, %v2405_v2  ;;  %v2420_v5 = vrot.slane %v2419_v46, 2  ;;  %v3776_v44 = vsel %vm2289_vm12, %v2381_v19, %v2374_v8  ;;  %vm3839_vm12 = vcmask 523264  }
 0x495   : > { %v2402_v48 = vadd.f32 %v2401_v53, %v2400_v17  ;;  %v2415_v39 = vrot.slane %v2414_v13, 1  ;;  %v3777_v60 = vsel %vm2291_vm0, %v2388_v20, %v3776_v44  ;;  %v2395_v35 = vadd.f32 %v2394_v59, %v2393_v30 }
 0x496   : > { %v2408_v28 = vrot.slane %v2407_v23, 1  ;;  %v2421_v9 = vadd.f32 %v2420_v5, %v2419_v46  ;;  %vm3841_vm0 = vcmask 785408  }
 0x497   : > { %v3778_v61 = vsel %vm2293_vm8, %v2395_v35, %v3777_v60  ;;  %v2416_v32 = vadd.f32 %v2415_v39, %v2414_v13  ;;  %vm10641_vm8 = vmmov %vm9840_vm1 }
 0x498   : > { %v3779_v42 = vsel %vm2295_vm9, %v2402_v48, %v3778_v61  ;;  %v2409_v50 = vadd.f32 %v2408_v28, %v2407_v23  ;;  %v2422_v51 = vrot.slane %v2421_v9, 1 }
 0x49a   : > { %v3780_v45 = vsel %vm2297_vm15, %v2409_v50, %v3779_v42  ;;  %v2423_v56 = vadd.f32 %v2422_v51, %v2421_v9 }
 0x49b   : > { %v3781_v41 = vsel %vm2299_vm13, %v2416_v32, %v3780_v45 }
 0x49c   : > { %v3782_v21 = vsel %vm2301_vm14, %v2423_v56, %v3781_v41 }
 0x49d   : > { %v3838_v18 = vsel %vm10641_vm8, %v3782_v21, %v3800_v54 }
 0x4b4   : > { %v3818_v12 = vpop.permute.xlu0 %3817 }
 0x4b5   : > { %v3840_v62 = vsel %vm3839_vm12, %v3838_v18, %v3818_v12 }
 0x4b6   : > { %v3842_v57 = vsel %vm3841_vm0, %v3840_v62, %v3836_v31 }
 0x4b7   : > { %3843 = vst [vmem:[%s161_s4] sm:$0xff] %v3842_v57 }
 0x4b8   : > { %4382 = shalt.err (!%p4379_p2)
}
 0x4b9   : > { %s4383_s27 = scalar_lea.hbm %s9010_s14, 128  ;;  %s4387_s26 = scalar_lea.hbm %s9056_s2, 256 }
 0x4ba   : > { %p4384_p4 = scmp.ne.s32.totalorder %s9010_s14, %s4383_s27  ;;  %p4388_p9 = scmp.lt.u32.totalorder %s9010_s14, %s9056_s2 }
 0x4bb   : > { %p4389_p1 = scmp.lt.u32.totalorder %s4387_s26, %s4383_s27  ;;  %p4391_p6 = scmp.lt.u32.totalorder %s4383_s27, %s9010_s14 }
 0x4bc   : > { %p4385_p5 = pnand %p4384_p4, %p10642_p11 }
 0x4bd   : > { %p4390_p3 = por %p4389_p1, %p4388_p9 }
 0x4be   : > { %p4386_p7 = pneg %p4385_p5 }
 0x4bf   : > { %p4392_p12 = por %p4391_p6, %p4390_p3 }
 0x4c1   : > { %p4393_p13 = pnand %p4392_p12, %p4386_p7 }
 0x4c3   : > { %4396 = shalt.err (!%p4393_p13)
}
 0x4c4   : > { %4288 = dma.vmem_to_hbm [thread:$0]  (%p10642_p11), %s9012_s7, 128, %s9010_s14, %s3845_s13  }
 0x4c5 PF: > { %s3870_s6 = sand.u32 1, %s4423_s9   ;;  %p10643_p8 = scmp.ne.s32.totalorder %s9340_s22, 0 }
 0x4c6   : > { %p10644_p10 = scmp.ge.s32.totalorder %s4435_s12, 2  ;;  %s3871_s28 = scalar_lea.sflag [#allocation4], %s3870_s6 }
 0x4c8   : > { %p4295_p0 = pnand %p10644_p10, %p10643_p8 }
 0x4ca   : > { %4418 = dma.done.wait (!%p4295_p0), %s3871_s28, 128  }
 0x4cb   : > { %4420 = vsyncadd (!%p4295_p0), %s3871_s28, 4294967168  ;;  %p15_p2 = scmp.ge.s32.totalorder %s4486_s15, 4   ;;  %s10645_s9 = smov %s4427_s10 }
 0x4cc   : > { %s10646_s10 = smov %s4431_s11  ;;  %s10647_s11 = smov %s4498_s18 }
 0x4cd   : > { %s10648_s12 = smov %s4486_s15  ;;  %17 = sbr.rel (!%p15_p2) target bundleno = 5 (0x5), region = 73 }
 0x4d4   :  { %3876 = vsyncpa [#allocation3], 1 }
 0x4d5   :  { %3878 = vsyncpa [#allocation3 + $0x1], 1 }
 0x4d6   :  { %3879 = vsyncpa [#allocation4], 1 }
 0x4d7   :  { %3881 = vsyncpa [#allocation4 + $0x1], 1 }

</bundles_post_ra>
